<compile_context>
chip_gen: v5e
topology: v5e:2x2
jax: 0.10.0
libtpu: 0.0.40
codegen_flags: <defaults>
</compile_context>

<pallas_src>
import functools

import jax
import jax.numpy as jnp
from jax import lax  # noqa: F401  (kept for easy extension to fori_loop for long seq)
from jax.experimental import pallas as pl
from jax.experimental.pallas import tpu as pltpu


# ----------------------------------------------------------------------------
# Fused kernel: features -> stacked LSTM -> FC head, for ONE batch element.
# Grid axis 0 = batch ("parallel": sharded across TensorCores on v7x).
# ----------------------------------------------------------------------------
def _fused_forward_kernel(*refs, seq, hw, hidden, num_layers):
    """refs = [x, wct, bcc,
               (wih_t, whh_t, bias) * num_layers,
               fw1, fb1, fw2, fb2, fw3, fb3,
               out]
    x   : (1, C, seq*HW) bf16, channel-major frames of this sequence
    out : (1, 1, num_classes) f32
    """
    x_ref, wct_ref, bcc_ref = refs[0], refs[1], refs[2]
    lstm_refs = refs[3:3 + 3 * num_layers]
    (fw1_ref, fb1_ref, fw2_ref, fb2_ref,
     fw3_ref, fb3_ref, o_ref) = refs[3 + 3 * num_layers:]

    H = hidden
    F = wct_ref.shape[0]
    inv_hw = 1.0 / float(hw)

    # ---- feature extraction (review item 1): ONE slab matmul for all `seq`
    # frames of this sequence.  N = seq*HW lanes keeps the MXU / ReLU / pool
    # lane-dense; bf16 operands, f32 accumulation (item 7).
    x2d = x_ref[0]                                              # (C, seq*HW) bf16
    z = jnp.dot(wct_ref[...], x2d,
                preferred_element_type=jnp.float32)             # (F, seq*HW) f32
    z = jnp.maximum(z + bcc_ref[...], 0.0)                      # bias + ReLU (f32)
    # Global average pool per frame: lane-reduce each contiguous HW segment.
    feats_fn = jnp.sum(z.reshape(F, seq, hw), axis=-1) * inv_hw  # (F, seq) f32
    # Time-major features; bf16 only as the MXU operand of the ih matmul.
    src_bf = jnp.transpose(feats_fn).astype(jnp.bfloat16)        # (seq, F) bf16

    # ---- stacked LSTM, layer-outer / time-inner (review items 2+3).
    # PyTorch gate order along 4H is (i, f, g, o); bias = b_ih + b_hh pre-summed.
    h = jnp.zeros((1, H), jnp.float32)
    for l in range(num_layers):
        wih_ref, whh_ref, bias_ref = lstm_refs[3 * l:3 * l + 3]
        # Input->gates for ALL timesteps at once: one (seq, din)@(din, 4H) matmul
        # pulled off the serial recurrence path.
        gates_in = (jnp.dot(src_bf, wih_ref[...],
                            preferred_element_type=jnp.float32)
                    + bias_ref[...])                            # (seq, 4H) f32

        h = jnp.zeros((1, H), jnp.float32)
        c = jnp.zeros((1, H), jnp.float32)
        h_steps = []
        # seq is small & static -> unrolled recurrence (item 9: switch to
        # lax.fori_loop / a seq grid with VMEM-scratch carries if seq > ~16).
        for t in range(seq):
            # Recurrent matmul kept f32: M=1, K=H is MXU-trivial either way,
            # and this keeps the h/c state math in full precision (item 7).
            g = gates_in[t:t + 1, :] + jnp.dot(
                h, whh_ref[...], preferred_element_type=jnp.float32)   # (1, 4H)
            sg = jax.nn.sigmoid(g)             # one full-width EUP pass covers i/f/o
            gg = jnp.tanh(g[:, 2 * H:3 * H])
            # NOTE(item 8): the H-wide gate bands are lane-offset slices; the
            # compiler's lane rotates land on the otherwise-idle XLU slot here.
            c = sg[:, H:2 * H] * c + sg[:, 0:H] * gg
            h = sg[:, 3 * H:4 * H] * jnp.tanh(c)
            h_steps.append(h)

        # Whole h-sequence of this layer feeds the next layer's batched
        # input->gates matmul (layer l only depends on layer l-1's outputs).
        src_bf = jnp.concatenate(h_steps, axis=0).astype(jnp.bfloat16)  # (seq, H)

    # ---- FC head on the top layer's last hidden state (== lstm_out[:, -1, :]).
    y = h                                                       # (1, H) f32
    y = jnp.maximum(jnp.dot(y, fw1_ref[...],
                            preferred_element_type=jnp.float32) + fb1_ref[...], 0.0)
    y = jnp.maximum(jnp.dot(y, fw2_ref[...],
                            preferred_element_type=jnp.float32) + fb2_ref[...], 0.0)
    o_ref[0] = (jnp.dot(y, fw3_ref[...],
                        preferred_element_type=jnp.float32) + fb3_ref[...])


# ----------------------------------------------------------------------------
# Wrapper
# ----------------------------------------------------------------------------
def group_activity_temporal_classifier(x, params):
    """x: (b, seq, c, h, w) NCHW frames; returns (b, num_classes) logits."""
    b, seq, c, h, w = x.shape
    hw = h * w
    num_layers = len(params["lstm"])
    hidden = params["lstm"][0]["whh_t"].shape[0]
    num_classes = params["fc"]["w3t"].shape[1]

    # Channel-major relayout of x, fused by XLA with the bf16 downcast (item 7).
    # With the real ResNet50 backbone this relayout disappears (the backbone's
    # pooled features would feed the LSTM directly).
    x_cm = (jnp.transpose(x, (0, 2, 1, 3, 4))
            .reshape(b, c, seq * hw)
            .astype(jnp.bfloat16))

    args = [x_cm, params["wct"], params["bcc"]]
    for lp in params["lstm"]:
        args += [lp["wih_t"], lp["whh_t"], lp["bias"]]
    fc = params["fc"]
    args += [fc["w1t"], fc["b1"], fc["w2t"], fc["b2"], fc["w3t"], fc["b3"]]

    kernel = functools.partial(_fused_forward_kernel, seq=seq, hw=hw,
                               hidden=hidden, num_layers=num_layers)

    vmem = pl.BlockSpec(memory_space=pltpu.MemorySpace.VMEM)  # weights: fully resident
    in_specs = ([pl.BlockSpec((1, c, seq * hw), lambda i: (i, 0, 0))]  # per-sequence x tile
                + [vmem] * (len(args) - 1))

    out = pl.pallas_call(
        kernel,
        grid=(b,),                                   # items 4/6: batch grid axis
        out_shape=jax.ShapeDtypeStruct((b, 1, num_classes), jnp.float32),
        in_specs=in_specs,
        out_specs=pl.BlockSpec((1, 1, num_classes), lambda i: (i, 0, 0)),
        compiler_params=pltpu.CompilerParams(
            dimension_semantics=("parallel",),       # 2x across v7x's 2 TCs; no-op v5e/v6e
            vmem_limit_bytes=32 * 1024 * 1024,       # item 5: explicit budget, v7x-safe
        ),
    )(*args)
    return out.reshape(b, num_classes)


# ----------------------------------------------------------------------------
# Parameters (generated in PyTorch orientation, then pre-transposed /
# bias-summed / bf16-cast ONCE so the forward pass does no weight reshuffling).
# ----------------------------------------------------------------------------
def init_params(key, *, c, input_size, hidden_size, num_layers, num_classes):
    n_keys = 2 + 4 * num_layers + 6
    ks = jax.random.split(key, n_keys)
    s = 0.05
    idx = 0

    def nrm(shape):
        nonlocal idx
        out = s * jax.random.normal(ks[idx], shape, jnp.float32)
        idx += 1
        return out

    params = {
        # feature-extractor stand-in: 1x1 conv c -> input_size, stored (F, C)
        "wct": nrm((input_size, c)).astype(jnp.bfloat16),   # bf16 MXU operand
        "bcc": nrm((input_size, 1)),                        # f32 (post-matmul add)
        "lstm": [],
        "fc": {},
    }
    for layer in range(num_layers):
        din = input_size if layer == 0 else hidden_size
        w_ih = nrm((4 * hidden_size, din))           # PyTorch weight_ih_l{k}
        w_hh = nrm((4 * hidden_size, hidden_size))   # PyTorch weight_hh_l{k}
        b_ih = nrm((1, 4 * hidden_size))
        b_hh = nrm((1, 4 * hidden_size))
        params["lstm"].append({
            "wih_t": jnp.transpose(w_ih).astype(jnp.bfloat16),  # (din, 4H) bf16
            "whh_t": jnp.transpose(w_hh),                       # (H,   4H) f32 (recurrence)
            "bias": b_ih + b_hh,                                # (1, 4H)   pre-summed f32
        })
    w1, b1 = nrm((128, hidden_size)), nrm((1, 128))
    w2, b2 = nrm((64, 128)), nrm((1, 64))
    w3, b3 = nrm((num_classes, 64)), nrm((1, num_classes))
    params["fc"] = {
        "w1t": jnp.transpose(w1), "b1": b1,
        "w2t": jnp.transpose(w2), "b2": b2,
        "w3t": jnp.transpose(w3), "b3": b3,
    }
    return params


if __name__ == "__main__":
    # Small shapes consistent with the module's forward.
    b, seq, c, h, w = 2, 8, 4, 16, 16
    input_size, hidden_size, num_layers, num_classes = 32, 32, 2, 8

    key = jax.random.PRNGKey(0)
    k_x, k_p = jax.random.split(key)
    x = jax.random.normal(k_x, (b, seq, c, h, w), jnp.float32)
    params = init_params(k_p, c=c, input_size=input_size,
                         hidden_size=hidden_size, num_layers=num_layers,
                         num_classes=num_classes)

    fwd = jax.jit(group_activity_temporal_classifier)
    out = jax.block_until_ready(fwd(x, params))
    assert out.shape == (b, num_classes), out.shape
    print("KERNEL_OK")
</pallas_src>

<mosaic_0001>
module attributes {stable_mosaic.version = 11 : i64} {
  func.func @_fused_forward_kernel(%arg0: i32, %arg1: memref<1x4x2048xbf16, #tpu.memory_space<vmem>>, %arg2: memref<32x4xbf16, #tpu.memory_space<vmem>>, %arg3: memref<32x1xf32, #tpu.memory_space<vmem>>, %arg4: memref<32x128xbf16, #tpu.memory_space<vmem>>, %arg5: memref<32x128xf32, #tpu.memory_space<vmem>>, %arg6: memref<1x128xf32, #tpu.memory_space<vmem>>, %arg7: memref<32x128xbf16, #tpu.memory_space<vmem>>, %arg8: memref<32x128xf32, #tpu.memory_space<vmem>>, %arg9: memref<1x128xf32, #tpu.memory_space<vmem>>, %arg10: memref<32x128xf32, #tpu.memory_space<vmem>>, %arg11: memref<1x128xf32, #tpu.memory_space<vmem>>, %arg12: memref<128x64xf32, #tpu.memory_space<vmem>>, %arg13: memref<1x64xf32, #tpu.memory_space<vmem>>, %arg14: memref<64x8xf32, #tpu.memory_space<vmem>>, %arg15: memref<1x8xf32, #tpu.memory_space<vmem>>, %arg16: memref<1x1x8xf32, #tpu.memory_space<vmem>>) attributes {dimension_semantics = [#tpu.dimension_semantics<parallel>], iteration_bounds = array<i64: 2>, scalar_prefetch = 0 : i64, scratch_operands = 0 : i64, tpu.core_type = #tpu.core_type<tc>, window_params = [{transform_indices = @transform_0, window_bounds = array<i64: 1, 4, 2048>}, {pipeline_mode = #tpu.pipeline_mode<synchronous>, transform_indices = @transform_1, window_bounds = array<i64: 32, 4>}, {pipeline_mode = #tpu.pipeline_mode<synchronous>, transform_indices = @transform_2, window_bounds = array<i64: 32, 1>}, {pipeline_mode = #tpu.pipeline_mode<synchronous>, transform_indices = @transform_3, window_bounds = array<i64: 32, 128>}, {pipeline_mode = #tpu.pipeline_mode<synchronous>, transform_indices = @transform_4, window_bounds = array<i64: 32, 128>}, {pipeline_mode = #tpu.pipeline_mode<synchronous>, transform_indices = @transform_5, window_bounds = array<i64: 1, 128>}, {pipeline_mode = #tpu.pipeline_mode<synchronous>, transform_indices = @transform_6, window_bounds = array<i64: 32, 128>}, {pipeline_mode = #tpu.pipeline_mode<synchronous>, transform_indices = @transform_7, window_bounds = array<i64: 32, 128>}, {pipeline_mode = #tpu.pipeline_mode<synchronous>, transform_indices = @transform_8, window_bounds = array<i64: 1, 128>}, {pipeline_mode = #tpu.pipeline_mode<synchronous>, transform_indices = @transform_9, window_bounds = array<i64: 32, 128>}, {pipeline_mode = #tpu.pipeline_mode<synchronous>, transform_indices = @transform_10, window_bounds = array<i64: 1, 128>}, {pipeline_mode = #tpu.pipeline_mode<synchronous>, transform_indices = @transform_11, window_bounds = array<i64: 128, 64>}, {pipeline_mode = #tpu.pipeline_mode<synchronous>, transform_indices = @transform_12, window_bounds = array<i64: 1, 64>}, {pipeline_mode = #tpu.pipeline_mode<synchronous>, transform_indices = @transform_13, window_bounds = array<i64: 64, 8>}, {pipeline_mode = #tpu.pipeline_mode<synchronous>, transform_indices = @transform_14, window_bounds = array<i64: 1, 8>}, {transform_indices = @transform_15, window_bounds = array<i64: 1, 1, 8>}]} {
    %c0 = arith.constant 0 : index
    %c0_0 = arith.constant 0 : index
    %c0_1 = arith.constant 0 : index
    %0 = vector.load %arg1[%c0, %c0_0, %c0_1] : memref<1x4x2048xbf16, #tpu.memory_space<vmem>>, vector<1x4x2048xbf16>
    %1 = vector.shape_cast %0 : vector<1x4x2048xbf16> to vector<4x2048xbf16>
    %c0_2 = arith.constant 0 : index
    %c0_3 = arith.constant 0 : index
    %2 = vector.load %arg2[%c0_2, %c0_3] : memref<32x4xbf16, #tpu.memory_space<vmem>>, vector<32x4xbf16>
    %cst = arith.constant dense<0.000000e+00> : vector<32x2048xf32>
    %3 = tpu.matmul %2, %1, %cst {dimension_numbers = #tpu.dot_dimension_numbers<[1], [0], [0], [1], [0, 0, 1, 1], [], []>} : vector<32x4xbf16>, vector<4x2048xbf16>, vector<32x2048xf32> -> vector<32x2048xf32>
    %c0_4 = arith.constant 0 : index
    %c0_5 = arith.constant 0 : index
    %4 = vector.load %arg3[%c0_4, %c0_5] : memref<32x1xf32, #tpu.memory_space<vmem>>, vector<32x1xf32>
    %5 = vector.broadcast %4 : vector<32x1xf32> to vector<32x2048xf32>
    %6 = arith.addf %3, %5 : vector<32x2048xf32>
    %cst_6 = arith.constant 0.000000e+00 : f32
    %7 = vector.broadcast %cst_6 : f32 to vector<32x2048xf32>
    %8 = arith.maximumf %6, %7 : vector<32x2048xf32>
    %9 = vector.shape_cast %8 : vector<32x2048xf32> to vector<32x8x256xf32>
    %cst_7 = arith.constant dense<0.000000e+00> : vector<32x8xf32>
    %10 = vector.multi_reduction <add>, %9, %cst_7 [2] : vector<32x8x256xf32> to vector<32x8xf32>
    %cst_8 = arith.constant 3.906250e-03 : f32
    %11 = vector.broadcast %cst_8 : f32 to vector<32x8xf32>
    %12 = arith.mulf %10, %11 : vector<32x8xf32>
    %13 = tpu.transpose %12, [1, 0] : vector<32x8xf32> -> vector<8x32xf32>
    %14 = arith.truncf %13 : vector<8x32xf32> to vector<8x32xbf16>
    %c0_9 = arith.constant 0 : index
    %c0_10 = arith.constant 0 : index
    %15 = vector.load %arg4[%c0_9, %c0_10] : memref<32x128xbf16, #tpu.memory_space<vmem>>, vector<32x128xbf16>
    %cst_11 = arith.constant dense<0.000000e+00> : vector<8x128xf32>
    %16 = tpu.matmul %14, %15, %cst_11 {dimension_numbers = #tpu.dot_dimension_numbers<[1], [0], [0], [1], [0, 0, 1, 1], [], []>} : vector<8x32xbf16>, vector<32x128xbf16>, vector<8x128xf32> -> vector<8x128xf32>
    %c0_12 = arith.constant 0 : index
    %c0_13 = arith.constant 0 : index
    %17 = vector.load %arg6[%c0_12, %c0_13] : memref<1x128xf32, #tpu.memory_space<vmem>>, vector<1x128xf32>
    %18 = vector.broadcast %17 : vector<1x128xf32> to vector<8x128xf32>
    %19 = arith.addf %16, %18 : vector<8x128xf32>
    %cst_14 = arith.constant 0.000000e+00 : f32
    %20 = vector.broadcast %cst_14 : f32 to vector<1x32xf32>
    %cst_15 = arith.constant 0.000000e+00 : f32
    %21 = vector.broadcast %cst_15 : f32 to vector<1x32xf32>
    %22 = vector.extract_strided_slice %19 {offsets = [0, 0], sizes = [1, 128], strides = [1, 1]} : vector<8x128xf32> to vector<1x128xf32>
    %c0_16 = arith.constant 0 : index
    %c0_17 = arith.constant 0 : index
    %23 = vector.load %arg5[%c0_16, %c0_17] : memref<32x128xf32, #tpu.memory_space<vmem>>, vector<32x128xf32>
    %cst_18 = arith.constant dense<0.000000e+00> : vector<1x128xf32>
    %24 = tpu.matmul %20, %23, %cst_18 {dimension_numbers = #tpu.dot_dimension_numbers<[1], [0], [0], [1], [0, 0, 1, 1], [], []>} : vector<1x32xf32>, vector<32x128xf32>, vector<1x128xf32> -> vector<1x128xf32>
    %25 = arith.addf %22, %24 : vector<1x128xf32>
    %26 = arith.negf %25 : vector<1x128xf32>
    %27 = math.exp %26 : vector<1x128xf32>
    %cst_19 = arith.constant 1.000000e+00 : f32
    %28 = vector.broadcast %cst_19 : f32 to vector<1x128xf32>
    %29 = arith.addf %28, %27 : vector<1x128xf32>
    %30 = arith.divf %28, %29 : vector<1x128xf32>
    %31 = vector.extract_strided_slice %25 {offsets = [0, 64], sizes = [1, 32], strides = [1, 1]} : vector<1x128xf32> to vector<1x32xf32>
    %32 = math.tanh %31 : vector<1x32xf32>
    %33 = vector.extract_strided_slice %30 {offsets = [0, 32], sizes = [1, 32], strides = [1, 1]} : vector<1x128xf32> to vector<1x32xf32>
    %34 = arith.mulf %33, %21 : vector<1x32xf32>
    %35 = vector.extract_strided_slice %30 {offsets = [0, 0], sizes = [1, 32], strides = [1, 1]} : vector<1x128xf32> to vector<1x32xf32>
    %36 = arith.mulf %35, %32 : vector<1x32xf32>
    %37 = arith.addf %34, %36 : vector<1x32xf32>
    %38 = vector.extract_strided_slice %30 {offsets = [0, 96], sizes = [1, 32], strides = [1, 1]} : vector<1x128xf32> to vector<1x32xf32>
    %39 = math.tanh %37 : vector<1x32xf32>
    %40 = arith.mulf %38, %39 : vector<1x32xf32>
    %41 = vector.extract_strided_slice %19 {offsets = [1, 0], sizes = [1, 128], strides = [1, 1]} : vector<8x128xf32> to vector<1x128xf32>
    %c0_20 = arith.constant 0 : index
    %c0_21 = arith.constant 0 : index
    %42 = vector.load %arg5[%c0_20, %c0_21] : memref<32x128xf32, #tpu.memory_space<vmem>>, vector<32x128xf32>
    %cst_22 = arith.constant dense<0.000000e+00> : vector<1x128xf32>
    %43 = tpu.matmul %40, %42, %cst_22 {dimension_numbers = #tpu.dot_dimension_numbers<[1], [0], [0], [1], [0, 0, 1, 1], [], []>} : vector<1x32xf32>, vector<32x128xf32>, vector<1x128xf32> -> vector<1x128xf32>
    %44 = arith.addf %41, %43 : vector<1x128xf32>
    %45 = arith.negf %44 : vector<1x128xf32>
    %46 = math.exp %45 : vector<1x128xf32>
    %cst_23 = arith.constant 1.000000e+00 : f32
    %47 = vector.broadcast %cst_23 : f32 to vector<1x128xf32>
    %48 = arith.addf %47, %46 : vector<1x128xf32>
    %49 = arith.divf %47, %48 : vector<1x128xf32>
    %50 = vector.extract_strided_slice %44 {offsets = [0, 64], sizes = [1, 32], strides = [1, 1]} : vector<1x128xf32> to vector<1x32xf32>
    %51 = math.tanh %50 : vector<1x32xf32>
    %52 = vector.extract_strided_slice %49 {offsets = [0, 32], sizes = [1, 32], strides = [1, 1]} : vector<1x128xf32> to vector<1x32xf32>
    %53 = arith.mulf %52, %37 : vector<1x32xf32>
    %54 = vector.extract_strided_slice %49 {offsets = [0, 0], sizes = [1, 32], strides = [1, 1]} : vector<1x128xf32> to vector<1x32xf32>
    %55 = arith.mulf %54, %51 : vector<1x32xf32>
    %56 = arith.addf %53, %55 : vector<1x32xf32>
    %57 = vector.extract_strided_slice %49 {offsets = [0, 96], sizes = [1, 32], strides = [1, 1]} : vector<1x128xf32> to vector<1x32xf32>
    %58 = math.tanh %56 : vector<1x32xf32>
    %59 = arith.mulf %57, %58 : vector<1x32xf32>
    %60 = vector.extract_strided_slice %19 {offsets = [2, 0], sizes = [1, 128], strides = [1, 1]} : vector<8x128xf32> to vector<1x128xf32>
    %c0_24 = arith.constant 0 : index
    %c0_25 = arith.constant 0 : index
    %61 = vector.load %arg5[%c0_24, %c0_25] : memref<32x128xf32, #tpu.memory_space<vmem>>, vector<32x128xf32>
    %cst_26 = arith.constant dense<0.000000e+00> : vector<1x128xf32>
    %62 = tpu.matmul %59, %61, %cst_26 {dimension_numbers = #tpu.dot_dimension_numbers<[1], [0], [0], [1], [0, 0, 1, 1], [], []>} : vector<1x32xf32>, vector<32x128xf32>, vector<1x128xf32> -> vector<1x128xf32>
    %63 = arith.addf %60, %62 : vector<1x128xf32>
    %64 = arith.negf %63 : vector<1x128xf32>
    %65 = math.exp %64 : vector<1x128xf32>
    %cst_27 = arith.constant 1.000000e+00 : f32
    %66 = vector.broadcast %cst_27 : f32 to vector<1x128xf32>
    %67 = arith.addf %66, %65 : vector<1x128xf32>
    %68 = arith.divf %66, %67 : vector<1x128xf32>
    %69 = vector.extract_strided_slice %63 {offsets = [0, 64], sizes = [1, 32], strides = [1, 1]} : vector<1x128xf32> to vector<1x32xf32>
    %70 = math.tanh %69 : vector<1x32xf32>
    %71 = vector.extract_strided_slice %68 {offsets = [0, 32], sizes = [1, 32], strides = [1, 1]} : vector<1x128xf32> to vector<1x32xf32>
    %72 = arith.mulf %71, %56 : vector<1x32xf32>
    %73 = vector.extract_strided_slice %68 {offsets = [0, 0], sizes = [1, 32], strides = [1, 1]} : vector<1x128xf32> to vector<1x32xf32>
    %74 = arith.mulf %73, %70 : vector<1x32xf32>
    %75 = arith.addf %72, %74 : vector<1x32xf32>
    %76 = vector.extract_strided_slice %68 {offsets = [0, 96], sizes = [1, 32], strides = [1, 1]} : vector<1x128xf32> to vector<1x32xf32>
    %77 = math.tanh %75 : vector<1x32xf32>
    %78 = arith.mulf %76, %77 : vector<1x32xf32>
    %79 = vector.extract_strided_slice %19 {offsets = [3, 0], sizes = [1, 128], strides = [1, 1]} : vector<8x128xf32> to vector<1x128xf32>
    %c0_28 = arith.constant 0 : index
    %c0_29 = arith.constant 0 : index
    %80 = vector.load %arg5[%c0_28, %c0_29] : memref<32x128xf32, #tpu.memory_space<vmem>>, vector<32x128xf32>
    %cst_30 = arith.constant dense<0.000000e+00> : vector<1x128xf32>
    %81 = tpu.matmul %78, %80, %cst_30 {dimension_numbers = #tpu.dot_dimension_numbers<[1], [0], [0], [1], [0, 0, 1, 1], [], []>} : vector<1x32xf32>, vector<32x128xf32>, vector<1x128xf32> -> vector<1x128xf32>
    %82 = arith.addf %79, %81 : vector<1x128xf32>
    %83 = arith.negf %82 : vector<1x128xf32>
    %84 = math.exp %83 : vector<1x128xf32>
    %cst_31 = arith.constant 1.000000e+00 : f32
    %85 = vector.broadcast %cst_31 : f32 to vector<1x128xf32>
    %86 = arith.addf %85, %84 : vector<1x128xf32>
    %87 = arith.divf %85, %86 : vector<1x128xf32>
    %88 = vector.extract_strided_slice %82 {offsets = [0, 64], sizes = [1, 32], strides = [1, 1]} : vector<1x128xf32> to vector<1x32xf32>
    %89 = math.tanh %88 : vector<1x32xf32>
    %90 = vector.extract_strided_slice %87 {offsets = [0, 32], sizes = [1, 32], strides = [1, 1]} : vector<1x128xf32> to vector<1x32xf32>
    %91 = arith.mulf %90, %75 : vector<1x32xf32>
    %92 = vector.extract_strided_slice %87 {offsets = [0, 0], sizes = [1, 32], strides = [1, 1]} : vector<1x128xf32> to vector<1x32xf32>
    %93 = arith.mulf %92, %89 : vector<1x32xf32>
    %94 = arith.addf %91, %93 : vector<1x32xf32>
    %95 = vector.extract_strided_slice %87 {offsets = [0, 96], sizes = [1, 32], strides = [1, 1]} : vector<1x128xf32> to vector<1x32xf32>
    %96 = math.tanh %94 : vector<1x32xf32>
    %97 = arith.mulf %95, %96 : vector<1x32xf32>
    %98 = vector.extract_strided_slice %19 {offsets = [4, 0], sizes = [1, 128], strides = [1, 1]} : vector<8x128xf32> to vector<1x128xf32>
    %c0_32 = arith.constant 0 : index
    %c0_33 = arith.constant 0 : index
    %99 = vector.load %arg5[%c0_32, %c0_33] : memref<32x128xf32, #tpu.memory_space<vmem>>, vector<32x128xf32>
    %cst_34 = arith.constant dense<0.000000e+00> : vector<1x128xf32>
    %100 = tpu.matmul %97, %99, %cst_34 {dimension_numbers = #tpu.dot_dimension_numbers<[1], [0], [0], [1], [0, 0, 1, 1], [], []>} : vector<1x32xf32>, vector<32x128xf32>, vector<1x128xf32> -> vector<1x128xf32>
    %101 = arith.addf %98, %100 : vector<1x128xf32>
    %102 = arith.negf %101 : vector<1x128xf32>
    %103 = math.exp %102 : vector<1x128xf32>
    %cst_35 = arith.constant 1.000000e+00 : f32
    %104 = vector.broadcast %cst_35 : f32 to vector<1x128xf32>
    %105 = arith.addf %104, %103 : vector<1x128xf32>
    %106 = arith.divf %104, %105 : vector<1x128xf32>
    %107 = vector.extract_strided_slice %101 {offsets = [0, 64], sizes = [1, 32], strides = [1, 1]} : vector<1x128xf32> to vector<1x32xf32>
    %108 = math.tanh %107 : vector<1x32xf32>
    %109 = vector.extract_strided_slice %106 {offsets = [0, 32], sizes = [1, 32], strides = [1, 1]} : vector<1x128xf32> to vector<1x32xf32>
    %110 = arith.mulf %109, %94 : vector<1x32xf32>
    %111 = vector.extract_strided_slice %106 {offsets = [0, 0], sizes = [1, 32], strides = [1, 1]} : vector<1x128xf32> to vector<1x32xf32>
    %112 = arith.mulf %111, %108 : vector<1x32xf32>
    %113 = arith.addf %110, %112 : vector<1x32xf32>
    %114 = vector.extract_strided_slice %106 {offsets = [0, 96], sizes = [1, 32], strides = [1, 1]} : vector<1x128xf32> to vector<1x32xf32>
    %115 = math.tanh %113 : vector<1x32xf32>
    %116 = arith.mulf %114, %115 : vector<1x32xf32>
    %117 = vector.extract_strided_slice %19 {offsets = [5, 0], sizes = [1, 128], strides = [1, 1]} : vector<8x128xf32> to vector<1x128xf32>
    %c0_36 = arith.constant 0 : index
    %c0_37 = arith.constant 0 : index
    %118 = vector.load %arg5[%c0_36, %c0_37] : memref<32x128xf32, #tpu.memory_space<vmem>>, vector<32x128xf32>
    %cst_38 = arith.constant dense<0.000000e+00> : vector<1x128xf32>
    %119 = tpu.matmul %116, %118, %cst_38 {dimension_numbers = #tpu.dot_dimension_numbers<[1], [0], [0], [1], [0, 0, 1, 1], [], []>} : vector<1x32xf32>, vector<32x128xf32>, vector<1x128xf32> -> vector<1x128xf32>
    %120 = arith.addf %117, %119 : vector<1x128xf32>
    %121 = arith.negf %120 : vector<1x128xf32>
    %122 = math.exp %121 : vector<1x128xf32>
    %cst_39 = arith.constant 1.000000e+00 : f32
    %123 = vector.broadcast %cst_39 : f32 to vector<1x128xf32>
    %124 = arith.addf %123, %122 : vector<1x128xf32>
    %125 = arith.divf %123, %124 : vector<1x128xf32>
    %126 = vector.extract_strided_slice %120 {offsets = [0, 64], sizes = [1, 32], strides = [1, 1]} : vector<1x128xf32> to vector<1x32xf32>
    %127 = math.tanh %126 : vector<1x32xf32>
    %128 = vector.extract_strided_slice %125 {offsets = [0, 32], sizes = [1, 32], strides = [1, 1]} : vector<1x128xf32> to vector<1x32xf32>
    %129 = arith.mulf %128, %113 : vector<1x32xf32>
    %130 = vector.extract_strided_slice %125 {offsets = [0, 0], sizes = [1, 32], strides = [1, 1]} : vector<1x128xf32> to vector<1x32xf32>
    %131 = arith.mulf %130, %127 : vector<1x32xf32>
    %132 = arith.addf %129, %131 : vector<1x32xf32>
    %133 = vector.extract_strided_slice %125 {offsets = [0, 96], sizes = [1, 32], strides = [1, 1]} : vector<1x128xf32> to vector<1x32xf32>
    %134 = math.tanh %132 : vector<1x32xf32>
    %135 = arith.mulf %133, %134 : vector<1x32xf32>
    %136 = vector.extract_strided_slice %19 {offsets = [6, 0], sizes = [1, 128], strides = [1, 1]} : vector<8x128xf32> to vector<1x128xf32>
    %c0_40 = arith.constant 0 : index
    %c0_41 = arith.constant 0 : index
    %137 = vector.load %arg5[%c0_40, %c0_41] : memref<32x128xf32, #tpu.memory_space<vmem>>, vector<32x128xf32>
    %cst_42 = arith.constant dense<0.000000e+00> : vector<1x128xf32>
    %138 = tpu.matmul %135, %137, %cst_42 {dimension_numbers = #tpu.dot_dimension_numbers<[1], [0], [0], [1], [0, 0, 1, 1], [], []>} : vector<1x32xf32>, vector<32x128xf32>, vector<1x128xf32> -> vector<1x128xf32>
    %139 = arith.addf %136, %138 : vector<1x128xf32>
    %140 = arith.negf %139 : vector<1x128xf32>
    %141 = math.exp %140 : vector<1x128xf32>
    %cst_43 = arith.constant 1.000000e+00 : f32
    %142 = vector.broadcast %cst_43 : f32 to vector<1x128xf32>
    %143 = arith.addf %142, %141 : vector<1x128xf32>
    %144 = arith.divf %142, %143 : vector<1x128xf32>
    %145 = vector.extract_strided_slice %139 {offsets = [0, 64], sizes = [1, 32], strides = [1, 1]} : vector<1x128xf32> to vector<1x32xf32>
    %146 = math.tanh %145 : vector<1x32xf32>
    %147 = vector.extract_strided_slice %144 {offsets = [0, 32], sizes = [1, 32], strides = [1, 1]} : vector<1x128xf32> to vector<1x32xf32>
    %148 = arith.mulf %147, %132 : vector<1x32xf32>
    %149 = vector.extract_strided_slice %144 {offsets = [0, 0], sizes = [1, 32], strides = [1, 1]} : vector<1x128xf32> to vector<1x32xf32>
    %150 = arith.mulf %149, %146 : vector<1x32xf32>
    %151 = arith.addf %148, %150 : vector<1x32xf32>
    %152 = vector.extract_strided_slice %144 {offsets = [0, 96], sizes = [1, 32], strides = [1, 1]} : vector<1x128xf32> to vector<1x32xf32>
    %153 = math.tanh %151 : vector<1x32xf32>
    %154 = arith.mulf %152, %153 : vector<1x32xf32>
    %155 = vector.extract_strided_slice %19 {offsets = [7, 0], sizes = [1, 128], strides = [1, 1]} : vector<8x128xf32> to vector<1x128xf32>
    %c0_44 = arith.constant 0 : index
    %c0_45 = arith.constant 0 : index
    %156 = vector.load %arg5[%c0_44, %c0_45] : memref<32x128xf32, #tpu.memory_space<vmem>>, vector<32x128xf32>
    %cst_46 = arith.constant dense<0.000000e+00> : vector<1x128xf32>
    %157 = tpu.matmul %154, %156, %cst_46 {dimension_numbers = #tpu.dot_dimension_numbers<[1], [0], [0], [1], [0, 0, 1, 1], [], []>} : vector<1x32xf32>, vector<32x128xf32>, vector<1x128xf32> -> vector<1x128xf32>
    %158 = arith.addf %155, %157 : vector<1x128xf32>
    %159 = arith.negf %158 : vector<1x128xf32>
    %160 = math.exp %159 : vector<1x128xf32>
    %cst_47 = arith.constant 1.000000e+00 : f32
    %161 = vector.broadcast %cst_47 : f32 to vector<1x128xf32>
    %162 = arith.addf %161, %160 : vector<1x128xf32>
    %163 = arith.divf %161, %162 : vector<1x128xf32>
    %164 = vector.extract_strided_slice %158 {offsets = [0, 64], sizes = [1, 32], strides = [1, 1]} : vector<1x128xf32> to vector<1x32xf32>
    %165 = math.tanh %164 : vector<1x32xf32>
    %166 = vector.extract_strided_slice %163 {offsets = [0, 32], sizes = [1, 32], strides = [1, 1]} : vector<1x128xf32> to vector<1x32xf32>
    %167 = arith.mulf %166, %151 : vector<1x32xf32>
    %168 = vector.extract_strided_slice %163 {offsets = [0, 0], sizes = [1, 32], strides = [1, 1]} : vector<1x128xf32> to vector<1x32xf32>
    %169 = arith.mulf %168, %165 : vector<1x32xf32>
    %170 = arith.addf %167, %169 : vector<1x32xf32>
    %171 = vector.extract_strided_slice %163 {offsets = [0, 96], sizes = [1, 32], strides = [1, 1]} : vector<1x128xf32> to vector<1x32xf32>
    %172 = math.tanh %170 : vector<1x32xf32>
    %173 = arith.mulf %171, %172 : vector<1x32xf32>
    %174 = tpu.concatenate %40, %59, %78, %97, %116, %135, %154, %173 in 0 : vector<1x32xf32>, vector<1x32xf32>, vector<1x32xf32>, vector<1x32xf32>, vector<1x32xf32>, vector<1x32xf32>, vector<1x32xf32>, vector<1x32xf32> -> vector<8x32xf32>
    %175 = arith.truncf %174 : vector<8x32xf32> to vector<8x32xbf16>
    %c0_48 = arith.constant 0 : index
    %c0_49 = arith.constant 0 : index
    %176 = vector.load %arg7[%c0_48, %c0_49] : memref<32x128xbf16, #tpu.memory_space<vmem>>, vector<32x128xbf16>
    %cst_50 = arith.constant dense<0.000000e+00> : vector<8x128xf32>
    %177 = tpu.matmul %175, %176, %cst_50 {dimension_numbers = #tpu.dot_dimension_numbers<[1], [0], [0], [1], [0, 0, 1, 1], [], []>} : vector<8x32xbf16>, vector<32x128xbf16>, vector<8x128xf32> -> vector<8x128xf32>
    %c0_51 = arith.constant 0 : index
    %c0_52 = arith.constant 0 : index
    %178 = vector.load %arg9[%c0_51, %c0_52] : memref<1x128xf32, #tpu.memory_space<vmem>>, vector<1x128xf32>
    %179 = vector.broadcast %178 : vector<1x128xf32> to vector<8x128xf32>
    %180 = arith.addf %177, %179 : vector<8x128xf32>
    %cst_53 = arith.constant 0.000000e+00 : f32
    %181 = vector.broadcast %cst_53 : f32 to vector<1x32xf32>
    %cst_54 = arith.constant 0.000000e+00 : f32
    %182 = vector.broadcast %cst_54 : f32 to vector<1x32xf32>
    %183 = vector.extract_strided_slice %180 {offsets = [0, 0], sizes = [1, 128], strides = [1, 1]} : vector<8x128xf32> to vector<1x128xf32>
    %c0_55 = arith.constant 0 : index
    %c0_56 = arith.constant 0 : index
    %184 = vector.load %arg8[%c0_55, %c0_56] : memref<32x128xf32, #tpu.memory_space<vmem>>, vector<32x128xf32>
    %cst_57 = arith.constant dense<0.000000e+00> : vector<1x128xf32>
    %185 = tpu.matmul %181, %184, %cst_57 {dimension_numbers = #tpu.dot_dimension_numbers<[1], [0], [0], [1], [0, 0, 1, 1], [], []>} : vector<1x32xf32>, vector<32x128xf32>, vector<1x128xf32> -> vector<1x128xf32>
    %186 = arith.addf %183, %185 : vector<1x128xf32>
    %187 = arith.negf %186 : vector<1x128xf32>
    %188 = math.exp %187 : vector<1x128xf32>
    %cst_58 = arith.constant 1.000000e+00 : f32
    %189 = vector.broadcast %cst_58 : f32 to vector<1x128xf32>
    %190 = arith.addf %189, %188 : vector<1x128xf32>
    %191 = arith.divf %189, %190 : vector<1x128xf32>
    %192 = vector.extract_strided_slice %186 {offsets = [0, 64], sizes = [1, 32], strides = [1, 1]} : vector<1x128xf32> to vector<1x32xf32>
    %193 = math.tanh %192 : vector<1x32xf32>
    %194 = vector.extract_strided_slice %191 {offsets = [0, 32], sizes = [1, 32], strides = [1, 1]} : vector<1x128xf32> to vector<1x32xf32>
    %195 = arith.mulf %194, %182 : vector<1x32xf32>
    %196 = vector.extract_strided_slice %191 {offsets = [0, 0], sizes = [1, 32], strides = [1, 1]} : vector<1x128xf32> to vector<1x32xf32>
    %197 = arith.mulf %196, %193 : vector<1x32xf32>
    %198 = arith.addf %195, %197 : vector<1x32xf32>
    %199 = vector.extract_strided_slice %191 {offsets = [0, 96], sizes = [1, 32], strides = [1, 1]} : vector<1x128xf32> to vector<1x32xf32>
    %200 = math.tanh %198 : vector<1x32xf32>
    %201 = arith.mulf %199, %200 : vector<1x32xf32>
    %202 = vector.extract_strided_slice %180 {offsets = [1, 0], sizes = [1, 128], strides = [1, 1]} : vector<8x128xf32> to vector<1x128xf32>
    %c0_59 = arith.constant 0 : index
    %c0_60 = arith.constant 0 : index
    %203 = vector.load %arg8[%c0_59, %c0_60] : memref<32x128xf32, #tpu.memory_space<vmem>>, vector<32x128xf32>
    %cst_61 = arith.constant dense<0.000000e+00> : vector<1x128xf32>
    %204 = tpu.matmul %201, %203, %cst_61 {dimension_numbers = #tpu.dot_dimension_numbers<[1], [0], [0], [1], [0, 0, 1, 1], [], []>} : vector<1x32xf32>, vector<32x128xf32>, vector<1x128xf32> -> vector<1x128xf32>
    %205 = arith.addf %202, %204 : vector<1x128xf32>
    %206 = arith.negf %205 : vector<1x128xf32>
    %207 = math.exp %206 : vector<1x128xf32>
    %cst_62 = arith.constant 1.000000e+00 : f32
    %208 = vector.broadcast %cst_62 : f32 to vector<1x128xf32>
    %209 = arith.addf %208, %207 : vector<1x128xf32>
    %210 = arith.divf %208, %209 : vector<1x128xf32>
    %211 = vector.extract_strided_slice %205 {offsets = [0, 64], sizes = [1, 32], strides = [1, 1]} : vector<1x128xf32> to vector<1x32xf32>
    %212 = math.tanh %211 : vector<1x32xf32>
    %213 = vector.extract_strided_slice %210 {offsets = [0, 32], sizes = [1, 32], strides = [1, 1]} : vector<1x128xf32> to vector<1x32xf32>
    %214 = arith.mulf %213, %198 : vector<1x32xf32>
    %215 = vector.extract_strided_slice %210 {offsets = [0, 0], sizes = [1, 32], strides = [1, 1]} : vector<1x128xf32> to vector<1x32xf32>
    %216 = arith.mulf %215, %212 : vector<1x32xf32>
    %217 = arith.addf %214, %216 : vector<1x32xf32>
    %218 = vector.extract_strided_slice %210 {offsets = [0, 96], sizes = [1, 32], strides = [1, 1]} : vector<1x128xf32> to vector<1x32xf32>
    %219 = math.tanh %217 : vector<1x32xf32>
    %220 = arith.mulf %218, %219 : vector<1x32xf32>
    %221 = vector.extract_strided_slice %180 {offsets = [2, 0], sizes = [1, 128], strides = [1, 1]} : vector<8x128xf32> to vector<1x128xf32>
    %c0_63 = arith.constant 0 : index
    %c0_64 = arith.constant 0 : index
    %222 = vector.load %arg8[%c0_63, %c0_64] : memref<32x128xf32, #tpu.memory_space<vmem>>, vector<32x128xf32>
    %cst_65 = arith.constant dense<0.000000e+00> : vector<1x128xf32>
    %223 = tpu.matmul %220, %222, %cst_65 {dimension_numbers = #tpu.dot_dimension_numbers<[1], [0], [0], [1], [0, 0, 1, 1], [], []>} : vector<1x32xf32>, vector<32x128xf32>, vector<1x128xf32> -> vector<1x128xf32>
    %224 = arith.addf %221, %223 : vector<1x128xf32>
    %225 = arith.negf %224 : vector<1x128xf32>
    %226 = math.exp %225 : vector<1x128xf32>
    %cst_66 = arith.constant 1.000000e+00 : f32
    %227 = vector.broadcast %cst_66 : f32 to vector<1x128xf32>
    %228 = arith.addf %227, %226 : vector<1x128xf32>
    %229 = arith.divf %227, %228 : vector<1x128xf32>
    %230 = vector.extract_strided_slice %224 {offsets = [0, 64], sizes = [1, 32], strides = [1, 1]} : vector<1x128xf32> to vector<1x32xf32>
    %231 = math.tanh %230 : vector<1x32xf32>
    %232 = vector.extract_strided_slice %229 {offsets = [0, 32], sizes = [1, 32], strides = [1, 1]} : vector<1x128xf32> to vector<1x32xf32>
    %233 = arith.mulf %232, %217 : vector<1x32xf32>
    %234 = vector.extract_strided_slice %229 {offsets = [0, 0], sizes = [1, 32], strides = [1, 1]} : vector<1x128xf32> to vector<1x32xf32>
    %235 = arith.mulf %234, %231 : vector<1x32xf32>
    %236 = arith.addf %233, %235 : vector<1x32xf32>
    %237 = vector.extract_strided_slice %229 {offsets = [0, 96], sizes = [1, 32], strides = [1, 1]} : vector<1x128xf32> to vector<1x32xf32>
    %238 = math.tanh %236 : vector<1x32xf32>
    %239 = arith.mulf %237, %238 : vector<1x32xf32>
    %240 = vector.extract_strided_slice %180 {offsets = [3, 0], sizes = [1, 128], strides = [1, 1]} : vector<8x128xf32> to vector<1x128xf32>
    %c0_67 = arith.constant 0 : index
    %c0_68 = arith.constant 0 : index
    %241 = vector.load %arg8[%c0_67, %c0_68] : memref<32x128xf32, #tpu.memory_space<vmem>>, vector<32x128xf32>
    %cst_69 = arith.constant dense<0.000000e+00> : vector<1x128xf32>
    %242 = tpu.matmul %239, %241, %cst_69 {dimension_numbers = #tpu.dot_dimension_numbers<[1], [0], [0], [1], [0, 0, 1, 1], [], []>} : vector<1x32xf32>, vector<32x128xf32>, vector<1x128xf32> -> vector<1x128xf32>
    %243 = arith.addf %240, %242 : vector<1x128xf32>
    %244 = arith.negf %243 : vector<1x128xf32>
    %245 = math.exp %244 : vector<1x128xf32>
    %cst_70 = arith.constant 1.000000e+00 : f32
    %246 = vector.broadcast %cst_70 : f32 to vector<1x128xf32>
    %247 = arith.addf %246, %245 : vector<1x128xf32>
    %248 = arith.divf %246, %247 : vector<1x128xf32>
    %249 = vector.extract_strided_slice %243 {offsets = [0, 64], sizes = [1, 32], strides = [1, 1]} : vector<1x128xf32> to vector<1x32xf32>
    %250 = math.tanh %249 : vector<1x32xf32>
    %251 = vector.extract_strided_slice %248 {offsets = [0, 32], sizes = [1, 32], strides = [1, 1]} : vector<1x128xf32> to vector<1x32xf32>
    %252 = arith.mulf %251, %236 : vector<1x32xf32>
    %253 = vector.extract_strided_slice %248 {offsets = [0, 0], sizes = [1, 32], strides = [1, 1]} : vector<1x128xf32> to vector<1x32xf32>
    %254 = arith.mulf %253, %250 : vector<1x32xf32>
    %255 = arith.addf %252, %254 : vector<1x32xf32>
    %256 = vector.extract_strided_slice %248 {offsets = [0, 96], sizes = [1, 32], strides = [1, 1]} : vector<1x128xf32> to vector<1x32xf32>
    %257 = math.tanh %255 : vector<1x32xf32>
    %258 = arith.mulf %256, %257 : vector<1x32xf32>
    %259 = vector.extract_strided_slice %180 {offsets = [4, 0], sizes = [1, 128], strides = [1, 1]} : vector<8x128xf32> to vector<1x128xf32>
    %c0_71 = arith.constant 0 : index
    %c0_72 = arith.constant 0 : index
    %260 = vector.load %arg8[%c0_71, %c0_72] : memref<32x128xf32, #tpu.memory_space<vmem>>, vector<32x128xf32>
    %cst_73 = arith.constant dense<0.000000e+00> : vector<1x128xf32>
    %261 = tpu.matmul %258, %260, %cst_73 {dimension_numbers = #tpu.dot_dimension_numbers<[1], [0], [0], [1], [0, 0, 1, 1], [], []>} : vector<1x32xf32>, vector<32x128xf32>, vector<1x128xf32> -> vector<1x128xf32>
    %262 = arith.addf %259, %261 : vector<1x128xf32>
    %263 = arith.negf %262 : vector<1x128xf32>
    %264 = math.exp %263 : vector<1x128xf32>
    %cst_74 = arith.constant 1.000000e+00 : f32
    %265 = vector.broadcast %cst_74 : f32 to vector<1x128xf32>
    %266 = arith.addf %265, %264 : vector<1x128xf32>
    %267 = arith.divf %265, %266 : vector<1x128xf32>
    %268 = vector.extract_strided_slice %262 {offsets = [0, 64], sizes = [1, 32], strides = [1, 1]} : vector<1x128xf32> to vector<1x32xf32>
    %269 = math.tanh %268 : vector<1x32xf32>
    %270 = vector.extract_strided_slice %267 {offsets = [0, 32], sizes = [1, 32], strides = [1, 1]} : vector<1x128xf32> to vector<1x32xf32>
    %271 = arith.mulf %270, %255 : vector<1x32xf32>
    %272 = vector.extract_strided_slice %267 {offsets = [0, 0], sizes = [1, 32], strides = [1, 1]} : vector<1x128xf32> to vector<1x32xf32>
    %273 = arith.mulf %272, %269 : vector<1x32xf32>
    %274 = arith.addf %271, %273 : vector<1x32xf32>
    %275 = vector.extract_strided_slice %267 {offsets = [0, 96], sizes = [1, 32], strides = [1, 1]} : vector<1x128xf32> to vector<1x32xf32>
    %276 = math.tanh %274 : vector<1x32xf32>
    %277 = arith.mulf %275, %276 : vector<1x32xf32>
    %278 = vector.extract_strided_slice %180 {offsets = [5, 0], sizes = [1, 128], strides = [1, 1]} : vector<8x128xf32> to vector<1x128xf32>
    %c0_75 = arith.constant 0 : index
    %c0_76 = arith.constant 0 : index
    %279 = vector.load %arg8[%c0_75, %c0_76] : memref<32x128xf32, #tpu.memory_space<vmem>>, vector<32x128xf32>
    %cst_77 = arith.constant dense<0.000000e+00> : vector<1x128xf32>
    %280 = tpu.matmul %277, %279, %cst_77 {dimension_numbers = #tpu.dot_dimension_numbers<[1], [0], [0], [1], [0, 0, 1, 1], [], []>} : vector<1x32xf32>, vector<32x128xf32>, vector<1x128xf32> -> vector<1x128xf32>
    %281 = arith.addf %278, %280 : vector<1x128xf32>
    %282 = arith.negf %281 : vector<1x128xf32>
    %283 = math.exp %282 : vector<1x128xf32>
    %cst_78 = arith.constant 1.000000e+00 : f32
    %284 = vector.broadcast %cst_78 : f32 to vector<1x128xf32>
    %285 = arith.addf %284, %283 : vector<1x128xf32>
    %286 = arith.divf %284, %285 : vector<1x128xf32>
    %287 = vector.extract_strided_slice %281 {offsets = [0, 64], sizes = [1, 32], strides = [1, 1]} : vector<1x128xf32> to vector<1x32xf32>
    %288 = math.tanh %287 : vector<1x32xf32>
    %289 = vector.extract_strided_slice %286 {offsets = [0, 32], sizes = [1, 32], strides = [1, 1]} : vector<1x128xf32> to vector<1x32xf32>
    %290 = arith.mulf %289, %274 : vector<1x32xf32>
    %291 = vector.extract_strided_slice %286 {offsets = [0, 0], sizes = [1, 32], strides = [1, 1]} : vector<1x128xf32> to vector<1x32xf32>
    %292 = arith.mulf %291, %288 : vector<1x32xf32>
    %293 = arith.addf %290, %292 : vector<1x32xf32>
    %294 = vector.extract_strided_slice %286 {offsets = [0, 96], sizes = [1, 32], strides = [1, 1]} : vector<1x128xf32> to vector<1x32xf32>
    %295 = math.tanh %293 : vector<1x32xf32>
    %296 = arith.mulf %294, %295 : vector<1x32xf32>
    %297 = vector.extract_strided_slice %180 {offsets = [6, 0], sizes = [1, 128], strides = [1, 1]} : vector<8x128xf32> to vector<1x128xf32>
    %c0_79 = arith.constant 0 : index
    %c0_80 = arith.constant 0 : index
    %298 = vector.load %arg8[%c0_79, %c0_80] : memref<32x128xf32, #tpu.memory_space<vmem>>, vector<32x128xf32>
    %cst_81 = arith.constant dense<0.000000e+00> : vector<1x128xf32>
    %299 = tpu.matmul %296, %298, %cst_81 {dimension_numbers = #tpu.dot_dimension_numbers<[1], [0], [0], [1], [0, 0, 1, 1], [], []>} : vector<1x32xf32>, vector<32x128xf32>, vector<1x128xf32> -> vector<1x128xf32>
    %300 = arith.addf %297, %299 : vector<1x128xf32>
    %301 = arith.negf %300 : vector<1x128xf32>
    %302 = math.exp %301 : vector<1x128xf32>
    %cst_82 = arith.constant 1.000000e+00 : f32
    %303 = vector.broadcast %cst_82 : f32 to vector<1x128xf32>
    %304 = arith.addf %303, %302 : vector<1x128xf32>
    %305 = arith.divf %303, %304 : vector<1x128xf32>
    %306 = vector.extract_strided_slice %300 {offsets = [0, 64], sizes = [1, 32], strides = [1, 1]} : vector<1x128xf32> to vector<1x32xf32>
    %307 = math.tanh %306 : vector<1x32xf32>
    %308 = vector.extract_strided_slice %305 {offsets = [0, 32], sizes = [1, 32], strides = [1, 1]} : vector<1x128xf32> to vector<1x32xf32>
    %309 = arith.mulf %308, %293 : vector<1x32xf32>
    %310 = vector.extract_strided_slice %305 {offsets = [0, 0], sizes = [1, 32], strides = [1, 1]} : vector<1x128xf32> to vector<1x32xf32>
    %311 = arith.mulf %310, %307 : vector<1x32xf32>
    %312 = arith.addf %309, %311 : vector<1x32xf32>
    %313 = vector.extract_strided_slice %305 {offsets = [0, 96], sizes = [1, 32], strides = [1, 1]} : vector<1x128xf32> to vector<1x32xf32>
    %314 = math.tanh %312 : vector<1x32xf32>
    %315 = arith.mulf %313, %314 : vector<1x32xf32>
    %316 = vector.extract_strided_slice %180 {offsets = [7, 0], sizes = [1, 128], strides = [1, 1]} : vector<8x128xf32> to vector<1x128xf32>
    %c0_83 = arith.constant 0 : index
    %c0_84 = arith.constant 0 : index
    %317 = vector.load %arg8[%c0_83, %c0_84] : memref<32x128xf32, #tpu.memory_space<vmem>>, vector<32x128xf32>
    %cst_85 = arith.constant dense<0.000000e+00> : vector<1x128xf32>
    %318 = tpu.matmul %315, %317, %cst_85 {dimension_numbers = #tpu.dot_dimension_numbers<[1], [0], [0], [1], [0, 0, 1, 1], [], []>} : vector<1x32xf32>, vector<32x128xf32>, vector<1x128xf32> -> vector<1x128xf32>
    %319 = arith.addf %316, %318 : vector<1x128xf32>
    %320 = arith.negf %319 : vector<1x128xf32>
    %321 = math.exp %320 : vector<1x128xf32>
    %cst_86 = arith.constant 1.000000e+00 : f32
    %322 = vector.broadcast %cst_86 : f32 to vector<1x128xf32>
    %323 = arith.addf %322, %321 : vector<1x128xf32>
    %324 = arith.divf %322, %323 : vector<1x128xf32>
    %325 = vector.extract_strided_slice %319 {offsets = [0, 64], sizes = [1, 32], strides = [1, 1]} : vector<1x128xf32> to vector<1x32xf32>
    %326 = math.tanh %325 : vector<1x32xf32>
    %327 = vector.extract_strided_slice %324 {offsets = [0, 32], sizes = [1, 32], strides = [1, 1]} : vector<1x128xf32> to vector<1x32xf32>
    %328 = arith.mulf %327, %312 : vector<1x32xf32>
    %329 = vector.extract_strided_slice %324 {offsets = [0, 0], sizes = [1, 32], strides = [1, 1]} : vector<1x128xf32> to vector<1x32xf32>
    %330 = arith.mulf %329, %326 : vector<1x32xf32>
    %331 = arith.addf %328, %330 : vector<1x32xf32>
    %332 = vector.extract_strided_slice %324 {offsets = [0, 96], sizes = [1, 32], strides = [1, 1]} : vector<1x128xf32> to vector<1x32xf32>
    %333 = math.tanh %331 : vector<1x32xf32>
    %334 = arith.mulf %332, %333 : vector<1x32xf32>
    %c0_87 = arith.constant 0 : index
    %c0_88 = arith.constant 0 : index
    %335 = vector.load %arg10[%c0_87, %c0_88] : memref<32x128xf32, #tpu.memory_space<vmem>>, vector<32x128xf32>
    %cst_89 = arith.constant dense<0.000000e+00> : vector<1x128xf32>
    %336 = tpu.matmul %334, %335, %cst_89 {dimension_numbers = #tpu.dot_dimension_numbers<[1], [0], [0], [1], [0, 0, 1, 1], [], []>} : vector<1x32xf32>, vector<32x128xf32>, vector<1x128xf32> -> vector<1x128xf32>
    %c0_90 = arith.constant 0 : index
    %c0_91 = arith.constant 0 : index
    %337 = vector.load %arg11[%c0_90, %c0_91] : memref<1x128xf32, #tpu.memory_space<vmem>>, vector<1x128xf32>
    %338 = arith.addf %336, %337 : vector<1x128xf32>
    %cst_92 = arith.constant 0.000000e+00 : f32
    %339 = vector.broadcast %cst_92 : f32 to vector<1x128xf32>
    %340 = arith.maximumf %338, %339 : vector<1x128xf32>
    %c0_93 = arith.constant 0 : index
    %c0_94 = arith.constant 0 : index
    %341 = vector.load %arg12[%c0_93, %c0_94] : memref<128x64xf32, #tpu.memory_space<vmem>>, vector<128x64xf32>
    %cst_95 = arith.constant dense<0.000000e+00> : vector<1x64xf32>
    %342 = tpu.matmul %340, %341, %cst_95 {dimension_numbers = #tpu.dot_dimension_numbers<[1], [0], [0], [1], [0, 0, 1, 1], [], []>} : vector<1x128xf32>, vector<128x64xf32>, vector<1x64xf32> -> vector<1x64xf32>
    %c0_96 = arith.constant 0 : index
    %c0_97 = arith.constant 0 : index
    %343 = vector.load %arg13[%c0_96, %c0_97] : memref<1x64xf32, #tpu.memory_space<vmem>>, vector<1x64xf32>
    %344 = arith.addf %342, %343 : vector<1x64xf32>
    %cst_98 = arith.constant 0.000000e+00 : f32
    %345 = vector.broadcast %cst_98 : f32 to vector<1x64xf32>
    %346 = arith.maximumf %344, %345 : vector<1x64xf32>
    %c0_99 = arith.constant 0 : index
    %c0_100 = arith.constant 0 : index
    %347 = vector.load %arg14[%c0_99, %c0_100] : memref<64x8xf32, #tpu.memory_space<vmem>>, vector<64x8xf32>
    %cst_101 = arith.constant dense<0.000000e+00> : vector<1x8xf32>
    %348 = tpu.matmul %346, %347, %cst_101 {dimension_numbers = #tpu.dot_dimension_numbers<[1], [0], [0], [1], [0, 0, 1, 1], [], []>} : vector<1x64xf32>, vector<64x8xf32>, vector<1x8xf32> -> vector<1x8xf32>
    %c0_102 = arith.constant 0 : index
    %c0_103 = arith.constant 0 : index
    %349 = vector.load %arg15[%c0_102, %c0_103] : memref<1x8xf32, #tpu.memory_space<vmem>>, vector<1x8xf32>
    %350 = arith.addf %348, %349 : vector<1x8xf32>
    %c0_104 = arith.constant 0 : index
    %c0_105 = arith.constant 0 : index
    %c0_106 = arith.constant 0 : index
    %351 = vector.load %arg16[%c0_104, %c0_105, %c0_106] : memref<1x1x8xf32, #tpu.memory_space<vmem>>, vector<1x1x8xf32>
    %352 = vector.shape_cast %351 : vector<1x1x8xf32> to vector<1x8xf32>
    %353 = vector.shape_cast %350 : vector<1x8xf32> to vector<1x1x8xf32>
    tpu.vector_store %arg16[%c0_104, %c0_105, %c0_106], %353 {strides = array<i32>} : memref<1x1x8xf32, #tpu.memory_space<vmem>>, vector<1x1x8xf32>,
    return
  }
  func.func @transform_0(%arg0: i32) -> (i32, i32, i32) {
    %c0_i32 = arith.constant 0 : i32
    %c0_i32_0 = arith.constant 0 : i32
    %c0_i32_1 = arith.constant 0 : i32
    return %arg0, %c0_i32, %c0_i32_0 : i32, i32, i32
  }
  func.func @transform_1(%arg0: i32) -> (i32, i32) {
    %c0_i32 = arith.constant 0 : i32
    %c0_i32_0 = arith.constant 0 : i32
    %c0_i32_1 = arith.constant 0 : i32
    return %c0_i32, %c0_i32_0 : i32, i32
  }
  func.func @transform_2(%arg0: i32) -> (i32, i32) {
    %c0_i32 = arith.constant 0 : i32
    %c0_i32_0 = arith.constant 0 : i32
    %c0_i32_1 = arith.constant 0 : i32
    return %c0_i32, %c0_i32_0 : i32, i32
  }
  func.func @transform_3(%arg0: i32) -> (i32, i32) {
    %c0_i32 = arith.constant 0 : i32
    %c0_i32_0 = arith.constant 0 : i32
    %c0_i32_1 = arith.constant 0 : i32
    return %c0_i32, %c0_i32_0 : i32, i32
  }
  func.func @transform_4(%arg0: i32) -> (i32, i32) {
    %c0_i32 = arith.constant 0 : i32
    %c0_i32_0 = arith.constant 0 : i32
    %c0_i32_1 = arith.constant 0 : i32
    return %c0_i32, %c0_i32_0 : i32, i32
  }
  func.func @transform_5(%arg0: i32) -> (i32, i32) {
    %c0_i32 = arith.constant 0 : i32
    %c0_i32_0 = arith.constant 0 : i32
    %c0_i32_1 = arith.constant 0 : i32
    return %c0_i32, %c0_i32_0 : i32, i32
  }
  func.func @transform_6(%arg0: i32) -> (i32, i32) {
    %c0_i32 = arith.constant 0 : i32
    %c0_i32_0 = arith.constant 0 : i32
    %c0_i32_1 = arith.constant 0 : i32
    return %c0_i32, %c0_i32_0 : i32, i32
  }
  func.func @transform_7(%arg0: i32) -> (i32, i32) {
    %c0_i32 = arith.constant 0 : i32
    %c0_i32_0 = arith.constant 0 : i32
    %c0_i32_1 = arith.constant 0 : i32
    return %c0_i32, %c0_i32_0 : i32, i32
  }
  func.func @transform_8(%arg0: i32) -> (i32, i32) {
    %c0_i32 = arith.constant 0 : i32
    %c0_i32_0 = arith.constant 0 : i32
    %c0_i32_1 = arith.constant 0 : i32
    return %c0_i32, %c0_i32_0 : i32, i32
  }
  func.func @transform_9(%arg0: i32) -> (i32, i32) {
    %c0_i32 = arith.constant 0 : i32
    %c0_i32_0 = arith.constant 0 : i32
    %c0_i32_1 = arith.constant 0 : i32
    return %c0_i32, %c0_i32_0 : i32, i32
  }
  func.func @transform_10(%arg0: i32) -> (i32, i32) {
    %c0_i32 = arith.constant 0 : i32
    %c0_i32_0 = arith.constant 0 : i32
    %c0_i32_1 = arith.constant 0 : i32
    return %c0_i32, %c0_i32_0 : i32, i32
  }
  func.func @transform_11(%arg0: i32) -> (i32, i32) {
    %c0_i32 = arith.constant 0 : i32
    %c0_i32_0 = arith.constant 0 : i32
    %c0_i32_1 = arith.constant 0 : i32
    return %c0_i32, %c0_i32_0 : i32, i32
  }
  func.func @transform_12(%arg0: i32) -> (i32, i32) {
    %c0_i32 = arith.constant 0 : i32
    %c0_i32_0 = arith.constant 0 : i32
    %c0_i32_1 = arith.constant 0 : i32
    return %c0_i32, %c0_i32_0 : i32, i32
  }
  func.func @transform_13(%arg0: i32) -> (i32, i32) {
    %c0_i32 = arith.constant 0 : i32
    %c0_i32_0 = arith.constant 0 : i32
    %c0_i32_1 = arith.constant 0 : i32
    return %c0_i32, %c0_i32_0 : i32, i32
  }
  func.func @transform_14(%arg0: i32) -> (i32, i32) {
    %c0_i32 = arith.constant 0 : i32
    %c0_i32_0 = arith.constant 0 : i32
    %c0_i32_1 = arith.constant 0 : i32
    return %c0_i32, %c0_i32_0 : i32, i32
  }
  func.func @transform_15(%arg0: i32) -> (i32, i32, i32) {
    %c0_i32 = arith.constant 0 : i32
    %c0_i32_0 = arith.constant 0 : i32
    %c0_i32_1 = arith.constant 0 : i32
    return %arg0, %c0_i32, %c0_i32_0 : i32, i32, i32
  }
}

</mosaic_0001>

<bundles_post_ra>
// kernel: group_activity_temporal_classifier.1
= control target key start
LH: loop header
LB: loop body
LE: loop exit
PB: predicated region body
PF: predicated region fallthrough
CT: control target
= control target key end

     0   :  { %s5702_s0 = inlined_call_operand.vmem [shape: bf16[2,4,2048], index: 0, kind: input, shape index: {}]   ;;  %s5703_s1 = inlined_call_operand.vmem [shape: bf16[32,4], index: 1, kind: input, shape index: {}]   ;;  %s5704_s2 = inlined_call_operand.vmem [shape: f32[32,1], index: 2, kind: input, shape index: {}]   ;;  %s5705_s3 = inlined_call_operand.vmem [shape: bf16[32,128], index: 3, kind: input, shape index: {}]   ;;  %s5706_s4 = inlined_call_operand.vmem [shape: f32[32,128], index: 4, kind: input, shape index: {}]   ;;  %s5707_s5 = inlined_call_operand.vmem [shape: f32[1,128], index: 5, kind: input, shape index: {}]   ;;  %s5708_s6 = inlined_call_operand.vmem [shape: bf16[32,128], index: 6, kind: input, shape index: {}]   ;;  %s5709_s7 = inlined_call_operand.vmem [shape: f32[32,128], index: 7, kind: input, shape index: {}]   ;;  %s5710_s8 = inlined_call_operand.vmem [shape: f32[1,128], index: 8, kind: input, shape index: {}]   ;;  %s5711_s9 = inlined_call_operand.vmem [shape: f32[32,128], index: 9, kind: input, shape index: {}]   ;;  %s5712_s10 = inlined_call_operand.vmem [shape: f32[1,128], index: 10, kind: input, shape index: {}]   ;;  %s5713_s11 = inlined_call_operand.vmem [shape: f32[128,64], index: 11, kind: input, shape index: {}]   ;;  %s5714_s12 = inlined_call_operand.vmem [shape: f32[1,64], index: 12, kind: input, shape index: {}]   ;;  %s5715_s13 = inlined_call_operand.vmem [shape: f32[64,8], index: 13, kind: input, shape index: {}]   ;;  %s5716_s14 = inlined_call_operand.vmem [shape: f32[1,8], index: 14, kind: input, shape index: {}]   ;;  %s5717_s15 = inlined_call_operand.hbm [shape: f32[2,1,8], index: 15, kind: output, shape index: {}]  }
   0x1   :  { %5778 = sst [smem:[#allocation34_spill]] %s5702_s0 }
   0x2   :  { %5779 = sst [smem:[#allocation35_spill]] %s5703_s1 }
   0x3   :  { %5780 = sst [smem:[#allocation36_spill]] %s5704_s2 }
   0x4   :  { %20 = vsyncpa [#allocation3], 0 }
   0x5   :  { %22 = vsyncpa [#allocation3 + $0x1], 0  ;;  %s3932_s18 = smov 0   ;;  %s3934_s19 = smov 0  }
   0x6   :  { %s3936_s20 = smov 0   ;;  %s3938_s21 = smov 0  }
   0x7 LB: > { %5781 = sst [smem:[#allocation5_spill]] %s3840_s20  ;;  %s3953_s22 = sadd.s32 4294967295, %s3844_s21   ;;  %s3844_s21 = sphi %s3938_s21, %s5927_s21   ;;  %s3840_s20 = sphi %s3936_s20, %s5929_s20   ;;  %s3836_s19 = sphi %s3934_s19, %s5931_s19   ;;  %s3832_s18 = sphi %s3932_s18, %s5930_s18  }
   0x8   : > { %s3499_s23 = sadd.s32 4294967294, %s3844_s21   ;;  %s3957_s24 = sadd.s32 1, %s3844_s21  }
   0x9   : > { %5782 = sst [smem:[#allocation6_spill]] %s3957_s24  ;;  %s355_s25 = sadd.s32 1, %s3840_s20 }
   0xa   : > { %s352_s26 = ssub.s32 %s3844_s21, %s3957_s24  ;;  %p365_p0 = scmp.ne.s32.totalorder %s3840_s20, %s3836_s19 }
   0xb   : > { %p353_p1 = scmp.eq.s32.totalorder %s352_s26, 0  ;;  %p366_p2 = scmp.eq.s32.totalorder %s3953_s22, 1 }
   0xc   : > { %p371_p3 = scmp.ne.s32.totalorder %s3836_s19, %s3832_s18  ;;  %p372_p4 = scmp.eq.s32.totalorder %s3499_s23, 1 }
   0xd   : > { %s3968_s27 = scalar_select %p353_p1, %s3840_s20, %s355_s25  }
   0xe   : > { %p3970_p5 = por %p366_p2, %p365_p0  ;;  %p3974_p6 = por %p372_p4, %p371_p3 }
   0xf   : > { %5783 = sst [smem:[#allocation7_spill]] %s3968_s27  ;;  %p3502_p7 = scmp.ge.s32.totalorder %s3844_s21, 1 }
  0x10   : > { %p440_p8 = scmp.lt.s32.totalorder %s3844_s21, 3 }
  0x12   : > { %p441_p9 = pnand %p3502_p7, %p440_p8 }
  0x14   : > { %444 = sbr.rel (%p441_p9) target bundleno = 10276 (0x2824), region = 80 }
  0x19   : > { %p487_p10 = scmp.lt.s32.totalorder %s3953_s22, 1  ;;  %v3846_v0 = vmov 0   ;;  %s5786_s2 = sld [smem:[#allocation36_spill]]  ;;  %vm567_vm0 = vcmask 1041408   ;;  %vm560_vm1 = vcmask 31744   ;;  %vm969_vm2 = vcmask 1047556  }
  0x1a   : > { %3651 = vset.pattern.permute.xlu1 %v3846_v0  ;;  %3650 = vset.pattern.permute.xlu0 %v3846_v0  ;;  %s5787_s0 = sld [smem:[#allocation34_spill]]  ;;  %vm2059_vm3 = vcmask 1041409   ;;  %vm2061_vm4 = vcmask 1042434   ;;  %vm2063_vm5 = vcmask 1043459   ;;  %vm2065_vm6 = vcmask 1044484   ;;  %s5774_s23 = smov 32  }
  0x1b   : > { %s488_s30 = scalar_select %p487_p10, %s3953_s22, 1  ;;  %vm2067_vm7 = vcmask 1045509   ;;  %vm2069_vm8 = vcmask 1046534   ;;  %vm2071_vm9 = vcmask 1047559   ;;  %vm2151_vm10 = vcmask 261120  }
  0x1c   : > { %s5788_s1 = sld [smem:[#allocation35_spill]]  ;;  %s5926_s26 = smov 64  }
  0x1d   : > { %s3597_s16 = sshll.u32 %s488_s30, 5  ;;  %s485_s17 = sand.u32 1, %s3836_s19  }
  0x1e   : > { %s3802_s27 = scalar_lea.hbm %s5717_s15, 2 }
  0x1f   : > { %v503_v1 = vld [vmem:[%s5786_s2 + $0x10] sm:$0xff]  ;;  %v501_v2 = vld [vmem:[%s5786_s2] sm:$0xff]  ;;  %v504_v5 = vld [vmem:[%s5786_s2 + $0x18] sm:$0xff] }
  0x20   : > { %s3991_s24 = scalar_lea.vmem %s5787_s0, %s3597_s16  ;;  %517 = vperm.xlu1 %3651, %v503_v1   ;;  %507 = vperm.xlu0 %3650, %v501_v2   ;;  %v502_v25 = vld [vmem:[%s5786_s2 + $0x8] sm:$0xff]  ;;  %s5776_s16 = smov 64  }
  0x21   : > { %v493_v3 = vld [vmem:[%s3991_s24] sm:$0xff]  ;;  %v494_v4 = vld [vmem:[%s3991_s24 + $0x8] sm:$0xff]  ;;  %v495_v6 = vld [vmem:[%s3991_s24 + $0x10] sm:$0xff]  ;;  %s3440_s0 = scalar_lea.hbm %s5717_s15, %s3953_s22 }
  0x22   : > { %536 = vst [vmem:[#allocation1] ss:$4 sm:$0xff] %v493_v3  ;;  %v4004_v12 = vld [vmem:[%s5788_s1] sm:$0xff]  ;;  %v4010_v14 = vld [vmem:[%s5788_s1 + $0x8] sm:$0xff]  ;;  %v496_v20 = vld [vmem:[%s3991_s24 + $0x18] sm:$0xff]  ;;  %s3444_s1 = sshll.u32 %s3440_s0, 4  ;;  %s3445_s1 = int_to_ptr.hbm [resolvable:$true] %s3444_s1 }
  0x23   : > { %539 = vst [vmem:[#allocation1 + $0x20] ss:$4 sm:$0xff] %v494_v4  ;;  %s3796_s30 = sshra.s32 %s3445_s1, 4  ;;  %s3797_s30 = int_to_ptr.hbm [resolvable:$true] %s3796_s30 }
  0x24   : > { %s3798_s2 = scalar_lea.hbm %s3797_s30, 1  ;;  %p3803_p0 = scmp.lt.s32.totalorder %s3797_s30, %s5717_s15 }
  0x25   : > { %p3799_p11 = scmp.ne.s32.totalorder %s3797_s30, %s3798_s2  ;;  %p3804_p1 = scmp.lt.s32.totalorder %s3802_s27, %s3798_s2 }
  0x27   : > { %p3800_p12 = pnand %p3799_p11, %p3970_p5  ;;  %p3805_p2 = por %p3804_p1, %p3803_p0 }
  0x28   : > { %522 = vperm.xlu1 %3651, %v504_v5   ;;  %512 = vperm.xlu0 %3650, %v502_v25  }
  0x29   : > { %v540_v7 = vld.sshfl [vmem:[#allocation1] sm:$0xff pattern:$0x73625140]  ;;  %v541_v8 = vld.sshfl [vmem:[#allocation1 + $0x8] sm:$0xff pattern:$0x73625140]  ;;  %p3801_p13 = pneg %p3800_p12 }
  0x2a   : > { %v568_v9 = vsel %vm567_vm0, %v540_v7, 0  ;;  %v570_v10 = vsel %vm567_vm0, %v541_v8, 0  ;;  %v542_v11 = vld.sshfl [vmem:[#allocation1 + $0x10] sm:$0xff pattern:$0x73625140] }
  0x2b   : > { %607 = vmatpush.bf16.msra.mxu0 %v568_v9  ;;  %626 = vmatpush.bf16.msra.mxu1 %v570_v10  ;;  %v572_v13 = vsel %vm567_vm0, %v542_v11, 0  ;;  %v543_v15 = vld.sshfl [vmem:[#allocation1 + $0x18] sm:$0xff pattern:$0x73625140]  ;;  %p3806_p3 = pnand %p3805_p2, %p3801_p13 }
  0x2c   : > { %3604 = vmatpush.bf16.msra.mxu3 %v570_v10  ;;  %645 = vmatpush.bf16.msra.mxu2 %v572_v13  ;;  %549 = vst [vmem:[#allocation1] ss:$4 sm:$0xff] %v495_v6  ;;  %v574_v16 = vsel %vm567_vm0, %v543_v15, 0  ;;  %v545_v17 = vld.sshfl [vmem:[#allocation1 + $0x28] sm:$0xff pattern:$0x73625140] }
  0x2d   : > { %v578_v18 = vsel %vm567_vm0, %v545_v17, 0  ;;  %v546_v19 = vld.sshfl [vmem:[#allocation1 + $0x30] sm:$0xff pattern:$0x73625140] }
  0x2e   : > { %3513 = vmatmul.msk.bf16.vlgmr.msra.gmra.mxu0 %vm560_vm1, %v4004_v12  ;;  %3515 = vmatmul.msk.bf16.vlgmr.msra.gmra.mxu1 %vm560_vm1, %v4004_v12  ;;  %v580_v21 = vsel %vm567_vm0, %v546_v19, 0  ;;  %v547_v22 = vld.sshfl [vmem:[#allocation1 + $0x38] sm:$0xff pattern:$0x73625140] }
  0x2f   : > { %3516 = vmatmul.msk.bf16.vlgmr.msra.gmra.mxu3 %vm560_vm1, %v4010_v14  ;;  %3517 = vmatmul.msk.bf16.vlgmr.msra.gmra.mxu2 %vm560_vm1, %v4004_v12  ;;  %v582_v23 = vsel %vm567_vm0, %v547_v22, 0  ;;  %v544_v24 = vld.sshfl [vmem:[#allocation1 + $0x20] sm:$0xff pattern:$0x73625140] }
  0x30   : > { %664 = vmatpush.bf16.msrb.mxu3 %v574_v16  ;;  %702 = vmatpush.bf16.msrb.mxu1 %v578_v18  ;;  %551 = vst [vmem:[#allocation1 + $0x20] ss:$4 sm:$0xff] %v496_v20  ;;  %v576_v26 = vsel %vm567_vm0, %v544_v24, 0 }
  0x31   : > { %721 = vmatpush.bf16.msrb.mxu2 %v580_v21  ;;  %683 = vmatpush.bf16.msrb.mxu0 %v576_v26  ;;  %v3848_v21 = vmov 1934713408  }
  0x32   : > { %v1022_v22 = vunpack.c.l.s4 %v3848_v21 }
  0x33   : > { %v553_v27 = vld.sshfl [vmem:[#allocation1 + $0x8] sm:$0xff pattern:$0x73625140]  ;;  %v554_v29 = vld.sshfl [vmem:[#allocation1 + $0x10] sm:$0xff pattern:$0x73625140] }
  0x34   : > { %740 = vmatpush.bf16.msra.mxu3 %v582_v23  ;;  %v586_v28 = vsel %vm567_vm0, %v553_v27, 0  ;;  %v555_v30 = vld.sshfl [vmem:[#allocation1 + $0x18] sm:$0xff pattern:$0x73625140]  ;;  %v588_v31 = vsel %vm567_vm0, %v554_v29, 0 }
  0x35   : > { %778 = vmatpush.bf16.msra.mxu1 %v586_v28  ;;  %v590_v32 = vsel %vm567_vm0, %v555_v30, 0  ;;  %v552_v33 = vld.sshfl [vmem:[#allocation1] sm:$0xff pattern:$0x73625140]  ;;  %797 = vmatpush.bf16.msra.mxu2 %v588_v31 }
  0x36   : > { %v584_v34 = vsel %vm567_vm0, %v552_v33, 0 }
  0x37   : > { %759 = vmatpush.bf16.msra.mxu0 %v584_v34  ;;  %v557_v35 = vld.sshfl [vmem:[#allocation1 + $0x28] sm:$0xff pattern:$0x73625140]  ;;  %v558_v37 = vld.sshfl [vmem:[#allocation1 + $0x30] sm:$0xff pattern:$0x73625140] }
  0x38   : > { %v594_v36 = vsel %vm567_vm0, %v557_v35, 0  ;;  %v559_v38 = vld.sshfl [vmem:[#allocation1 + $0x38] sm:$0xff pattern:$0x73625140]  ;;  %v596_v39 = vsel %vm567_vm0, %v558_v37, 0 }
  0x39   : > { %v598_v40 = vsel %vm567_vm0, %v559_v38, 0  ;;  %v556_v41 = vld.sshfl [vmem:[#allocation1 + $0x20] sm:$0xff pattern:$0x73625140] }
  0x3a   : > { %v592_v42 = vsel %vm567_vm0, %v556_v41, 0 }
  0x3e   : > { %3514 = vmatmul.msk.bf16.gmra.mxu0 %vm560_vm1, %v4010_v14  ;;  %3523 = vmatmul.msk.bf16.vlgmr.msrb.gmra.mxu1 %vm560_vm1, %v4004_v12 }
  0x3f   : > { %3518 = vmatmul.msk.bf16.gmra.mxu2 %vm560_vm1, %v4010_v14  ;;  %3519 = vmatmul.msk.bf16.vlgmr.msrb.gmra.mxu3 %vm560_vm1, %v4004_v12 }
  0x40   : > { %816 = vmatpush.bf16.msrb.mxu3 %v590_v32  ;;  %854 = vmatpush.bf16.msrb.mxu1 %v594_v36 }
  0x4e   : > { %3521 = vmatmul.msk.bf16.vlgmr.msrb.gmra.mxu0 %vm560_vm1, %v4004_v12  ;;  %3524 = vmatmul.msk.bf16.gmra.mxu1 %vm560_vm1, %v4010_v14 }
  0x4f   : > { %3520 = vmatmul.msk.bf16.gmra.mxu3 %vm560_vm1, %v4010_v14  ;;  %3525 = vmatmul.msk.bf16.vlgmr.msrb.gmra.mxu2 %vm560_vm1, %v4004_v12 }
  0x50   : > { %873 = vmatpush.bf16.msrb.mxu2 %v596_v39  ;;  %835 = vmatpush.bf16.msrb.mxu0 %v592_v42 }
  0x5e   : > { %3522 = vmatmul.msk.bf16.gmra.mxu0 %vm560_vm1, %v4010_v14  ;;  %3531 = vmatmul.msk.bf16.vlgmr.msra.gmra.mxu1 %vm560_vm1, %v4004_v12 }
  0x5f   : > { %3526 = vmatmul.msk.bf16.gmra.mxu2 %vm560_vm1, %v4010_v14  ;;  %3527 = vmatmul.msk.bf16.vlgmr.msra.gmra.mxu3 %vm560_vm1, %v4004_v12 }
  0x60   : > { %892 = vmatpush.bf16.msra.mxu3 %v598_v40 }
  0x6e   : > { %3529 = vmatmul.msk.bf16.vlgmr.msra.gmra.mxu0 %vm560_vm1, %v4004_v12  ;;  %3532 = vmatmul.msk.bf16.gmra.mxu1 %vm560_vm1, %v4010_v14 }
  0x6f   : > { %3528 = vmatmul.msk.bf16.gmra.mxu3 %vm560_vm1, %v4010_v14  ;;  %3533 = vmatmul.msk.bf16.vlgmr.msra.gmra.mxu2 %vm560_vm1, %v4004_v12 }
  0x7e   : > { %3530 = vmatmul.msk.bf16.gmra.mxu0 %vm560_vm1, %v4010_v14  ;;  %3539 = vmatmul.msk.bf16.vlgmr.msrb.gmra.mxu1 %vm560_vm1, %v4004_v12 }
  0x7f   : > { %3534 = vmatmul.msk.bf16.gmra.mxu2 %vm560_vm1, %v4010_v14  ;;  %3535 = vmatmul.msk.bf16.vlgmr.msrb.gmra.mxu3 %vm560_vm1, %v4004_v12 }
  0x8e   : > { %3537 = vmatmul.msk.bf16.vlgmr.msrb.gmra.mxu0 %vm560_vm1, %v4004_v12  ;;  %3540 = vmatmul.msk.bf16.gmra.mxu1 %vm560_vm1, %v4010_v14 }
  0x8f   : > { %3536 = vmatmul.msk.bf16.gmra.mxu3 %vm560_vm1, %v4010_v14  ;;  %3541 = vmatmul.msk.bf16.vlgmr.msrb.gmra.mxu2 %vm560_vm1, %v4004_v12 }
  0x92   : > { %v4093_v45 = vpop.permute.xlu0 %507  ;;  %v4095_v50 = vpop.permute.xlu1 %517 }
  0x9a   : > { %v4097_v51 = vpop.permute.xlu0 %512  ;;  %v4102_v62 = vpop.permute.xlu1 %522 }
  0x9e   : > { %3538 = vmatmul.msk.bf16.gmra.mxu0 %vm560_vm1, %v4010_v14 }
  0x9f   : > { %3542 = vmatmul.msk.bf16.gmra.mxu2 %vm560_vm1, %v4010_v14  ;;  %3543 = vmatmul.msk.bf16.vlgmr.msra.gmra.mxu3 %vm560_vm1, %v4004_v12  ;;  %v3847_v12 = vmov 1983009808  }
  0xa0   : > { %v974_v13 = vunpack.c.l.s4 %v3847_v12 }
  0xa2   : > { %v4134_v28 = vunpack.c.0.s8 %v974_v13 }
  0xab   : > { %v609_v43 = vpop.f32.mrf.mxu0  ;;  %v628_v44 = vpop.f32.mrf.mxu1 }
  0xac   : > { %v629_v55 = vadd.f32 %v628_v44, %v4093_v45  ;;  %v4105_v63 = vadd.f32 %v609_v43, %v4093_v45 }
  0xae   : > { %v905_v59 = vmax.f32 %v629_v55, 0.0 }
  0xaf   : > { %3544 = vmatmul.msk.bf16.gmra.mxu3 %vm560_vm1, %v4010_v14  ;;  %v904_v14 = vmax.f32 %v4105_v63, 0.0 }
  0xb0   : > { %v1419_v4 = vrot.slane %v905_v59, 4 }
  0xb1   : > { %v971_v29 = vrot.slane %v904_v14, 4 }
  0xb2   : > { %v633_v46 = vpop.f32.mrf.mxu3  ;;  %v647_v47 = vpop.f32.mrf.mxu2 }
  0xb3   : > { %v611_v48 = vpop.f32.mrf.mxu0  ;;  %v630_v49 = vpop.f32.mrf.mxu1  ;;  %v4108_v0 = vadd.f32 %v633_v46, %v4095_v50  ;;  %v4111_v3 = vadd.f32 %v647_v47, %v4093_v45  ;;  %v4157_v47 = vunpack.c.0.s8 %v1022_v22 }
  0xb4   : > { %v631_v58 = vadd.f32 %v630_v49, %v4097_v51  ;;  %v4114_v7 = vadd.f32 %v611_v48, %v4097_v51 }
  0xb5   : > { %v937_v16 = vmax.f32 %v4108_v0, 0.0  ;;  %v906_v18 = vmax.f32 %v4111_v3, 0.0 }
  0xb6   : > { %v921_v61 = vmax.f32 %v631_v58, 0.0  ;;  %v920_v20 = vmax.f32 %v4114_v7, 0.0 }
  0xb7   : > { %v1643_v31 = vrot.slane %v937_v16, 4  ;;  %v983_v36 = vrot.slane %v906_v18, 4 }
  0xb8   : > { %v1531_v10 = vrot.slane %v921_v61, 4  ;;  %v1083_v46 = vrot.slane %v920_v20, 4 }
  0xba   : > { %v635_v52 = vpop.f32.mrf.mxu3  ;;  %v649_v53 = vpop.f32.mrf.mxu2 }
  0xbb   : > { %v614_v54 = vpop.f32.mrf.mxu0  ;;  %v704_v56 = vpop.f32.mrf.mxu1  ;;  %v4118_v11 = vadd.f32 %v635_v52, %v4102_v62  ;;  %v4122_v15 = vadd.f32 %v649_v53, %v4097_v51 }
  0xbc   : > { %v705_v57 = vadd.f32 %v704_v56, %v4093_v45  ;;  %v4127_v19 = vadd.f32 %v614_v54, %v4095_v50 }
  0xbd   : > { %v953_v27 = vmax.f32 %v4118_v11, 0.0  ;;  %v922_v30 = vmax.f32 %v4122_v15, 0.0 }
  0xbe   : > { %v909_v60 = vmax.f32 %v705_v57, 0.0  ;;  %v936_v37 = vmax.f32 %v4127_v19, 0.0 }
  0xbf   : > { %v1755_v48 = vrot.slane %v953_v27, 4  ;;  %v4169_v53 = vrot.slane %v922_v30, 4 }
  0xc0   : > { %v1417_v8 = vrot.slane %v909_v60, 4  ;;  %v1420_v24 = vsel %vm969_vm2, %v909_v60, %v1419_v4  ;;  %v4177_v58 = vrot.slane %v936_v37, 4 }
  0xc1   : > { %v4148_v39 = vperm.slane %v1420_v24, %v4134_v28 }
  0xc2   : > { %v652_v1 = vpop.f32.mrf.mxu2  ;;  %v666_v2 = vpop.f32.mrf.mxu3  ;;  %v1418_v23 = vsel %vm969_vm2, %v1417_v8, %v905_v59 }
  0xc3   : > { %v616_v5 = vpop.f32.mrf.mxu0  ;;  %v706_v6 = vpop.f32.mrf.mxu1  ;;  %v4138_v32 = vadd.f32 %v652_v1, %v4095_v50  ;;  %v4145_v38 = vperm.slane %v1418_v23, %v4134_v28  ;;  %v4151_v40 = vadd.f32 %v666_v2, %v4093_v45  ;;  %v1479_v60 = vrot.slane %v4148_v39, 4 }
  0xc4   : > { %v707_v9 = vadd.f32 %v706_v6, %v4097_v51  ;;  %v4162_v49 = vadd.f32 %v616_v5, %v4102_v62 }
  0xc5   : > { %v938_v54 = vmax.f32 %v4138_v32, 0.0  ;;  %v1467_v59 = vrot.slane %v4145_v38, 4 }
  0xc6   : > { %v925_v17 = vmax.f32 %v707_v9, 0.0  ;;  %v952_v4 = vmax.f32 %v4162_v49, 0.0 }
  0xc7   : > { %v4194_v9 = vrot.slane %v938_v54, 4 }
  0xc8   : > { %v1529_v25 = vrot.slane %v925_v17, 4  ;;  %v1532_v26 = vsel %vm969_vm2, %v925_v17, %v1531_v10 }
  0xc9   : > { %v4189_v6 = vperm.slane %v1532_v26, %v4134_v28 }
  0xca   : > { %v1530_v33 = vsel %vm969_vm2, %v1529_v25, %v921_v61  ;;  %v654_v34 = vpop.f32.mrf.mxu2  ;;  %v668_v35 = vpop.f32.mrf.mxu3  ;;  %v907_v61 = vmax.f32 %v4151_v40, 0.0 }
  0xcb   : > { %v685_v41 = vpop.f32.mrf.mxu0  ;;  %v709_v42 = vpop.f32.mrf.mxu1  ;;  %v4165_v52 = vadd.f32 %v654_v34, %v4102_v62  ;;  %v4173_v55 = vadd.f32 %v668_v35, %v4097_v51  ;;  %v4186_v5 = vperm.slane %v1530_v33, %v4134_v28  ;;  %v4218_v34 = vrot.slane %v952_v4, 4 }
  0xcc   : > { %v686_v43 = vadd.f32 %v685_v41, %v4093_v45  ;;  %v710_v44 = vadd.f32 %v709_v42, %v4095_v50  ;;  %v4201_v22 = vrot.slane %v907_v61, 4 }
  0xcd   : > { %5789 = vst [vmem:[#allocation8_spill] sm:$0xff] %v4186_v5  ;;  %v954_v8 = vmax.f32 %v4165_v52, 0.0  ;;  %v923_v10 = vmax.f32 %v4173_v55, 0.0 }
  0xce   : > { %v908_v56 = vmax.f32 %v686_v43, 0.0  ;;  %v941_v57 = vmax.f32 %v710_v44, 0.0 }
  0xcf   : > { %v4224_v42 = vrot.slane %v954_v8, 4  ;;  %v4228_v43 = vrot.slane %v923_v10, 4 }
  0xd0   : > { %v968_v63 = vrot.slane %v908_v56, 4  ;;  %v972_v0 = vsel %vm969_vm2, %v908_v56, %v971_v29  ;;  %v1641_v1 = vrot.slane %v941_v57, 4  ;;  %v1644_v2 = vsel %vm969_vm2, %v941_v57, %v1643_v31 }
  0xd1   : > { %v980_v24 = vperm.slane %v972_v0, %v4134_v28  ;;  %v4208_v25 = vperm.slane %v1644_v2, %v4134_v28 }
  0xd2   : > { %v970_v12 = vsel %vm969_vm2, %v968_v63, %v904_v14  ;;  %v1642_v13 = vsel %vm969_vm2, %v1641_v1, %v937_v16  ;;  %v671_v17 = vpop.f32.mrf.mxu3  ;;  %v723_v21 = vpop.f32.mrf.mxu2 }
  0xd3   : > { %v4204_v23 = vperm.slane %v970_v12, %v4134_v28  ;;  %v687_v26 = vpop.f32.mrf.mxu0  ;;  %v711_v29 = vpop.f32.mrf.mxu1  ;;  %v4211_v14 = vadd.f32 %v671_v17, %v4095_v50  ;;  %v724_v16 = vadd.f32 %v723_v21, %v4093_v45  ;;  %v1031_v0 = vrot.slane %v980_v24, 4 }
  0xd4   : > { %v688_v31 = vadd.f32 %v687_v26, %v4097_v51  ;;  %v712_v33 = vadd.f32 %v711_v29, %v4102_v62  ;;  %v4232_v1 = vperm.slane %v1642_v13, %v4134_v28 }
  0xd5   : > { %v910_v44 = vmax.f32 %v724_v16, 0.0  ;;  %v1019_v63 = vrot.slane %v4204_v23, 4  ;;  %v5721_v12 = vmax.f32 %v4211_v14, 0.0 }
  0xd6   : > { %v924_v56 = vmax.f32 %v688_v31, 0.0  ;;  %v957_v57 = vmax.f32 %v712_v33, 0.0 }
  0xd7   : > { %v981_v17 = vrot.slane %v910_v44, 4  ;;  %v984_v21 = vsel %vm969_vm2, %v910_v44, %v983_v36 }
  0xd8   : > { %v1081_v26 = vrot.slane %v924_v56, 4  ;;  %v992_v29 = vperm.slane %v984_v21, %v4134_v28  ;;  %v1084_v16 = vsel %vm969_vm2, %v924_v56, %v1083_v46  ;;  %v1753_v31 = vrot.slane %v957_v57, 4 }
  0xd9   : > { %v1756_v33 = vsel %vm969_vm2, %v957_v57, %v1755_v48  ;;  %v982_v13 = vsel %vm969_vm2, %v981_v17, %v906_v18  ;;  %v4247_v35 = vperm.slane %v1084_v16, %v4134_v28  ;;  %v4264_v57 = vrot.slane %v5721_v12, 4 }
  0xda   : > { %v1082_v2 = vsel %vm969_vm2, %v1081_v26, %v920_v20  ;;  %v4250_v36 = vperm.slane %v1756_v33, %v4134_v28  ;;  %v673_v44 = vpop.f32.mrf.mxu3  ;;  %v725_v21 = vpop.f32.mrf.mxu2  ;;  %v4253_v46 = vperm.slane %v982_v13, %v4134_v28  ;;  %v1029_v48 = vrot.slane %v992_v29, 4 }
  0xdb   : > { %v4256_v3 = vperm.slane %v1082_v2, %v4134_v28  ;;  %v1754_v7 = vsel %vm969_vm2, %v1753_v31, %v953_v27  ;;  %v690_v18 = vpop.f32.mrf.mxu0  ;;  %v780_v20 = vpop.f32.mrf.mxu1  ;;  %v4270_v26 = vadd.f32 %v673_v44, %v4102_v62  ;;  %v1143_v2 = vrot.slane %v4247_v35, 4 }
  0xdc   : > { %5790 = vst [vmem:[#allocation9_spill] sm:$0xff] %v4250_v36  ;;  %v4267_v17 = vperm.slane %v1754_v7, %v4134_v28  ;;  %v726_v27 = vadd.f32 %v725_v21, %v4097_v51  ;;  %v691_v16 = vadd.f32 %v690_v18, %v4095_v50  ;;  %v4279_v13 = vadd.f32 %v780_v20, %v4093_v45 }
  0xdd   : > { %5791 = vst [vmem:[#allocation10_spill] sm:$0xff] %v4256_v3  ;;  %v5722_v33 = vmax.f32 %v4270_v26, 0.0  ;;  %v1032_v7 = vsel %vm969_vm2, %v992_v29, %v1031_v0  ;;  %v1030_v12 = vsel %vm969_vm2, %v1029_v48, %v980_v24  ;;  %v1020_v31 = vsel %vm969_vm2, %v4253_v46, %v1019_v63 }
  0xde   : > { %5792 = vst [vmem:[#allocation11_spill] sm:$0xff] %v4267_v17  ;;  %v926_v56 = vmax.f32 %v726_v27, 0.0  ;;  %v940_v41 = vmax.f32 %v691_v16, 0.0  ;;  %v5723_v21 = vmax.f32 %v4279_v13, 0.0  ;;  %v4287_v18 = vperm.slane %v1032_v7, %v4157_v47 }
  0xdf   : > { %v4297_v24 = vrot.slane %v5722_v33, 4  ;;  %v4306_v11 = vperm.slane %v1030_v12, %v4157_v47 }
  0xe0   : > { %v1093_v20 = vrot.slane %v926_v56, 4  ;;  %v1096_v0 = vsel %vm969_vm2, %v926_v56, %v4169_v53  ;;  %v1193_v29 = vrot.slane %v940_v41, 4  ;;  %v1196_v27 = vsel %vm969_vm2, %v940_v41, %v4177_v58 }
  0xe1   : > { %v4300_v48 = vperm.slane %v1096_v0, %v4134_v28  ;;  %v4303_v16 = vperm.slane %v1196_v27, %v4134_v28  ;;  %v4324_v15 = vrot.slane %v5723_v21, 4 }
  0xe2   : > { %v728_v7 = vpop.f32.mrf.mxu2  ;;  %v742_v63 = vpop.f32.mrf.mxu3  ;;  %v1094_v53 = vsel %vm969_vm2, %v1093_v20, %v922_v30  ;;  %v1194_v58 = vsel %vm969_vm2, %v1193_v29, %v936_v37 }
  0xe3   : > { %v729_v41 = vadd.f32 %v728_v7, %v4095_v50  ;;  %v743_v56 = vadd.f32 %v742_v63, %v4093_v45  ;;  %v692_v0 = vpop.f32.mrf.mxu0  ;;  %v782_v27 = vpop.f32.mrf.mxu1  ;;  %v4317_v33 = vperm.slane %v1094_v53, %v4134_v28  ;;  %v4320_v12 = vperm.slane %v1194_v58, %v4134_v28 }
  0xe4   : > { %v693_v20 = vadd.f32 %v692_v0, %v4102_v62  ;;  %v4329_v29 = vadd.f32 %v782_v27, %v4097_v51  ;;  %v4335_v58 = vperm.slane %v1020_v31, %v4157_v47 }
  0xe5   : > { %5793 = vst [vmem:[#allocation12_spill] sm:$0xff] %v4317_v33  ;;  %v942_v30 = vmax.f32 %v729_v41, 0.0  ;;  %v911_v37 = vmax.f32 %v743_v56, 0.0 }
  0xe6   : > { %v956_v7 = vmax.f32 %v693_v20, 0.0  ;;  %v5724_v63 = vmax.f32 %v4329_v29, 0.0 }
  0xe7   : > { %v1205_v21 = vrot.slane %v942_v30, 4  ;;  %v1208_v19 = vsel %vm969_vm2, %v942_v30, %v4194_v9  ;;  %v1429_v41 = vrot.slane %v911_v37, 4  ;;  %v1432_v56 = vsel %vm969_vm2, %v911_v37, %v4201_v22 }
  0xe8   : > { %v4342_v0 = vperm.slane %v1208_v19, %v4134_v28  ;;  %v4345_v27 = vperm.slane %v1432_v56, %v4134_v28  ;;  %v4357_v22 = vsel %vm969_vm2, %v4300_v48, %v1143_v2  ;;  %v1305_v40 = vrot.slane %v956_v7, 4 }
  0xe9   : > { %v1206_v53 = vsel %vm969_vm2, %v1205_v21, %v938_v54  ;;  %v1430_v9 = vsel %vm969_vm2, %v1429_v41, %v907_v61  ;;  %v1308_v61 = vsel %vm969_vm2, %v956_v7, %v4218_v34  ;;  %v4377_v56 = vrot.slane %v5724_v63, 4 }
  0xea   : > { %v4360_v19 = vperm.slane %v1206_v53, %v4134_v28  ;;  %v730_v37 = vpop.f32.mrf.mxu2  ;;  %v744_v20 = vpop.f32.mrf.mxu3  ;;  %v4366_v54 = vperm.slane %v1430_v9, %v4134_v28  ;;  %v1477_v41 = vrot.slane %v4345_v27, 4  ;;  %v4373_v31 = vperm.slane %v1308_v61, %v4134_v28 }
  0xeb   : > { %v731_v2 = vadd.f32 %v730_v37, %v4102_v62  ;;  %v761_v21 = vpop.f32.mrf.mxu0  ;;  %v785_v53 = vpop.f32.mrf.mxu1  ;;  %v745_v9 = vadd.f32 %v744_v20, %v4097_v51  ;;  %v1306_v32 = vsel %vm969_vm2, %v1305_v40, %v952_v4  ;;  %v1480_v49 = vsel %vm969_vm2, %v4345_v27, %v1479_v60 }
  0xec   : > { %5794 = vst [vmem:[#allocation13_spill] sm:$0xff] %v4373_v31  ;;  %v4384_v7 = vadd.f32 %v761_v21, %v4093_v45  ;;  %v4387_v37 = vadd.f32 %v785_v53, %v4095_v50  ;;  %v4391_v30 = vperm.slane %v1306_v32, %v4134_v28 }
  0xed   : > { %v958_v34 = vmax.f32 %v731_v2, 0.0  ;;  %v927_v63 = vmax.f32 %v745_v9, 0.0 }
  0xee   : > { %5795 = vst [vmem:[#allocation14_spill] sm:$0xff] %v4391_v30  ;;  %v5726_v40 = vmax.f32 %v4384_v7, 0.0  ;;  %v5725_v2 = vmax.f32 %v4387_v37, 0.0 }
  0xef   : > { %v1317_v20 = vrot.slane %v958_v34, 4  ;;  %v1320_v4 = vsel %vm969_vm2, %v958_v34, %v4224_v42  ;;  %v1541_v32 = vrot.slane %v927_v63, 4  ;;  %v1544_v9 = vsel %vm969_vm2, %v927_v63, %v4228_v43 }
  0xf0   : > { %v4403_v53 = vperm.slane %v1320_v4, %v4134_v28  ;;  %v4413_v27 = vperm.slane %v1544_v9, %v4134_v28  ;;  %v4423_v43 = vrot.slane %v5726_v40, 4  ;;  %v4427_v63 = vrot.slane %v5725_v2, 4 }
  0xf1   : > { %v1318_v42 = vsel %vm969_vm2, %v1317_v20, %v954_v8  ;;  %v1542_v4 = vsel %vm969_vm2, %v1541_v32, %v923_v10  ;;  %v4435_v10 = vperm.slane %v1480_v49, %v4157_v47  ;;  %v1478_v49 = vsel %vm969_vm2, %v1477_v41, %v4148_v39 }
  0xf2   : > { %5796 = vst [vmem:[#allocation15_spill] sm:$0xff] %v4403_v53  ;;  %v4416_v34 = vperm.slane %v1318_v42, %v4134_v28  ;;  %v747_v52 = vpop.f32.mrf.mxu3  ;;  %v799_v8 = vpop.f32.mrf.mxu2  ;;  %v4438_v32 = vperm.slane %v1542_v4, %v4134_v28  ;;  %v4454_v61 = vperm.slane %v1478_v49, %v4157_v47  ;;  %v5803_v41 = vrot.slane %v4189_v6, 4 }
  0xf3   : > { %v748_v9 = vadd.f32 %v747_v52, %v4095_v50  ;;  %v4432_v42 = vadd.f32 %v799_v8, %v4093_v45  ;;  %v763_v55 = vpop.f32.mrf.mxu0  ;;  %v787_v60 = vpop.f32.mrf.mxu1 }
  0xf4   : > { %5797 = vst [vmem:[#allocation16_spill] sm:$0xff] %v4416_v34  ;;  %v4442_v2 = vadd.f32 %v763_v55, %v4097_v51  ;;  %v4445_v20 = vadd.f32 %v787_v60, %v4102_v62  ;;  %v1468_v60 = vsel %vm969_vm2, %v4366_v54, %v1467_v59  ;;  %v1592_v52 = vsel %vm969_vm2, %v4413_v27, %v5803_v41 }
  0xf5   : > { %5798 = vst [vmem:[#allocation17_spill] sm:$0xff] %v4438_v32  ;;  %v943_v8 = vmax.f32 %v748_v9, 0.0  ;;  %v5728_v40 = vmax.f32 %v4432_v42, 0.0  ;;  %v4464_v39 = vperm.slane %v1468_v60, %v4157_v47  ;;  %v4508_v17 = vperm.slane %v1592_v52, %v4157_v47 }
  0xf6   : > { %v5727_v44 = vmax.f32 %v4442_v2, 0.0  ;;  %v5729_v4 = vmax.f32 %v4445_v20, 0.0  ;;  %5799 = vst [vmem:[#allocation18_spill] sm:$0xff] %v4454_v61 }
  0xf7   : > { %v1653_v55 = vrot.slane %v943_v8, 4  ;;  %v1656_v9 = vsel %vm969_vm2, %v943_v8, %v4264_v57  ;;  %5800 = vst [vmem:[#allocation19_spill] sm:$0xff] %v4464_v39  ;;  %v4472_v49 = vrot.slane %v5728_v40, 4  ;;  %v5801_v57 = vmax.f32 %v4211_v14, 0.0 }
  0xf8   : > { %v4468_v21 = vperm.slane %v1656_v9, %v4134_v28  ;;  %v4476_v59 = vrot.slane %v5727_v44, 4  ;;  %v4483_v60 = vrot.slane %v5729_v4, 4  ;;  %v4487_v9 = vperm.slane %v4357_v22, %v4157_v47 }
  0xf9   : > { %v1654_v8 = vsel %vm969_vm2, %v1653_v55, %v5801_v57  ;;  %v5804_v4 = vrot.slane %v4253_v46, 4  ;;  %v5805_v39 = vrot.slane %v4366_v54, 4  ;;  %v5807_v46 = vrot.slane %v4256_v3, 4 }
  0xfa   : > { %5802 = vst [vmem:[#allocation20_spill] sm:$0xff] %v4487_v9  ;;  %v4494_v44 = vperm.slane %v1654_v8, %v4134_v28  ;;  %v749_v40 = vpop.f32.mrf.mxu3  ;;  %v801_v14 = vpop.f32.mrf.mxu2  ;;  %v1701_v36 = vrot.slane %v4468_v21, 4  ;;  %v5817_v3 = vrot.slane %v4342_v0, 4 }
  0xfb   : > { %v1018_v22 = vsel %vm969_vm2, %v5804_v4, %v4204_v23  ;;  %v750_v53 = vadd.f32 %v749_v40, %v4102_v62  ;;  %v4505_v41 = vadd.f32 %v801_v14, %v4097_v51  ;;  %v766_v8 = vpop.f32.mrf.mxu0  ;;  %v856_v31 = vpop.f32.mrf.mxu1  ;;  %v1466_v52 = vsel %vm969_vm2, %v5805_v39, %v4145_v38 }
  0xfc   : > { %v4511_v55 = vadd.f32 %v766_v8, %v4095_v50  ;;  %v857_v57 = vadd.f32 %v856_v31, %v4093_v45  ;;  %v4516_v23 = vperm.slane %v1018_v22, %v4157_v47  ;;  %v1689_v40 = vrot.slane %v4494_v44, 4 }
  0xfd   : > { %v959_v4 = vmax.f32 %v750_v53, 0.0  ;;  %v4526_v31 = vperm.slane %v1466_v52, %v4157_v47  ;;  %v1132_v22 = vsel %vm969_vm2, %v4317_v33, %v5807_v46  ;;  %v5810_v46 = vmax.f32 %v4270_v26, 0.0 }
  0xfe   : > { %v917_v61 = vmax.f32 %v857_v57, 0.0  ;;  %v4536_v54 = vperm.slane %v1132_v22, %v4157_v47  ;;  %v5812_v22 = vmax.f32 %v4511_v55, 0.0 }
  0xff   : > { %5806 = vst [vmem:[#allocation21_spill] sm:$0xff] %v4526_v31  ;;  %v1765_v9 = vrot.slane %v959_v4, 4  ;;  %v1768_v53 = vsel %vm969_vm2, %v959_v4, %v4297_v24  ;;  %v5811_v24 = vmax.f32 %v4505_v41, 0.0 }
 0x100   : > { %5808 = vst [vmem:[#allocation22_spill] sm:$0xff] %v4536_v54  ;;  %v4539_v38 = vperm.slane %v1768_v53, %v4134_v28  ;;  %v1441_v39 = vrot.slane %v917_v61, 4  ;;  %v1444_v57 = vsel %vm969_vm2, %v917_v61, %v4324_v15  ;;  %v4553_v14 = vrot.slane %v5812_v22, 4 }
 0x101   : > { %v1766_v8 = vsel %vm969_vm2, %v1765_v9, %v5810_v46  ;;  %v4549_v4 = vrot.slane %v5811_v24, 4  ;;  %v4556_v53 = vperm.slane %v1444_v57, %v4134_v28  ;;  %v5814_v15 = vmax.f32 %v4279_v13, 0.0 }
 0x102   : > { %5809 = vst [vmem:[#allocation23_spill] sm:$0xff] %v4539_v38  ;;  %v4559_v33 = vperm.slane %v1766_v8, %v4134_v28  ;;  %v804_v61 = vpop.f32.mrf.mxu2  ;;  %v818_v9 = vpop.f32.mrf.mxu3  ;;  %v5815_v24 = vrot.slane %v4186_v5, 4 }
 0x103   : > { %v1442_v26 = vsel %vm969_vm2, %v1441_v39, %v5814_v15  ;;  %v4573_v57 = vadd.f32 %v804_v61, %v4095_v50  ;;  %v4576_v8 = vadd.f32 %v818_v9, %v4093_v45  ;;  %v768_v13 = vpop.f32.mrf.mxu0  ;;  %v858_v39 = vpop.f32.mrf.mxu1  ;;  %v1254_v15 = vsel %vm969_vm2, %v5817_v3, %v4303_v16 }
 0x104   : > { %5813 = vst [vmem:[#allocation24_spill] sm:$0xff] %v4559_v33  ;;  %v1580_v22 = vsel %vm969_vm2, %v4438_v32, %v5815_v24  ;;  %v4570_v52 = vperm.slane %v1442_v26, %v4134_v28  ;;  %v4581_v5 = vadd.f32 %v768_v13, %v4102_v62  ;;  %v859_v24 = vadd.f32 %v858_v39, %v4097_v51 }
 0x105   : > { %v4585_v26 = vperm.slane %v1580_v22, %v4157_v47  ;;  %v4597_v39 = vperm.slane %v1254_v15, %v4157_v47  ;;  %v1702_v9 = vsel %vm969_vm2, %v1701_v36, %v4208_v25  ;;  %v5819_v32 = vrot.slane %v4303_v16, 4 }
 0x106   : > { %v933_v38 = vmax.f32 %v859_v24, 0.0  ;;  %v5820_v46 = vmax.f32 %v4573_v57, 0.0  ;;  %v5821_v24 = vmax.f32 %v4576_v8, 0.0  ;;  %v5822_v22 = vmax.f32 %v4581_v5, 0.0 }
 0x107   : > { %5816 = vst [vmem:[#allocation25_spill] sm:$0xff] %v4585_v26  ;;  %v1256_v3 = vsel %vm969_vm2, %v4342_v0, %v5819_v32  ;;  %v4625_v0 = vperm.slane %v1702_v9, %v4157_v47  ;;  %v5823_v32 = vrot.slane %v4208_v25, 4  ;;  %v1690_v9 = vsel %vm969_vm2, %v1689_v40, %v4232_v1 }
 0x108   : > { %5818 = vst [vmem:[#allocation26_spill] sm:$0xff] %v4597_v39  ;;  %v4609_v33 = vrot.slane %v5820_v46, 4  ;;  %v4613_v15 = vrot.slane %v5821_v24, 4  ;;  %v1553_v13 = vrot.slane %v933_v38, 4  ;;  %v1556_v61 = vsel %vm969_vm2, %v933_v38, %v4377_v56 }
 0x109   : > { %v4619_v36 = vrot.slane %v5822_v22, 4  ;;  %v4622_v16 = vperm.slane %v1556_v61, %v4134_v28  ;;  %v1704_v46 = vsel %vm969_vm2, %v4468_v21, %v5823_v32  ;;  %v5824_v24 = vmax.f32 %v4329_v29, 0.0 }
 0x10a   : > { %v806_v56 = vpop.f32.mrf.mxu2  ;;  %v820_v38 = vpop.f32.mrf.mxu3  ;;  %v5825_v61 = vrot.slane %v4360_v19, 4  ;;  %v4656_v40 = vperm.slane %v1704_v46, %v4157_v47 }
 0x10b   : > { %v1554_v26 = vsel %vm969_vm2, %v1553_v13, %v5824_v24  ;;  %v4645_v21 = vadd.f32 %v806_v56, %v4102_v62  ;;  %v4648_v29 = vadd.f32 %v820_v38, %v4097_v51  ;;  %v837_v13 = vpop.f32.mrf.mxu0  ;;  %v861_v32 = vpop.f32.mrf.mxu1  ;;  %v4651_v24 = vperm.slane %v1256_v3, %v4157_v47 }
 0x10c   : > { %v1242_v54 = vsel %vm969_vm2, %v5825_v61, %v4320_v12  ;;  %v4642_v25 = vperm.slane %v1554_v26, %v4134_v28  ;;  %v838_v22 = vadd.f32 %v837_v13, %v4093_v45  ;;  %v862_v61 = vadd.f32 %v861_v32, %v4095_v50  ;;  %5827 = vst [vmem:[#allocation28_spill] sm:$0xff] %v4656_v40 }
 0x10d   : > { %5826 = vst [vmem:[#allocation27_spill] sm:$0xff] %v4651_v24  ;;  %v4659_v26 = vperm.slane %v1242_v54, %v4157_v47  ;;  %v5763_v38 = vmax.f32 %v4645_v21, 0.0  ;;  %v5762_v39 = vmax.f32 %v4648_v29, 0.0  ;;  %v4666_v13 = vperm.slane %v1690_v9, %v4157_v47 }
 0x10e   : > { %v916_v3 = vmax.f32 %v838_v22, 0.0  ;;  %v949_v24 = vmax.f32 %v862_v61, 0.0  ;;  %v5829_v32 = vrot.slane %v4320_v12, 4  ;;  %v5830_v54 = vrot.slane %v4232_v1, 4 }
 0x10f   : > { %5828 = vst [vmem:[#allocation29_spill] sm:$0xff] %v4659_v26  ;;  %v4675_v56 = vrot.slane %v5763_v38, 4  ;;  %v4679_v40 = vrot.slane %v5762_v39, 4  ;;  %v5831_v22 = vrot.slane %v4300_v48, 4 }
 0x110   : > { %v1244_v46 = vsel %vm969_vm2, %v4360_v19, %v5829_v32  ;;  %v993_v61 = vrot.slane %v916_v3, 4  ;;  %v996_v9 = vsel %vm969_vm2, %v916_v3, %v4423_v43  ;;  %v1665_v12 = vrot.slane %v949_v24, 4 }
 0x111   : > { %v1668_v19 = vsel %vm969_vm2, %v949_v24, %v4427_v63  ;;  %v4687_v32 = vperm.slane %v996_v9, %v4134_v28  ;;  %v1692_v39 = vsel %vm969_vm2, %v4494_v44, %v5830_v54  ;;  %v1142_v43 = vsel %vm969_vm2, %v5831_v22, %v4247_v35 }
 0x112   : > { %v4690_v31 = vperm.slane %v1668_v19, %v4134_v28  ;;  %v5832_v3 = vmax.f32 %v4384_v7, 0.0  ;;  %v5833_v24 = vmax.f32 %v4387_v37, 0.0  ;;  %v823_v19 = vpop.f32.mrf.mxu3  ;;  %v875_v38 = vpop.f32.mrf.mxu2  ;;  %v4708_v26 = vperm.slane %v1244_v46, %v4157_v47 }
 0x113   : > { %v839_v35 = vpop.f32.mrf.mxu0  ;;  %v863_v7 = vpop.f32.mrf.mxu1  ;;  %v4715_v54 = vperm.slane %v1692_v39, %v4157_v47  ;;  %v4718_v37 = vperm.slane %v1142_v43, %v4157_v47  ;;  %v4721_v22 = vadd.f32 %v823_v19, %v4095_v50  ;;  %v5836_v39 = vrot.slane %v4413_v27, 4 }
 0x114   : > { %v994_v63 = vsel %vm969_vm2, %v993_v61, %v5832_v3  ;;  %v1666_v9 = vsel %vm969_vm2, %v1665_v12, %v5833_v24  ;;  %5834 = vst [vmem:[#allocation30_spill] sm:$0xff] %v4708_v26  ;;  %v876_v61 = vadd.f32 %v875_v38, %v4093_v45  ;;  %v840_v46 = vadd.f32 %v839_v35, %v4097_v51 }
 0x115   : > { %v1000_v44 = vperm.slane %v994_v63, %v4134_v28  ;;  %v4712_v48 = vperm.slane %v1666_v9, %v4134_v28  ;;  %5835 = vst [vmem:[#allocation31_spill] sm:$0xff] %v4715_v54  ;;  %v864_v12 = vadd.f32 %v863_v7, %v4102_v62  ;;  %v1055_v63 = vrot.slane %v4687_v32, 4 }
 0x116   : > { %v1590_v43 = vsel %vm969_vm2, %v5836_v39, %v4189_v6  ;;  %v5768_v9 = vmax.f32 %v4721_v22, 0.0  ;;  %v918_v19 = vmax.f32 %v876_v61, 0.0  ;;  %v932_v1 = vmax.f32 %v840_v46, 0.0 }
 0x117   : > { %v1043_v3 = vrot.slane %v1000_v44, 4  ;;  %v965_v54 = vmax.f32 %v864_v12, 0.0  ;;  %v4736_v7 = vperm.slane %v1590_v43, %v4157_v47  ;;  %v5837_v26 = vrot.slane %v4391_v30, 4 }
 0x118   : > { %v4746_v6 = vrot.slane %v5768_v9, 4  ;;  %v1005_v27 = vrot.slane %v918_v19, 4  ;;  %v1008_v61 = vsel %vm969_vm2, %v918_v19, %v4472_v49  ;;  %v1105_v46 = vrot.slane %v932_v1, 4 }
 0x119   : > { %v4742_v24 = vsel %vm969_vm2, %v4416_v34, %v5837_v26  ;;  %v1016_v12 = vperm.slane %v1008_v61, %v4134_v28  ;;  %v1108_v39 = vsel %vm969_vm2, %v932_v1, %v4476_v59  ;;  %v1777_v43 = vrot.slane %v965_v54, 4 }
 0x11a   : > { %5838 = vst [vmem:[#allocation32_spill] sm:$0xff] %v4742_v24  ;;  %v1780_v35 = vsel %vm969_vm2, %v965_v54, %v4483_v60  ;;  %v5839_v26 = vmax.f32 %v4432_v42, 0.0  ;;  %v5840_v9 = vmax.f32 %v4442_v2, 0.0  ;;  %v4762_v49 = vperm.slane %v1108_v39, %v4134_v28  ;;  %v825_v61 = vpop.f32.mrf.mxu3  ;;  %v877_v59 = vpop.f32.mrf.mxu2 }
 0x11b   : > { %v4765_v19 = vperm.slane %v1780_v35, %v4134_v28  ;;  %v1053_v30 = vrot.slane %v1016_v12, 4  ;;  %v5842_v42 = vmax.f32 %v4445_v20, 0.0  ;;  %v842_v54 = vpop.f32.mrf.mxu0 }
 0x11c   : > { %v1006_v38 = vsel %vm969_vm2, %v1005_v27, %v5839_v26  ;;  %v1106_v34 = vsel %vm969_vm2, %v1105_v46, %v5840_v9  ;;  %v1167_v9 = vrot.slane %v4762_v49, 4  ;;  %v4780_v46 = vadd.f32 %v825_v61, %v4102_v62 }
 0x11d   : > { %5841 = vst [vmem:[#allocation33_spill] sm:$0xff] %v4765_v19  ;;  %v1012_v1 = vperm.slane %v1006_v38, %v4134_v28  ;;  %v4769_v60 = vperm.slane %v1106_v34, %v4134_v28  ;;  %v1778_v2 = vsel %vm969_vm2, %v1777_v43, %v5842_v42  ;;  %v878_v34 = vadd.f32 %v877_v59, %v4097_v51 }
 0x11e   : > { %v4776_v27 = vperm.slane %v1778_v2, %v4134_v28  ;;  %v843_v20 = vadd.f32 %v842_v54, %v4095_v50  ;;  %v5773_v26 = vmax.f32 %v4780_v46, 0.0  ;;  %v1056_v42 = vsel %vm969_vm2, %v1016_v12, %v1055_v63 }
 0x11f   : > { %v1041_v38 = vrot.slane %v1012_v1, 4  ;;  %v1054_v2 = vsel %vm969_vm2, %v1053_v30, %v4687_v32  ;;  %v934_v35 = vmax.f32 %v878_v34, 0.0  ;;  %v1064_v61 = vperm.slane %v1056_v42, %v4157_v47 }
 0x120   : > { %v948_v19 = vmax.f32 %v843_v20, 0.0  ;;  %v4792_v24 = vperm.slane %v1054_v2, %v4157_v47  ;;  %v4796_v59 = vrot.slane %v5773_v26, 4  ;;  %v1044_v54 = vsel %vm969_vm2, %v1012_v1, %v1043_v3 }
 0x121   : > { %v4800_v43 = vsel %vm969_vm2, %v1041_v38, %v1000_v44  ;;  %v1117_v12 = vrot.slane %v934_v35, 4  ;;  %v1120_v30 = vsel %vm969_vm2, %v934_v35, %v4549_v4  ;;  %v5843_v44 = vrot.slane %v4287_v18, 4 }
 0x122   : > { %v1217_v32 = vrot.slane %v948_v19, 4  ;;  %v1220_v34 = vsel %vm969_vm2, %v948_v19, %v4553_v14  ;;  %v4808_v20 = vperm.slane %v1120_v30, %v4134_v28  ;;  %v880_v3 = vpop.f32.mrf.mxu2  ;;  %v894_v1 = vpop.f32.mrf.mxu3  ;;  %v5844_v2 = vrot.slane %v4306_v11, 4 }
 0x123   : > { %v4811_v42 = vperm.slane %v1220_v34, %v4134_v28  ;;  %v4816_v38 = vsel %vm969_vm2, %v1064_v61, %v5843_v44  ;;  %v5845_v14 = vmax.f32 %v4505_v41, 0.0  ;;  %v5846_v35 = vmax.f32 %v4511_v55, 0.0  ;;  %v844_v44 = vpop.f32.mrf.mxu0 }
 0x124   : > { %v4822_v4 = vsel %vm969_vm2, %v4792_v24, %v5844_v2  ;;  %v881_v34 = vadd.f32 %v880_v3, %v4095_v50  ;;  %v895_v63 = vadd.f32 %v894_v1, %v4093_v45  ;;  %v845_v55 = vadd.f32 %v844_v44, %v4102_v62 }
 0x125   : > { %v1118_v19 = vsel %vm969_vm2, %v1117_v12, %v5845_v14  ;;  %v1218_v30 = vsel %vm969_vm2, %v1217_v32, %v5846_v35  ;;  %v1052_v32 = vperm.slane %v1044_v54, %v4157_v47  ;;  %v1077_v1 = vrot.slane %v1064_v61, 4 }
 0x126   : > { %v4833_v26 = vperm.slane %v1118_v19, %v4134_v28  ;;  %v4837_v2 = vperm.slane %v1218_v30, %v4134_v28  ;;  %v950_v12 = vmax.f32 %v881_v34, 0.0  ;;  %v919_v14 = vmax.f32 %v895_v63, 0.0 }
 0x127   : > { %v4846_v19 = vsel %vm969_vm2, %v4808_v20, %v1167_v9  ;;  %v964_v44 = vmax.f32 %v845_v55, 0.0  ;;  %v1069_v3 = vrot.slane %v1052_v32, 4  ;;  %v5847_v61 = vmax.f32 %v4573_v57, 0.0 }
 0x128   : > { %v1229_v35 = vrot.slane %v950_v12, 4  ;;  %v1232_v30 = vsel %vm969_vm2, %v950_v12, %v4609_v33  ;;  %v1453_v39 = vrot.slane %v919_v14, 4  ;;  %v1456_v63 = vsel %vm969_vm2, %v919_v14, %v4613_v15 }
 0x129   : > { %v4853_v34 = vperm.slane %v1232_v30, %v4134_v28  ;;  %v1464_v54 = vperm.slane %v1456_v63, %v4134_v28  ;;  %v5848_v45 = vmax.f32 %v4576_v8, 0.0  ;;  %v5849_v33 = vrot.slane %v4335_v58, 4 }
 0x12a   : > { %v1230_v9 = vsel %vm969_vm2, %v1229_v35, %v5847_v61  ;;  %v1078_v15 = vsel %vm969_vm2, %v1077_v1, %v4287_v18  ;;  %v882_v30 = vpop.f32.mrf.mxu2  ;;  %v896_v8 = vpop.f32.mrf.mxu3  ;;  %v1329_v63 = vrot.slane %v964_v44, 4  ;;  %v1070_v18 = vsel %vm969_vm2, %v1069_v3, %v4335_v58 }
 0x12b   : > { %v1454_v41 = vsel %vm969_vm2, %v1453_v39, %v5848_v45  ;;  %v1072_v12 = vsel %vm969_vm2, %v1052_v32, %v5849_v33  ;;  %v4868_v14 = vperm.slane %v1230_v9, %v4134_v28  ;;  %v1501_v35 = vrot.slane %v1464_v54, 4 }
 0x12c   : > { %v4872_v57 = vperm.slane %v1454_v41, %v4134_v28  ;;  %v1332_v39 = vsel %vm969_vm2, %v964_v44, %v4619_v36  ;;  %v883_v32 = vadd.f32 %v882_v30, %v4102_v62  ;;  %v897_v45 = vadd.f32 %v896_v8, %v4097_v51  ;;  %v5859_v8 = vld [vmem:[#allocation19_spill] sm:$0xff] }
 0x12d   : > { %v4881_v61 = vperm.slane %v1332_v39, %v4134_v28  ;;  %v5850_v41 = vrot.slane %v4556_v53, 4  ;;  %v5851_v33 = vmax.f32 %v4581_v5, 0.0  ;;  %v1502_v39 = vsel %vm969_vm2, %v1501_v35, %v4556_v53 }
 0x12e   : > { %v1489_v1 = vrot.slane %v4872_v57, 4  ;;  %v966_v36 = vmax.f32 %v883_v32, 0.0  ;;  %v935_v44 = vmax.f32 %v897_v45, 0.0  ;;  %v5852_v53 = vrot.slane %v4435_v10, 4 }
 0x12f   : > { %v1504_v9 = vsel %vm969_vm2, %v1464_v54, %v5850_v41  ;;  %v1330_v55 = vsel %vm969_vm2, %v1329_v63, %v5851_v33  ;;  %v5853_v3 = vmax.f32 %v4645_v21, 0.0  ;;  %v5854_v35 = vmax.f32 %v4648_v29, 0.0 }
 0x130   : > { %v1512_v30 = vperm.slane %v1504_v9, %v4157_v47  ;;  %v4891_v51 = vperm.slane %v1330_v55, %v4134_v28  ;;  %v1341_v54 = vrot.slane %v966_v36, 4  ;;  %v1344_v5 = vsel %vm969_vm2, %v966_v36, %v4675_v56 }
 0x131   : > { %v1565_v63 = vrot.slane %v935_v44, 4  ;;  %v1568_v32 = vsel %vm969_vm2, %v935_v44, %v4679_v40  ;;  %v4904_v55 = vperm.slane %v1344_v5, %v4134_v28  ;;  %v4920_v33 = vperm.slane %v1502_v39, %v4157_v47 }
 0x132   : > { %v4907_v41 = vperm.slane %v1568_v32, %v4134_v28  ;;  %v1528_v58 = vsel %vm969_vm2, %v1512_v30, %v5852_v53  ;;  %v1342_v56 = vsel %vm969_vm2, %v1341_v54, %v5853_v3  ;;  %v899_v54 = vpop.f32.mrf.mxu3  ;;  %v5857_v39 = vrot.slane %v4570_v52, 4 }
 0x133   : > { %v1566_v40 = vsel %vm969_vm2, %v1565_v63, %v5854_v35  ;;  %v1886_v9 = vadd.f32 %v1528_v58, %v4816_v38  ;;  %v4923_v36 = vperm.slane %v1342_v56, %v4134_v28  ;;  %v900_v29 = vadd.f32 %v899_v54, %v4095_v50  ;;  %v5855_v63 = vld [vmem:[#allocation18_spill] sm:$0xff] }
 0x134   : > { %v4927_v5 = vperm.slane %v1566_v40, %v4134_v28  ;;  %v1613_v21 = vrot.slane %v4907_v41, 4  ;;  %v5856_v32 = vrot.slane %v5855_v63, 4  ;;  %v1492_v53 = vsel %vm969_vm2, %v4872_v57, %v5857_v39 }
 0x135   : > { %1887 = vadd.xlane.f32.xlu1 %v1886_v9  ;;  %v1525_v58 = vrot.slane %v1512_v30, 4  ;;  %v1500_v40 = vperm.slane %v1492_v53, %v4157_v47  ;;  %v951_v50 = vmax.f32 %v900_v29, 0.0  ;;  %v1176_v54 = vperm.slane %v4846_v19, %v4157_v47  ;;  %v5861_v19 = vld [vmem:[#allocation20_spill] sm:$0xff] }
 0x136   : > { %v1524_v38 = vsel %vm969_vm2, %v4920_v33, %v5856_v32  ;;  %v5858_v32 = vrot.slane %v4622_v16, 4  ;;  %v5860_v44 = vrot.slane %v5859_v8, 4  ;;  %v5862_v3 = vrot.slane %v5861_v19, 4 }
 0x137   : > { %v1880_v35 = vadd.f32 %v1524_v38, %v4822_v4  ;;  %v1526_v9 = vsel %vm969_vm2, %v1525_v58, %v4435_v10  ;;  %v1517_v39 = vrot.slane %v1500_v40, 4  ;;  %v1677_v53 = vrot.slane %v951_v50, 4 }
 0x138   : > { %v1616_v30 = vsel %vm969_vm2, %v4907_v41, %v5858_v32  ;;  %v1520_v4 = vsel %vm969_vm2, %v1500_v40, %v5860_v44  ;;  %v1883_v38 = vadd.f32 %v1526_v9, %v1078_v15  ;;  %v1680_v10 = vsel %vm969_vm2, %v951_v50, %v4746_v6 }
 0x139   : > { %1881 = vadd.xlane.f32.xlu2 %v1880_v35  ;;  %v1624_v29 = vperm.slane %v1616_v30, %v4157_v47  ;;  %v1874_v58 = vadd.f32 %v1520_v4, %v1072_v12  ;;  %v1192_v56 = vsel %vm969_vm2, %v1176_v54, %v5862_v3  ;;  %v1688_v32 = vperm.slane %v1680_v10, %v4134_v28 }
 0x13a   : > { %v1518_v35 = vsel %vm969_vm2, %v1517_v39, %v5859_v8  ;;  %v5863_v45 = vrot.slane %v4508_v17, 4  ;;  %v1189_v44 = vrot.slane %v1176_v54, 4  ;;  %v5864_v40 = vmax.f32 %v4721_v22, 0.0  ;;  %v901_v4 = vpop.f32.mrf.mxu3 }
 0x13b   : > { %v1871_v6 = vadd.f32 %v1518_v35, %v1070_v18  ;;  %v1637_v50 = vrot.slane %v1624_v29, 4  ;;  %v1725_v3 = vrot.slane %v1688_v32, 4  ;;  %v1048_v39 = vperm.slane %v4800_v43, %v4157_v47 }
 0x13c   : > { %v1640_v15 = vsel %vm969_vm2, %v1624_v29, %v5863_v45  ;;  %v1678_v9 = vsel %vm969_vm2, %v1677_v53, %v5864_v40  ;;  %v1190_v8 = vsel %vm969_vm2, %v1189_v44, %v5861_v19  ;;  %v902_v22 = vadd.f32 %v901_v4, %v4102_v62  ;;  %v5869_v19 = vld [vmem:[#allocation21_spill] sm:$0xff] }
 0x13d   : > { %v1910_v12 = vadd.f32 %v1640_v15, %v1192_v56  ;;  %v4970_v30 = vperm.slane %v1678_v9, %v4134_v28  ;;  %1872 = vadd.xlane.f32.xlu0 %v1871_v6  ;;  %1875 = vadd.xlane.f32.xlu1 %v1874_v58  ;;  %v1638_v18 = vsel %vm969_vm2, %v1637_v50, %v4508_v17  ;;  %v1073_v56 = vrot.slane %v4792_v24, 4 }
 0x13e   : > { %v1490_v45 = vsel %vm969_vm2, %v1489_v1, %v4570_v52  ;;  %v1907_v29 = vadd.f32 %v1638_v18, %v1190_v8  ;;  %v5865_v53 = vrot.slane %v4516_v23, 4  ;;  %v967_v62 = vmax.f32 %v902_v22, 0.0  ;;  %v5871_v22 = vld [vmem:[#allocation22_spill] sm:$0xff] }
 0x13f   : > { %v1713_v54 = vrot.slane %v4970_v30, 4  ;;  %v1496_v10 = vperm.slane %v1490_v45, %v4157_v47  ;;  %v5866_v58 = vrot.slane %v4769_v60, 4  ;;  %v5867_v57 = vrot.slane %v4642_v25, 4 }
 0x140   : > { %v1068_v43 = vsel %vm969_vm2, %v1048_v39, %v5865_v53  ;;  %v5868_v24 = vrot.slane %v4853_v34, 4  ;;  %v5870_v35 = vrot.slane %v5869_v19, 4  ;;  %v1789_v6 = vrot.slane %v967_v62, 4  ;;  %v5873_v53 = vld [vmem:[#allocation25_spill] sm:$0xff] }
 0x141   : > { %v1156_v17 = vsel %vm969_vm2, %v4833_v26, %v5866_v58  ;;  %v1604_v52 = vsel %vm969_vm2, %v4927_v5, %v5867_v57  ;;  %1884 = vadd.xlane.f32.xlu2 %v1883_v38  ;;  %v1792_v50 = vsel %vm969_vm2, %v967_v62, %v4796_v59  ;;  %v1726_v38 = vsel %vm969_vm2, %v1725_v3, %v4690_v31  ;;  %v5875_v57 = vld [vmem:[#allocation26_spill] sm:$0xff] }
 0x142   : > { %v1278_v1 = vsel %vm969_vm2, %v5868_v24, %v4811_v42  ;;  %v1516_v15 = vsel %vm969_vm2, %v1496_v10, %v5870_v35  ;;  %v5005_v44 = vperm.slane %v1156_v17, %v4157_v47  ;;  %v5008_v40 = vperm.slane %v1604_v52, %v4157_v47 }
 0x143   : > { %v1284_v9 = vperm.slane %v1278_v1, %v4157_v47  ;;  %v1868_v4 = vadd.f32 %v1516_v15, %v1068_v43  ;;  %v5016_v8 = vperm.slane %v1792_v50, %v4134_v28  ;;  %v5872_v18 = vrot.slane %v5871_v22, 4 }
 0x144   : > { %v5874_v58 = vrot.slane %v5873_v53, 4  ;;  %v5876_v52 = vrot.slane %v5875_v57, 4  ;;  %v5877_v43 = vmax.f32 %v4780_v46, 0.0  ;;  %v1732_v24 = vperm.slane %v1726_v38, %v4157_v47 }
 0x145   : > { %v1184_v45 = vsel %vm969_vm2, %v5005_v44, %v5872_v18  ;;  %v1074_v1 = vsel %vm969_vm2, %v1073_v56, %v4306_v11  ;;  %v1837_v15 = vrot.slane %v5016_v8, 4  ;;  %v1521_v50 = vrot.slane %v4920_v33, 4  ;;  %1911 = vadd.xlane.f32.xlu0 %v1910_v12  ;;  %1908 = vadd.xlane.f32.xlu1 %v1907_v29 }
 0x146   : > { %v1632_v17 = vsel %vm969_vm2, %v5008_v40, %v5874_v58  ;;  %v1300_v59 = vsel %vm969_vm2, %v1284_v9, %v5876_v52  ;;  %v1790_v3 = vsel %vm969_vm2, %v1789_v6, %v5877_v43  ;;  %v5878_v18 = vrot.slane %v4811_v42, 4  ;;  %v5882_v43 = vld [vmem:[#allocation27_spill] sm:$0xff] }
 0x147   : > { %v1898_v62 = vadd.f32 %v1632_v17, %v1184_v45  ;;  %v5036_v35 = vperm.slane %v1790_v3, %v4134_v28  ;;  %v5879_v6 = vrot.slane %v4625_v0, 4  ;;  %v5880_v28 = vrot.slane %v4690_v31, 4 }
 0x148   : > { %v1280_v46 = vsel %vm969_vm2, %v4853_v34, %v5878_v18  ;;  %v1065_v45 = vrot.slane %v1048_v39, 4  ;;  %v1522_v34 = vsel %vm969_vm2, %v1521_v50, %v5855_v63  ;;  %v5881_v17 = vrot.slane %v4868_v14, 4 }
 0x149   : > { %v1748_v38 = vsel %vm969_vm2, %v1732_v24, %v5879_v6  ;;  %v5048_v11 = vperm.slane %v1280_v46, %v4157_v47  ;;  %v1728_v56 = vsel %vm969_vm2, %v1688_v32, %v5880_v28  ;;  %v1825_v33 = vrot.slane %v5036_v35, 4  ;;  %1869 = vadd.xlane.f32.xlu2 %v1868_v4  ;;  %v5885_v46 = vld [vmem:[#allocation28_spill] sm:$0xff] }
 0x14a   : > { %v1928_v42 = vadd.f32 %v1748_v38, %v1300_v59  ;;  %v5057_v12 = vperm.slane %v1728_v56, %v4157_v47  ;;  %v1877_v29 = vadd.f32 %v1522_v34, %v1074_v1  ;;  %v1266_v31 = vsel %vm969_vm2, %v5881_v17, %v4837_v2  ;;  %v5886_v38 = vld [vmem:[#allocation29_spill] sm:$0xff] }
 0x14b   : > { %v1301_v58 = vrot.slane %v5048_v11, 4  ;;  %v1714_v32 = vsel %vm969_vm2, %v1713_v54, %v4712_v48  ;;  %v1272_v52 = vperm.slane %v1266_v31, %v4157_v47  ;;  %v1066_v59 = vsel %vm969_vm2, %v1065_v45, %v4516_v23 }
 0x14c   : > { %v1749_v39 = vrot.slane %v5057_v12, 4  ;;  %v1720_v63 = vperm.slane %v1714_v32, %v4157_v47  ;;  %v1513_v1 = vrot.slane %v1496_v10, 4  ;;  %v5883_v50 = vrot.slane %v4837_v2, 4 }
 0x14d   : > { %v1302_v3 = vsel %vm969_vm2, %v1301_v58, %v5882_v43  ;;  %v5884_v54 = vrot.slane %v4712_v48, 4  ;;  %v5887_v28 = vrot.slane %v5886_v38, 4  ;;  %v5888_v56 = vrot.slane %v4666_v13, 4  ;;  %1899 = vadd.xlane.f32.xlu0 %v1898_v62  ;;  %1929 = vadd.xlane.f32.xlu1 %v1928_v42 }
 0x14e   : > { %v1268_v18 = vsel %vm969_vm2, %v4868_v14, %v5883_v50  ;;  %v1750_v6 = vsel %vm969_vm2, %v1749_v39, %v5885_v46  ;;  %v1514_v48 = vsel %vm969_vm2, %v1513_v1, %v5869_v19  ;;  %v1297_v17 = vrot.slane %v1284_v9, 4 }
 0x14f   : > { %v1716_v4 = vsel %vm969_vm2, %v4970_v30, %v5884_v54  ;;  %v1292_v23 = vsel %vm969_vm2, %v1272_v52, %v5887_v28  ;;  %v1740_v10 = vsel %vm969_vm2, %v1720_v63, %v5888_v56  ;;  %v5090_v2 = vperm.slane %v1268_v18, %v4157_v47  ;;  %v5893_v18 = vld [vmem:[#allocation32_spill] sm:$0xff] }
 0x150   : > { %v1931_v14 = vadd.f32 %v1750_v6, %v1302_v3  ;;  %v1916_v45 = vadd.f32 %v1740_v10, %v1292_v23  ;;  %v5095_v30 = vperm.slane %v1716_v4, %v4157_v47  ;;  %v1865_v34 = vadd.f32 %v1514_v48, %v1066_v59  ;;  %v5890_v59 = vld [vmem:[#allocation30_spill] sm:$0xff]  ;;  %v5898_v56 = vld [vmem:[#allocation24_spill] sm:$0xff] }
 0x151   : > { %v1293_v58 = vrot.slane %v5090_v2, 4  ;;  %v1745_v31 = vrot.slane %v1732_v24, 4  ;;  %v5889_v39 = vrot.slane %v4808_v20, 4  ;;  %v1614_v19 = vsel %vm969_vm2, %v1613_v21, %v4622_v16  ;;  %v5891_v20 = vld [vmem:[#allocation31_spill] sm:$0xff]  ;;  %1878 = vadd.xlane.f32.xlu2 %v1877_v29 }
 0x152   : > { %v1741_v32 = vrot.slane %v5095_v30, 4  ;;  %v1289_v1 = vrot.slane %v1272_v52, 4  ;;  %v1298_v9 = vsel %vm969_vm2, %v1297_v17, %v5875_v57  ;;  %v5119_v41 = vperm.slane %v1614_v19, %v4157_v47 }
 0x153   : > { %v1166_v3 = vsel %vm969_vm2, %v5889_v39, %v4762_v49  ;;  %v1294_v50 = vsel %vm969_vm2, %v1293_v58, %v5890_v59  ;;  %v1746_v62 = vsel %vm969_vm2, %v1745_v31, %v4625_v0  ;;  %v5892_v57 = vrot.slane %v4718_v37, 4 }
 0x154   : > { %v5114_v24 = vperm.slane %v1166_v3, %v4157_v47  ;;  %v1742_v49 = vsel %vm969_vm2, %v1741_v32, %v5891_v20  ;;  %v1925_v42 = vadd.f32 %v1746_v62, %v1298_v9  ;;  %v1290_v16 = vsel %vm969_vm2, %v1289_v1, %v5886_v38  ;;  %v5896_v38 = vld [vmem:[#allocation11_spill] sm:$0xff]  ;;  %v5900_v1 = vld [vmem:[#allocation10_spill] sm:$0xff] }
 0x155   : > { %v1919_v21 = vadd.f32 %v1742_v49, %v1294_v50  ;;  %v1737_v52 = vrot.slane %v1720_v63, 4  ;;  %v5129_v54 = vperm.slane %v5893_v18, %v4157_v47  ;;  %v5894_v4 = vrot.slane %v4736_v7, 4  ;;  %v5901_v50 = vld [vmem:[#allocation12_spill] sm:$0xff]  ;;  %1932 = vadd.xlane.f32.xlu0 %v1931_v14  ;;  %1917 = vadd.xlane.f32.xlu1 %v1916_v45  ;;  %v5908_v14 = vld [vmem:[#allocation14_spill] sm:$0xff] }
 0x156   : > { %v1188_v0 = vsel %vm969_vm2, %v5114_v24, %v5892_v57  ;;  %v5895_v28 = vrot.slane %v4891_v51, 4  ;;  %v5897_v23 = vrot.slane %v5896_v38, 4  ;;  %v5899_v63 = vrot.slane %v4776_v27, 4  ;;  %v5909_v45 = vld [vmem:[#allocation16_spill] sm:$0xff] }
 0x157   : > { %v1636_v6 = vsel %vm969_vm2, %v5119_v41, %v5894_v4  ;;  %v1738_v17 = vsel %vm969_vm2, %v1737_v52, %v4666_v13  ;;  %v1407_v32 = vrot.slane %v5129_v54, 4  ;;  %v5902_v9 = vrot.slane %v5901_v50, 4  ;;  %v5905_v52 = vld [vmem:[#allocation17_spill] sm:$0xff] }
 0x158   : > { %v1380_v29 = vsel %vm969_vm2, %v4923_v36, %v5895_v28  ;;  %v1804_v10 = vsel %vm969_vm2, %v5898_v56, %v5897_v23  ;;  %v1828_v48 = vsel %vm969_vm2, %v5036_v35, %v5899_v63  ;;  %v1904_v58 = vadd.f32 %v1636_v6, %v1188_v0  ;;  %v5904_v0 = vld [vmem:[#allocation8_spill] sm:$0xff] }
 0x159   : > { %v5150_v31 = vperm.slane %v1380_v29, %v4157_v47  ;;  %v5153_v39 = vadd.f32 %v1738_v17, %v1290_v16  ;;  %v5156_v3 = vperm.slane %v1804_v10, %v4157_v47  ;;  %v5159_v19 = vperm.slane %v1828_v48, %v4157_v47  ;;  %1866 = vadd.xlane.f32.xlu2 %v1865_v34 }
 0x15a   : > { %v1130_v62 = vsel %vm969_vm2, %v5902_v9, %v5900_v1  ;;  %v5903_v16 = vrot.slane %v4833_v26, 4  ;;  %v5906_v18 = vrot.slane %v5905_v52, 4  ;;  %v5907_v26 = vrot.slane %v4927_v5, 4 }
 0x15b   : > { %v1408_v13 = vsel %vm969_vm2, %v5150_v31, %v1407_v32  ;;  %v5168_v49 = vperm.slane %v1130_v62, %v4157_v47  ;;  %v1855_v6 = vrot.slane %v5156_v3, 4  ;;  %v5910_v63 = vrot.slane %v5909_v45, 4 }
 0x15c   : > { %v1154_v57 = vsel %vm969_vm2, %v5903_v16, %v4769_v60  ;;  %v1578_v4 = vsel %vm969_vm2, %v5906_v18, %v5904_v0  ;;  %v1602_v60 = vsel %vm969_vm2, %v5907_v26, %v4642_v25  ;;  %v5911_v17 = vrot.slane %v4923_v36, 4  ;;  %v5914_v18 = vld [vmem:[#allocation15_spill] sm:$0xff] }
 0x15d   : > { %v5180_v28 = vperm.slane %v1154_v57, %v4157_v47  ;;  %v5183_v29 = vperm.slane %v1578_v4, %v4157_v47  ;;  %v1179_v23 = vrot.slane %v5168_v49, 4  ;;  %v5191_v10 = vperm.slane %v1602_v60, %v4157_v47  ;;  %1920 = vadd.xlane.f32.xlu0 %v1919_v21  ;;  %1926 = vadd.xlane.f32.xlu1 %v1925_v42 }
 0x15e   : > { %v1354_v48 = vsel %vm969_vm2, %v5910_v63, %v5908_v14  ;;  %v1378_v32 = vsel %vm969_vm2, %v5911_v17, %v4891_v51  ;;  %v1856_v5 = vsel %vm969_vm2, %v5159_v19, %v1855_v6  ;;  %v5912_v36 = vrot.slane %v5898_v56, 4  ;;  %v5913_v56 = vld [vmem:[#allocation13_spill] sm:$0xff]  ;;  %v5918_v6 = vld [vmem:[#allocation23_spill] sm:$0xff] }
 0x15f   : > { %v1627_v25 = vrot.slane %v5183_v29, 4  ;;  %v5205_v1 = vperm.slane %v1354_v48, %v4157_v47  ;;  %v5208_v50 = vperm.slane %v1378_v32, %v4157_v47  ;;  %v1946_v9 = vadd.f32 %v1856_v5, %v1408_v13  ;;  %v5920_v17 = vld [vmem:[#allocation33_spill] sm:$0xff] }
 0x160   : > { %v1180_v62 = vsel %vm969_vm2, %v5180_v28, %v1179_v23  ;;  %v1802_v51 = vsel %vm969_vm2, %v5912_v36, %v5896_v38  ;;  %v1826_v16 = vsel %vm969_vm2, %v1825_v33, %v4776_v27  ;;  %v5915_v38 = vrot.slane %v5914_v18, 4  ;;  %v5917_v33 = vld [vmem:[#allocation9_spill] sm:$0xff] }
 0x161   : > { %v1628_v57 = vsel %vm969_vm2, %v5191_v10, %v1627_v25  ;;  %v1403_v0 = vrot.slane %v5205_v1, 4  ;;  %v5224_v34 = vperm.slane %v1802_v51, %v4157_v47  ;;  %v5227_v13 = vperm.slane %v1826_v16, %v4157_v47  ;;  %1905 = vadd.xlane.f32.xlu2 %v1904_v58 }
 0x162   : > { %v1892_v52 = vadd.f32 %v1628_v57, %v1180_v62  ;;  %v1366_v4 = vsel %vm969_vm2, %v5915_v38, %v5913_v56  ;;  %v5916_v27 = vrot.slane %v4904_v55, 4  ;;  %v5919_v26 = vrot.slane %v5918_v6, 4 }
 0x163   : > { %v1404_v23 = vsel %vm969_vm2, %v5208_v50, %v1403_v0  ;;  %v1851_v14 = vrot.slane %v5224_v34, 4  ;;  %v1372_v45 = vperm.slane %v1366_v4, %v4157_v47  ;;  %v1838_v32 = vsel %vm969_vm2, %v1837_v15, %v5920_v17 }
 0x164   : > { %v1390_v35 = vsel %vm969_vm2, %v5916_v27, %v4881_v61  ;;  %v1814_v60 = vsel %vm969_vm2, %v5919_v26, %v5917_v33  ;;  %v1181_v5 = vrot.slane %v5005_v44, 4  ;;  %v1629_v25 = vrot.slane %v5008_v40, 4 }
 0x165   : > { %v1396_v63 = vperm.slane %v1390_v35, %v4157_v47  ;;  %v1820_v48 = vperm.slane %v1814_v60, %v4157_v47  ;;  %v1852_v62 = vsel %vm969_vm2, %v5227_v13, %v1851_v14  ;;  %v1411_v36 = vrot.slane %v1372_v45, 4  ;;  %1914 = vadd.xlane.f32.xlu0 %v5153_v39  ;;  %1947 = vadd.xlane.f32.xlu1 %v1946_v9 }
 0x166   : > { %v1844_v51 = vperm.slane %v1838_v32, %v4157_v47  ;;  %v1940_v57 = vadd.f32 %v1852_v62, %v1404_v23  ;;  %v1182_v38 = vsel %vm969_vm2, %v1181_v5, %v5871_v22  ;;  %v1630_v15 = vsel %vm969_vm2, %v1629_v25, %v5873_v53 }
 0x167   : > { %v1409_v16 = vrot.slane %v1396_v63, 4  ;;  %v1859_v0 = vrot.slane %v1820_v48, 4  ;;  %v1412_v44 = vsel %vm969_vm2, %v1396_v63, %v1411_v36  ;;  %v1895_v40 = vadd.f32 %v1630_v15, %v1182_v38 }
 0x168   : > { %v1857_v21 = vrot.slane %v1844_v51, 4  ;;  %v1185_v27 = vrot.slane %v5114_v24, 4  ;;  %v1633_v35 = vrot.slane %v5119_v41, 4  ;;  %v5921_v26 = vrot.slane %v5913_v56, 4 }
 0x169   : > { %v1410_v42 = vsel %vm969_vm2, %v1409_v16, %v1372_v45  ;;  %v1860_v4 = vsel %vm969_vm2, %v1844_v51, %v1859_v0  ;;  %v5922_v14 = vrot.slane %v4881_v61, 4  ;;  %v5923_v63 = vrot.slane %v5917_v33, 4  ;;  %1893 = vadd.xlane.f32.xlu2 %v1892_v52 }
 0x16a   : > { %v1368_v22 = vsel %vm969_vm2, %v5914_v18, %v5921_v26  ;;  %v1952_v60 = vadd.f32 %v1860_v4, %v1412_v44  ;;  %v1858_v53 = vsel %vm969_vm2, %v1857_v21, %v1820_v48  ;;  %v1186_v24 = vsel %vm969_vm2, %v1185_v27, %v4718_v37 }
 0x16b   : > { %v1376_v23 = vperm.slane %v1368_v22, %v4157_v47  ;;  %v1392_v58 = vsel %vm969_vm2, %v4904_v55, %v5922_v14  ;;  %v1949_v45 = vadd.f32 %v1858_v53, %v1410_v42  ;;  %v1634_v41 = vsel %vm969_vm2, %v1633_v35, %v4736_v7 }
 0x16c   : > { %v1901_v56 = vadd.f32 %v1634_v41, %v1186_v24  ;;  %v1400_v18 = vperm.slane %v1392_v58, %v4157_v47  ;;  %v1816_v48 = vsel %vm969_vm2, %v5918_v6, %v5923_v63  ;;  %v5924_v61 = vrot.slane %v5920_v17, 4 }
 0x16d   : > { %v1824_v32 = vperm.slane %v1816_v48, %v4157_v47  ;;  %v1177_v5 = vrot.slane %v5180_v28, 4  ;;  %v1625_v7 = vrot.slane %v5191_v10, 4  ;;  %v1415_v33 = vrot.slane %v1376_v23, 4  ;;  %1941 = vadd.xlane.f32.xlu0 %v1940_v57  ;;  %1953 = vadd.xlane.f32.xlu1 %v1952_v60 }
 0x16e   : > { %v1840_v55 = vsel %vm969_vm2, %v5016_v8, %v5924_v61  ;;  %v1303_v25 = vrot.slane %v5882_v43, 4  ;;  %v1751_v6 = vrot.slane %v5885_v46, 4  ;;  %v1295_v17 = vrot.slane %v5890_v59, 4 }
 0x16f   : > { %v1848_v37 = vperm.slane %v1840_v55, %v4157_v47  ;;  %v1863_v62 = vrot.slane %v1824_v32, 4  ;;  %v1178_v8 = vsel %vm969_vm2, %v1177_v5, %v5168_v49  ;;  %v1626_v47 = vsel %vm969_vm2, %v1625_v7, %v5183_v29 }
 0x170   : > { %v1743_v28 = vrot.slane %v5891_v20, 4  ;;  %v1416_v10 = vsel %vm969_vm2, %v1400_v18, %v1415_v33  ;;  %v1889_v39 = vadd.f32 %v1626_v47, %v1178_v8  ;;  %v1304_v9 = vsel %vm969_vm2, %v5048_v11, %v1303_v25 }
 0x171   : > { %v1752_v43 = vsel %vm969_vm2, %v5057_v12, %v1751_v6  ;;  %v1864_v46 = vsel %vm969_vm2, %v1848_v37, %v1863_v62  ;;  %v1296_v49 = vsel %vm969_vm2, %v5090_v2, %v1295_v17  ;;  %1896 = vadd.xlane.f32.xlu2 %v1895_v40  ;;  %v1405_v11 = vrot.slane %v5150_v31, 4 }
 0x172   : > { %v1934_v59 = vadd.f32 %v1752_v43, %v1304_v9  ;;  %v1744_v29 = vsel %vm969_vm2, %v5095_v30, %v1743_v28  ;;  %v1958_v20 = vadd.f32 %v1864_v46, %v1416_v10  ;;  %v1853_v51 = vrot.slane %v5159_v19, 4 }
 0x173   : > { %v1922_v36 = vadd.f32 %v1744_v29, %v1296_v49  ;;  %v1406_v12 = vsel %vm969_vm2, %v1405_v11, %v5129_v54  ;;  %v1401_v2 = vrot.slane %v5208_v50, 4  ;;  %v1849_v30 = vrot.slane %v5227_v13, 4 }
 0x174   : > { %v1854_v52 = vsel %vm969_vm2, %v1853_v51, %v5156_v3  ;;  %v1413_v54 = vrot.slane %v1400_v18, 4  ;;  %v1861_v0 = vrot.slane %v1848_v37, 4  ;;  %v2025_v42 = vlaneseq }
 0x175   : > { %v1943_v16 = vadd.f32 %v1854_v52, %v1406_v12  ;;  %1950 = vadd.xlane.f32.xlu0 %v1949_v45  ;;  %v1402_v57 = vsel %vm969_vm2, %v1401_v2, %v5205_v1  ;;  %v1850_v31 = vsel %vm969_vm2, %v1849_v30, %v5224_v34 }
 0x176   : > { %v1937_v19 = vadd.f32 %v1850_v31, %v1402_v57  ;;  %v1414_v3 = vsel %vm969_vm2, %v1413_v54, %v1376_v23  ;;  %v1862_v38 = vsel %vm969_vm2, %v1861_v0, %v1824_v32  ;;  %v5325_v26 = vand.u32 127, %v2025_v42 }
 0x177   : > { %v1955_v15 = vadd.f32 %v1862_v38, %v1414_v3 }
 0x179   : > { %1902 = vadd.xlane.f32.xlu2 %v1901_v56 }
 0x17d   : > { %1959 = vadd.xlane.f32.xlu0 %v1958_v20 }
 0x181   : > { %1890 = vadd.xlane.f32.xlu2 %v1889_v39 }
 0x189   : > { %1935 = vadd.xlane.f32.xlu2 %v1934_v59 }
 0x191   : > { %1923 = vadd.xlane.f32.xlu2 %v1922_v36 }
 0x199   : > { %1944 = vadd.xlane.f32.xlu2 %v1943_v16 }
 0x1a1   : > { %1938 = vadd.xlane.f32.xlu2 %v1937_v19 }
 0x1a8   : > { %v1888_v44 = vpop.xlane.xlu1 %1887 }
 0x1a9   : > { %1956 = vadd.xlane.f32.xlu2 %v1955_v15  ;;  %v1968_v41 = vmul.f32 0.00390625, %v1888_v44 }
 0x1ab   : > { %v2034_v33 = vperm.slane %v1968_v41, %v5325_v26 }
 0x1ac   : > { %v1882_v50 = vpop.xlane.xlu2 %1881 }
 0x1ad   : > { %v1966_v23 = vmul.f32 0.00390625, %v1882_v50 }
 0x1af   : > { %v2032_v55 = vperm.slane %v1966_v23, %v5325_v26  ;;  %v5370_v23 = vld [vmem:[%s5706_s4 + $0x10] sm:$0xff] }
 0x1b0   : > { %v1873_v40 = vpop.xlane.xlu0 %1872  ;;  %v1876_v21 = vpop.xlane.xlu1 %1875 }
 0x1b1   : > { %v1963_v27 = vmul.f32 0.00390625, %v1873_v40  ;;  %v1964_v22 = vmul.f32 0.00390625, %v1876_v21 }
 0x1b3   : > { %v2029_v45 = vperm.slane %v1963_v27, %v5325_v26  ;;  %v2030_v56 = vperm.slane %v1964_v22, %v5325_v26 }
 0x1b4   : > { %v1885_v1 = vpop.xlane.xlu2 %1884 }
 0x1b5   : > { %v1967_v24 = vmul.f32 0.00390625, %v1885_v1 }
 0x1b7   : > { %v2033_v37 = vperm.slane %v1967_v24, %v5325_v26 }
 0x1b8   : > { %v1912_v63 = vpop.xlane.xlu0 %1911  ;;  %v1909_v47 = vpop.xlane.xlu1 %1908 }
 0x1b9   : > { %v1975_v16 = vmul.f32 0.00390625, %v1909_v47  ;;  %v1976_v30 = vmul.f32 0.00390625, %v1912_v63  ;;  %v5381_v63 = vld [vmem:[%s5706_s4 + $0x8] sm:$0xff] }
 0x1bb   : > { %v2041_v15 = vperm.slane %v1975_v16, %v5325_v26 }
 0x1bc   : > { %v1870_v13 = vpop.xlane.xlu2 %1869 }
 0x1bd   : > { %v1962_v4 = vmul.f32 0.00390625, %v1870_v13  ;;  %v2042_v13 = vperm.slane %v1976_v30, %v5325_v26 }
 0x1bf   : > { %v2028_v14 = vperm.slane %v1962_v4, %v5325_v26 }
 0x1c0   : > { %v1900_v62 = vpop.xlane.xlu0 %1899  ;;  %v1930_v9 = vpop.xlane.xlu1 %1929 }
 0x1c1   : > { %v1972_v29 = vmul.f32 0.00390625, %v1900_v62 }
 0x1c3   : > { %v2038_v57 = vperm.slane %v1972_v29, %v5325_v26 }
 0x1c4   : > { %v1879_v34 = vpop.xlane.xlu2 %1878 }
 0x1c5   : > { %v1965_v53 = vmul.f32 0.00390625, %v1879_v34 }
 0x1c7   : > { %v2031_v48 = vperm.slane %v1965_v53, %v5325_v26  ;;  %v5365_v53 = vld [vmem:[%s5706_s4 + $0x18] sm:$0xff] }
 0x1c8   : > { %v1933_v10 = vpop.xlane.xlu0 %1932  ;;  %v1918_v11 = vpop.xlane.xlu1 %1917  ;;  %2187 = vmatpush.msra.mxu1 %v5365_v53  ;;  %2250 = vmatpush.msra.mxu2 %v5365_v53 }
 0x1c9   : > { %v1978_v42 = vmul.f32 0.00390625, %v1918_v11  ;;  %2320 = vmatpush.msrb.mxu3 %v5365_v53 }
 0x1ca   : > { %2188 = vmatpush.msra.mxu1 %v5370_v23  ;;  %2251 = vmatpush.msra.mxu2 %v5370_v23 }
 0x1cb   : > { %v2044_v22 = vperm.slane %v1978_v42, %v5325_v26  ;;  %2321 = vmatpush.msrb.mxu3 %v5370_v23 }
 0x1cc   : > { %v1867_v35 = vpop.xlane.xlu2 %1866  ;;  %2189 = vmatpush.msra.mxu1 %v5381_v63  ;;  %2252 = vmatpush.msra.mxu2 %v5381_v63 }
 0x1cd   : > { %v1961_v60 = vmul.f32 0.00390625, %v1867_v35  ;;  %2322 = vmatpush.msrb.mxu3 %v5381_v63 }
 0x1cf   : > { %v2027_v58 = vperm.slane %v1961_v60, %v5325_v26  ;;  %v3601_v60 = vld [vmem:[%s5705_s3 + $0x8] sm:$0xff] }
 0x1d0   : > { %v1921_v43 = vpop.xlane.xlu0 %1920  ;;  %v1927_v4 = vpop.xlane.xlu1 %1926  ;;  %2161 = vmatpush.bf16.msra.mxu0 %v3601_v60 }
 0x1d1   : > { %v2060_v18 = vsel %vm2059_vm3, %v2028_v14, %v2027_v58  ;;  %v1979_v35 = vmul.f32 0.00390625, %v1921_v43  ;;  %v1981_v14 = vmul.f32 0.00390625, %v1927_v4 }
 0x1d2   : > { %v2062_v61 = vsel %vm2061_vm4, %v2029_v45, %v2060_v18  ;;  %v1982_v45 = vmul.f32 0.00390625, %v1930_v9  ;;  %v3600_v18 = vld [vmem:[%s5705_s3] sm:$0xff] }
 0x1d3   : > { %v2064_v32 = vsel %vm2063_vm5, %v2030_v56, %v2062_v61  ;;  %v2045_v61 = vperm.slane %v1979_v35, %v5325_v26 }
 0x1d4   : > { %v1906_v5 = vpop.xlane.xlu2 %1905  ;;  %v2066_v7 = vsel %vm2065_vm6, %v2031_v48, %v2064_v32  ;;  %v1983_v48 = vmul.f32 0.00390625, %v1933_v10  ;;  %2162 = vmatpush.bf16.msra.mxu0 %v3600_v18 }
 0x1d5   : > { %v2068_v25 = vsel %vm2067_vm7, %v2032_v55, %v2066_v7  ;;  %v1974_v51 = vmul.f32 0.00390625, %v1906_v5  ;;  %v2047_v5 = vperm.slane %v1981_v14, %v5325_v26 }
 0x1d6   : > { %v2070_v6 = vsel %vm2069_vm8, %v2033_v37, %v2068_v25  ;;  %v5391_v37 = vld [vmem:[%s5706_s4] sm:$0xff] }
 0x1d7   : > { %v2072_v17 = vsel %vm2071_vm9, %v2034_v33, %v2070_v6  ;;  %v2040_v3 = vperm.slane %v1974_v51, %v5325_v26  ;;  %v2048_v33 = vperm.slane %v1982_v45, %v5325_v26  ;;  %v2049_v6 = vperm.slane %v1983_v48, %v5325_v26  ;;  %2190 = vmatpush.msra.mxu1 %v5391_v37 }
 0x1d8   : > { %2098 = vxpose.xlu1.b32.start [1/4] (short) (narrow) %v2072_v17, 8  ;;  %v1915_v19 = vpop.xlane.xlu0 %1914  ;;  %2253 = vmatpush.msra.mxu2 %v5391_v37  ;;  %v1948_v10 = vpop.xlane.xlu1 %1947 }
 0x1d9   : > { %v1977_v44 = vmul.f32 0.00390625, %v1915_v19  ;;  %2323 = vmatpush.msrb.mxu3 %v5391_v37  ;;  %2390 = vmatpush.msrb.mxu1 %v5365_v53 }
 0x1da   : > { %2460 = vmatpush.msrb.mxu2 %v5365_v53  ;;  %2600 = vmatpush.msrb.mxu0 %v5365_v53 }
 0x1db   : > { %v2043_v27 = vperm.slane %v1977_v44, %v5325_v26  ;;  %2530 = vmatpush.msra.mxu3 %v5365_v53  ;;  %2391 = vmatpush.msrb.mxu1 %v5370_v23 }
 0x1dc   : > { %v1894_v8 = vpop.xlane.xlu2 %1893  ;;  %2461 = vmatpush.msrb.mxu2 %v5370_v23  ;;  %2601 = vmatpush.msrb.mxu0 %v5370_v23 }
 0x1dd   : > { %v1970_v46 = vmul.f32 0.00390625, %v1894_v8  ;;  %v2080_v24 = vsel %vm2059_vm3, %v2044_v22, %v2043_v27  ;;  %2392 = vmatpush.msrb.mxu1 %v5381_v63  ;;  %2531 = vmatpush.msra.mxu3 %v5370_v23 }
 0x1de   : > { %v2081_v7 = vsel %vm2061_vm4, %v2045_v61, %v2080_v24  ;;  %2462 = vmatpush.msrb.mxu2 %v5381_v63  ;;  %2602 = vmatpush.msrb.mxu0 %v5381_v63 }
 0x1df   : > { %v2036_v12 = vperm.slane %v1970_v46, %v5325_v26  ;;  %2393 = vmatpush.msrb.mxu1 %v5391_v37  ;;  %2532 = vmatpush.msra.mxu3 %v5381_v63 }
 0x1e0   : > { %v1942_v41 = vpop.xlane.xlu0 %1941  ;;  %2463 = vmatpush.msrb.mxu2 %v5391_v37  ;;  %2603 = vmatpush.msrb.mxu0 %v5391_v37 }
 0x1e1   : > { %v1986_v43 = vmul.f32 0.00390625, %v1942_v41  ;;  %2533 = vmatpush.msra.mxu3 %v5391_v37 }
 0x1e4   : > { %v1897_v28 = vpop.xlane.xlu2 %1896 }
 0x1e5   : > { %v1971_v59 = vmul.f32 0.00390625, %v1897_v28 }
 0x1e7   : > { %v2037_v2 = vperm.slane %v1971_v59, %v5325_v26 }
 0x1e8   : > { %v1951_v9 = vpop.xlane.xlu0 %1950 }
 0x1e9   : > { %v1989_v11 = vmul.f32 0.00390625, %v1951_v9 }
 0x1ec   : > { %v1903_v39 = vpop.xlane.xlu2 %1902 }
 0x1ed   : > { %v1973_v36 = vmul.f32 0.00390625, %v1903_v39 }
 0x1ef   : > { %v2039_v54 = vperm.slane %v1973_v36, %v5325_v26  ;;  %v1954_v36 = vpop.xlane.xlu1 %1953 }
 0x1f0   : > { %v1960_v16 = vpop.xlane.xlu0 %1959  ;;  %v1990_v30 = vmul.f32 0.00390625, %v1954_v36 }
 0x1f4   : > { %v1891_v49 = vpop.xlane.xlu2 %1890 }
 0x1f5   : > { %v1969_v20 = vmul.f32 0.00390625, %v1891_v49  ;;  %v1988_v49 = vmul.f32 0.00390625, %v1948_v10 }
 0x1f7   : > { %v2035_v52 = vperm.slane %v1969_v20, %v5325_v26  ;;  %v2052_v20 = vperm.slane %v1986_v43, %v5325_v26 }
 0x1f9   : > { %v2073_v31 = vsel %vm2059_vm3, %v2036_v12, %v2035_v52  ;;  %v2054_v52 = vperm.slane %v1988_v49, %v5325_v26 }
 0x1fa   : > { %v2074_v0 = vsel %vm2061_vm4, %v2037_v2, %v2073_v31  ;;  %v2055_v31 = vperm.slane %v1989_v11, %v5325_v26 }
 0x1fb   : > { %v2075_v38 = vsel %vm2063_vm5, %v2038_v57, %v2074_v0 }
 0x1fc   : > { %v1936_v50 = vpop.xlane.xlu2 %1935  ;;  %v2076_v1 = vsel %vm2065_vm6, %v2039_v54, %v2075_v38  ;;  %v1992_v54 = vmul.f32 0.00390625, %v1960_v16 }
 0x1fd   : > { %v2077_v34 = vsel %vm2067_vm7, %v2040_v3, %v2076_v1  ;;  %v1984_v55 = vmul.f32 0.00390625, %v1936_v50 }
 0x1fe   : > { %v2078_v40 = vsel %vm2069_vm8, %v2041_v15, %v2077_v34  ;;  %v2056_v15 = vperm.slane %v1990_v30, %v5325_v26  ;;  %v2058_v1 = vperm.slane %v1992_v54, %v5325_v26 }
 0x1ff   : > { %v2079_v21 = vsel %vm2071_vm9, %v2042_v13, %v2078_v40  ;;  %v2050_v62 = vperm.slane %v1984_v55, %v5325_v26  ;;  %v3849_v40 = vmov 0.0  }
 0x200   : > { %2099 = vxpose.xlu1.b32.cont [2/4] (short) (narrow) %v2079_v21, 8  ;;  %2191 = vmatmul.f32.vlgmr.msra.gmra.mxu1 %v3849_v40  ;;  %v3652_v21 = vld [vmem:[%s5707_s5] ss:$0 sm:$0xff] }
 0x201   : > { %2670 = vmatpush.msra.mxu1 %v5365_v53 }
 0x203   : > { %2671 = vmatpush.msra.mxu1 %v5370_v23 }
 0x204   : > { %v1924_v58 = vpop.xlane.xlu2 %1923 }
 0x205   : > { %v1980_v56 = vmul.f32 0.00390625, %v1924_v58  ;;  %2672 = vmatpush.msra.mxu1 %v5381_v63 }
 0x207   : > { %v2046_v32 = vperm.slane %v1980_v56, %v5325_v26  ;;  %2673 = vmatpush.msra.mxu1 %v5391_v37 }
 0x209   : > { %v2082_v25 = vsel %vm2063_vm5, %v2046_v32, %v2081_v7 }
 0x20a   : > { %v2083_v17 = vsel %vm2065_vm6, %v2047_v5, %v2082_v25 }
 0x20b   : > { %v2084_v8 = vsel %vm2067_vm7, %v2048_v33, %v2083_v17 }
 0x20c   : > { %v1945_v47 = vpop.xlane.xlu2 %1944  ;;  %v2085_v28 = vsel %vm2069_vm8, %v2049_v6, %v2084_v8 }
 0x20d   : > { %v2086_v39 = vsel %vm2071_vm9, %v2050_v62, %v2085_v28  ;;  %v1987_v46 = vmul.f32 0.00390625, %v1945_v47 }
 0x20e   : > { %2100 = vxpose.xlu1.b32.cont [3/4] (short) (narrow) %v2086_v39, 8 }
 0x20f   : > { %v2053_v12 = vperm.slane %v1987_v46, %v5325_v26 }
 0x214   : > { %v1939_v59 = vpop.xlane.xlu2 %1938 }
 0x215   : > { %v1985_v29 = vmul.f32 0.00390625, %v1939_v59 }
 0x217   : > { %v2051_v51 = vperm.slane %v1985_v29, %v5325_v26 }
 0x219   : > { %v2087_v2 = vsel %vm2059_vm3, %v2052_v20, %v2051_v51 }
 0x21a   : > { %v2088_v57 = vsel %vm2061_vm4, %v2053_v12, %v2087_v2 }
 0x21b   : > { %v2089_v19 = vsel %vm2063_vm5, %v2054_v52, %v2088_v57 }
 0x21c   : > { %v1957_v0 = vpop.xlane.xlu2 %1956  ;;  %v2090_v38 = vsel %vm2065_vm6, %v2055_v31, %v2089_v19 }
 0x21d   : > { %v1991_v3 = vmul.f32 0.00390625, %v1957_v0  ;;  %v2091_v13 = vsel %vm2067_vm7, %v2056_v15, %v2090_v38 }
 0x21f   : > { %v2057_v50 = vperm.slane %v1991_v3, %v5325_v26 }
 0x221   : > { %v2092_v44 = vsel %vm2069_vm8, %v2057_v50, %v2091_v13  ;;  %vm2722_vm8 = vcmask 1040384  }
 0x222   : > { %v2093_v34 = vsel %vm2071_vm9, %v2058_v1, %v2092_v44 }
 0x223   : > { %2101 = vxpose.xlu1.b32.end [4/4] (short) (narrow) %v2093_v34, 8 }
 0x27d   : > { %v2192_v27 = vpop.f32.mrf.mxu1 }
 0x2af   : > { %v2114_v42 = vpop.trf.xlu1 }
 0x2b0   : > { %v2130_v26 = vpack.c.bf16 %v2114_v42, %v2114_v42 }
 0x2b2   : > { %3553 = vmatmul.msk.bf16.vlgmr.msra.gmra.mxu0 %vm2151_vm10, %v2130_v26 }
 0x32f   : > { %v2164_v4 = vpop.f32.mrf.mxu0 }
 0x330   : > { %v5450_v35 = vadd.f32 %v3652_v21, %v2164_v4 }
 0x332   : > { %v2195_v22 = vadd.f32 %v2192_v27, %v5450_v35 }
 0x334   : > { %3654 = vtanh.f32 %v2195_v22  ;;  %v3554_v23 = vmul.f32 -1.442695, %v2195_v22 }
 0x336   : > { %3656 = vpow2.f32 %v3554_v23 }
 0x337   : > { %v2166_v60 = vpop.f32.mrf.mxu0 }
 0x33a   : > { %v3655_v53 = vpop.eup %3654 }
 0x33b   : > { %2218 = vrot.lane.b32.xlu2 %v3655_v53, %s5776_s16 }
 0x33c   : > { %v3657_v14 = vpop.eup %3656 }
 0x33d   : > { %v2199_v58 = vadd.f32 1.0, %v3657_v14 }
 0x33f   : > { %3658 = vrcp.f32 %v2199_v58  ;;  %v2211_v63 = vand.u32 2147483648, %v2199_v58  ;;  %vm2205_vm12 = vweird.f32 %v2199_v58  ;;  %v2209_v48 = vand.u32 2147483647, %v2199_v58 }
 0x341   : > { %v2212_v55 = vor.u32 1.1754944e-38, %v2211_v63  ;;  %vm2210_vm14 = vcmp.eq.f32.partialorder %v2209_v48, 8.507059e+37 }
 0x345   : > { %v3659_v45 = vpop.eup %3658 }
 0x346   : > { %v2201_v24 = vmul.f32 %v3659_v45, %v2199_v58  ;;  %vm2206_vm11 = vweird.f32 %v3659_v45 }
 0x347   : > { %vm2207_vm13 = vmor %vm2205_vm12, %vm2206_vm11 }
 0x348   : > { %v2202_v41 = vsub.f32 1.0, %v2201_v24 }
 0x34a   : > { %v2203_v56 = vmul.f32 %v3659_v45, %v2202_v41 }
 0x34c   : > { %v2204_v18 = vadd.f32 %v3659_v45, %v2203_v56 }
 0x34e   : > { %v2208_v61 = vsel %vm2207_vm13, %v3659_v45, %v2204_v18  ;;  %vm2725_vm13 = vcmask 1042432  }
 0x34f   : > { %v2213_v37 = vsel %vm2210_vm14, %v2212_v55, %v2208_v61 }
 0x350   : > { %v2216_v7 = vmul.f32 0.0, %v2213_v37 }
 0x395   : > { %v2219_v32 = vpop.permute.xlu2 %2218 }
 0x396   : > { %v2221_v5 = vmul.f32 %v2219_v32, %v2213_v37 }
 0x398   : > { %2223 = vrot.lane.b32.xlu0 %v2221_v5, %s5774_s23 }
 0x40a   : > { %v2224_v33 = vpop.permute.xlu0 %2223 }
 0x40b   : > { %v2226_v25 = vadd.f32 %v2224_v33, %v2216_v7 }
 0x40d   : > { %3660 = vtanh.f32 %v2226_v25  ;;  %v2283_v57 = vrot.slane %v2226_v25, 7 }
 0x413   : > { %v3661_v6 = vpop.eup %3660 }
 0x414   : > { %2229 = vrot.lane.b32.xlu0 %v3661_v6, %s5776_s16 }
 0x486   : > { %v2230_v17 = vpop.permute.xlu0 %2229 }
 0x487   : > { %v5456_v62 = vmul.f32 %v2230_v17, %v2213_v37 }
 0x489   : > { %2234 = vrot.lane.b32.xlu2 %v5456_v62, %s5774_s23 }
 0x4e3   : > { %v2235_v8 = vpop.permute.xlu2 %2234 }
 0x4e4   : > { %3555 = vmatmul.msk.f32.vlgmr.msra.gmra.mxu2 %vm2151_vm10, %v2235_v8 }
 0x567   : > { %v2255_v47 = vpop.f32.mrf.mxu2 }
 0x568   : > { %v2259_v28 = vrot.slane %v2255_v47, 7 }
 0x56a   : > { %v2261_v10 = vadd.f32 %v2259_v28, %v5450_v35 }
 0x56c   : > { %3662 = vtanh.f32 %v2261_v10  ;;  %v3556_v9 = vmul.f32 -1.442695, %v2261_v10 }
 0x56e   : > { %3664 = vpow2.f32 %v3556_v9 }
 0x572   : > { %v3663_v39 = vpop.eup %3662 }
 0x573   : > { %2287 = vrot.lane.b32.xlu0 %v3663_v39, %s5776_s16 }
 0x574   : > { %v3665_v43 = vpop.eup %3664 }
 0x575   : > { %v2265_v46 = vadd.f32 1.0, %v3665_v43 }
 0x577   : > { %3666 = vrcp.f32 %v2265_v46  ;;  %v2277_v11 = vand.u32 2147483648, %v2265_v46  ;;  %vm2271_vm1 = vweird.f32 %v2265_v46  ;;  %v2275_v51 = vand.u32 2147483647, %v2265_v46 }
 0x579   : > { %v2278_v52 = vor.u32 1.1754944e-38, %v2277_v11  ;;  %vm2276_vm3 = vcmp.eq.f32.partialorder %v2275_v51, 8.507059e+37 }
 0x57d   : > { %v3667_v59 = vpop.eup %3666 }
 0x57e   : > { %v2267_v49 = vmul.f32 %v3667_v59, %v2265_v46  ;;  %vm2272_vm15 = vweird.f32 %v3667_v59 }
 0x57f   : > { %vm2273_vm2 = vmor %vm2271_vm1, %vm2272_vm15 }
 0x580   : > { %v2268_v29 = vsub.f32 1.0, %v2267_v49 }
 0x582   : > { %v2269_v20 = vmul.f32 %v3667_v59, %v2268_v29 }
 0x584   : > { %v2270_v36 = vadd.f32 %v3667_v59, %v2269_v20 }
 0x586   : > { %v2274_v12 = vsel %vm2273_vm2, %v3667_v59, %v2270_v36 }
 0x587   : > { %v2279_v2 = vsel %vm2276_vm3, %v2278_v52, %v2274_v12  ;;  %vm2727_vm3 = vcmask 1043456  }
 0x588   : > { %v2285_v31 = vmul.f32 %v2283_v57, %v2279_v2 }
 0x5e5   : > { %v2288_v16 = vpop.permute.xlu0 %2287 }
 0x5e6   : > { %v2290_v30 = vmul.f32 %v2288_v16, %v2279_v2 }
 0x5e8   : > { %2292 = vrot.lane.b32.xlu2 %v2290_v30, %s5774_s23 }
 0x642   : > { %v2293_v19 = vpop.permute.xlu2 %2292 }
 0x643   : > { %v2295_v54 = vadd.f32 %v2293_v19, %v2285_v31 }
 0x645   : > { %3668 = vtanh.f32 %v2295_v54  ;;  %v2353_v18 = vrot.slane %v2295_v54, 7 }
 0x64b   : > { %v3669_v0 = vpop.eup %3668 }
 0x64c   : > { %2298 = vrot.lane.b32.xlu0 %v3669_v0, %s5776_s16 }
 0x6be   : > { %v2299_v3 = vpop.permute.xlu0 %2298 }
 0x6bf   : > { %v2301_v38 = vmul.f32 %v2299_v3, %v2279_v2 }
 0x6c1   : > { %v2303_v15 = vrot.slane %v2301_v38, 1  ;;  %v2723_v5 = vsel %vm2722_vm8, %v5456_v62, %v2301_v38  ;;  %vm2729_vm8 = vcmask 1044480  }
 0x6c3   : > { %2304 = vrot.lane.b32.xlu2 %v2303_v15, %s5774_s23 }
 0x71d   : > { %v2305_v50 = vpop.permute.xlu2 %2304 }
 0x71e   : > { %3557 = vmatmul.msk.f32.vlgmr.msrb.gmra.mxu3 %vm2151_vm10, %v2305_v50 }
 0x7a1   : > { %v2325_v1 = vpop.f32.mrf.mxu3 }
 0x7a2   : > { %v2329_v13 = vrot.slane %v2325_v1, 6 }
 0x7a4   : > { %v2331_v44 = vadd.f32 %v2329_v13, %v5450_v35 }
 0x7a6   : > { %3670 = vtanh.f32 %v2331_v44  ;;  %v3558_v42 = vmul.f32 -1.442695, %v2331_v44 }
 0x7a8   : > { %3672 = vpow2.f32 %v3558_v42 }
 0x7ac   : > { %v3671_v34 = vpop.eup %3670 }
 0x7ad   : > { %2357 = vrot.lane.b32.xlu0 %v3671_v34, %s5776_s16 }
 0x7ae   : > { %v3673_v26 = vpop.eup %3672 }
 0x7af   : > { %v2335_v21 = vadd.f32 1.0, %v3673_v26 }
 0x7b1   : > { %3674 = vrcp.f32 %v2335_v21  ;;  %v2347_v23 = vand.u32 2147483648, %v2335_v21  ;;  %vm2341_vm5 = vweird.f32 %v2335_v21  ;;  %v2345_v14 = vand.u32 2147483647, %v2335_v21 }
 0x7b3   : > { %v2348_v45 = vor.u32 1.1754944e-38, %v2347_v23  ;;  %vm2346_vm7 = vcmp.eq.f32.partialorder %v2345_v14, 8.507059e+37 }
 0x7b7   : > { %v3675_v4 = vpop.eup %3674 }
 0x7b8   : > { %v2337_v27 = vmul.f32 %v3675_v4, %v2335_v21  ;;  %vm2342_vm4 = vweird.f32 %v3675_v4 }
 0x7b9   : > { %vm2343_vm6 = vmor %vm2341_vm5, %vm2342_vm4 }
 0x7ba   : > { %v2338_v22 = vsub.f32 1.0, %v2337_v27 }
 0x7bc   : > { %v2339_v60 = vmul.f32 %v3675_v4, %v2338_v22 }
 0x7be   : > { %v2340_v53 = vadd.f32 %v3675_v4, %v2339_v60 }
 0x7c0   : > { %v2344_v58 = vsel %vm2343_vm6, %v3675_v4, %v2340_v53 }
 0x7c1   : > { %v2349_v41 = vsel %vm2346_vm7, %v2348_v45, %v2344_v58 }
 0x7c2   : > { %v2355_v63 = vmul.f32 %v2353_v18, %v2349_v41 }
 0x81f   : > { %v2358_v24 = vpop.permute.xlu0 %2357 }
 0x820   : > { %v2360_v56 = vmul.f32 %v2358_v24, %v2349_v41 }
 0x822   : > { %2362 = vrot.lane.b32.xlu2 %v2360_v56, %s5774_s23 }
 0x87c   : > { %v2363_v48 = vpop.permute.xlu2 %2362 }
 0x87d   : > { %v2365_v61 = vadd.f32 %v2363_v48, %v2355_v63 }
 0x87f   : > { %3676 = vtanh.f32 %v2365_v61  ;;  %v2423_v52 = vrot.slane %v2365_v61, 7 }
 0x885   : > { %v3677_v55 = vpop.eup %3676 }
 0x886   : > { %2368 = vrot.lane.b32.xlu0 %v3677_v55, %s5776_s16 }
 0x8f8   : > { %v2369_v32 = vpop.permute.xlu0 %2368 }
 0x8f9   : > { %v2371_v37 = vmul.f32 %v2369_v32, %v2349_v41 }
 0x8fb   : > { %v2373_v7 = vrot.slane %v2371_v37, 2  ;;  %v2724_v33 = vsel %vm567_vm0, %v2723_v5, %v2371_v37 }
 0x8fd   : > { %2374 = vrot.lane.b32.xlu2 %v2373_v7, %s5774_s23 }
 0x957   : > { %v2375_v25 = vpop.permute.xlu2 %2374 }
 0x958   : > { %3559 = vmatmul.msk.f32.vlgmr.msrb.gmra.mxu1 %vm2151_vm10, %v2375_v25 }
 0x9d5   : > { %v2395_v6 = vpop.f32.mrf.mxu1 }
 0x9d6   : > { %v2399_v17 = vrot.slane %v2395_v6, 5 }
 0x9d8   : > { %v2401_v8 = vadd.f32 %v2399_v17, %v5450_v35 }
 0x9da   : > { %3678 = vtanh.f32 %v2401_v8  ;;  %v3560_v28 = vmul.f32 -1.442695, %v2401_v8 }
 0x9dc   : > { %3680 = vpow2.f32 %v3560_v28 }
 0x9e0   : > { %v3679_v47 = vpop.eup %3678 }
 0x9e1   : > { %2427 = vrot.lane.b32.xlu0 %v3679_v47, %s5776_s16 }
 0x9e2   : > { %v3681_v10 = vpop.eup %3680 }
 0x9e3   : > { %v2405_v62 = vadd.f32 1.0, %v3681_v10 }
 0x9e5   : > { %3682 = vrcp.f32 %v2405_v62  ;;  %v2417_v49 = vand.u32 2147483648, %v2405_v62  ;;  %vm2411_vm9 = vweird.f32 %v2405_v62  ;;  %v2415_v29 = vand.u32 2147483647, %v2405_v62 }
 0x9e7   : > { %v2418_v36 = vor.u32 1.1754944e-38, %v2417_v49  ;;  %vm2416_vm12 = vcmp.eq.f32.partialorder %v2415_v29, 8.507059e+37 }
 0x9eb   : > { %v3683_v39 = vpop.eup %3682 }
 0x9ec   : > { %v2407_v9 = vmul.f32 %v3683_v39, %v2405_v62  ;;  %vm2412_vm0 = vweird.f32 %v3683_v39 }
 0x9ed   : > { %vm2413_vm11 = vmor %vm2411_vm9, %vm2412_vm0 }
 0x9ee   : > { %v2408_v43 = vsub.f32 1.0, %v2407_v9 }
 0x9f0   : > { %v2409_v46 = vmul.f32 %v3683_v39, %v2408_v43 }
 0x9f2   : > { %v2410_v59 = vadd.f32 %v3683_v39, %v2409_v46 }
 0x9f4   : > { %v2414_v20 = vsel %vm2413_vm11, %v3683_v39, %v2410_v59 }
 0x9f5   : > { %v2419_v51 = vsel %vm2416_vm12, %v2418_v36, %v2414_v20 }
 0x9f6   : > { %v2425_v16 = vmul.f32 %v2423_v52, %v2419_v51 }
 0xa53   : > { %v2428_v11 = vpop.permute.xlu0 %2427 }
 0xa54   : > { %v2430_v12 = vmul.f32 %v2428_v11, %v2419_v51 }
 0xa56   : > { %2432 = vrot.lane.b32.xlu2 %v2430_v12, %s5774_s23 }
 0xab0   : > { %v2433_v2 = vpop.permute.xlu2 %2432 }
 0xab1   : > { %v2435_v30 = vadd.f32 %v2433_v2, %v2425_v16 }
 0xab3   : > { %3684 = vtanh.f32 %v2435_v30  ;;  %v2493_v24 = vrot.slane %v2435_v30, 7 }
 0xab9   : > { %v3685_v57 = vpop.eup %3684 }
 0xaba   : > { %2438 = vrot.lane.b32.xlu0 %v3685_v57, %s5776_s16 }
 0xb2c   : > { %v2439_v31 = vpop.permute.xlu0 %2438 }
 0xb2d   : > { %v2441_v19 = vmul.f32 %v2439_v31, %v2419_v51 }
 0xb2f   : > { %v2443_v54 = vrot.slane %v2441_v19, 3  ;;  %v2726_v0 = vsel %vm2725_vm13, %v2724_v33, %v2441_v19  ;;  %vm2731_vm13 = vcmask 1045504  }
 0xb31   : > { %2444 = vrot.lane.b32.xlu2 %v2443_v54, %s5774_s23 }
 0xb8b   : > { %v2445_v3 = vpop.permute.xlu2 %2444 }
 0xb8c   : > { %3561 = vmatmul.msk.f32.vlgmr.msrb.gmra.mxu2 %vm2151_vm10, %v2445_v3 }
 0xc0f   : > { %v2465_v38 = vpop.f32.mrf.mxu2 }
 0xc10   : > { %v2469_v15 = vrot.slane %v2465_v38, 4 }
 0xc12   : > { %v2471_v50 = vadd.f32 %v2469_v15, %v5450_v35 }
 0xc14   : > { %3686 = vtanh.f32 %v2471_v50  ;;  %v3562_v13 = vmul.f32 -1.442695, %v2471_v50 }
 0xc16   : > { %3688 = vpow2.f32 %v3562_v13 }
 0xc1a   : > { %v3687_v1 = vpop.eup %3686 }
 0xc1b   : > { %2497 = vrot.lane.b32.xlu1 %v3687_v1, %s5776_s16 }
 0xc1c   : > { %v3689_v44 = vpop.eup %3688 }
 0xc1d   : > { %v2475_v34 = vadd.f32 1.0, %v3689_v44 }
 0xc1f   : > { %3690 = vrcp.f32 %v2475_v34  ;;  %v2487_v22 = vand.u32 2147483648, %v2475_v34  ;;  %vm2481_vm15 = vweird.f32 %v2475_v34  ;;  %v2485_v60 = vand.u32 2147483647, %v2475_v34 }
 0xc21   : > { %v2488_v23 = vor.u32 1.1754944e-38, %v2487_v22  ;;  %vm2486_vm2 = vcmp.eq.f32.partialorder %v2485_v60, 8.507059e+37 }
 0xc25   : > { %v3691_v42 = vpop.eup %3690 }
 0xc26   : > { %v2477_v26 = vmul.f32 %v3691_v42, %v2475_v34  ;;  %vm2482_vm14 = vweird.f32 %v3691_v42 }
 0xc27   : > { %vm2483_vm1 = vmor %vm2481_vm15, %vm2482_vm14 }
 0xc28   : > { %v2478_v21 = vsub.f32 1.0, %v2477_v26 }
 0xc2a   : > { %v2479_v4 = vmul.f32 %v3691_v42, %v2478_v21 }
 0xc2c   : > { %v2480_v27 = vadd.f32 %v3691_v42, %v2479_v4 }
 0xc2e   : > { %v2484_v53 = vsel %vm2483_vm1, %v3691_v42, %v2480_v27 }
 0xc2f   : > { %v2489_v58 = vsel %vm2486_vm2, %v2488_v23, %v2484_v53 }
 0xc30   : > { %v2495_v41 = vmul.f32 %v2493_v24, %v2489_v58 }
 0xc8d   : > { %v2498_v14 = vpop.permute.xlu1 %2497 }
 0xc8e   : > { %v2500_v45 = vmul.f32 %v2498_v14, %v2489_v58 }
 0xc90   : > { %2502 = vrot.lane.b32.xlu0 %v2500_v45, %s5774_s23 }
 0xd02   : > { %v2503_v56 = vpop.permute.xlu0 %2502 }
 0xd03   : > { %v2505_v18 = vadd.f32 %v2503_v56, %v2495_v41 }
 0xd05   : > { %3692 = vtanh.f32 %v2505_v18  ;;  %v2563_v36 = vrot.slane %v2505_v18, 7 }
 0xd0b   : > { %v3693_v63 = vpop.eup %3692 }
 0xd0c   : > { %2508 = vrot.lane.b32.xlu2 %v3693_v63, %s5776_s16 }
 0xd66   : > { %v2509_v48 = vpop.permute.xlu2 %2508 }
 0xd67   : > { %v2511_v61 = vmul.f32 %v2509_v48, %v2489_v58 }
 0xd69   : > { %v2513_v55 = vrot.slane %v2511_v61, 4  ;;  %v2728_v32 = vsel %vm2727_vm3, %v2726_v0, %v2511_v61  ;;  %vm2733_vm3 = vcmask 1046528  }
 0xd6b   : > { %2514 = vrot.lane.b32.xlu0 %v2513_v55, %s5774_s23 }
 0xddd   : > { %v2515_v37 = vpop.permute.xlu0 %2514 }
 0xdde   : > { %3563 = vmatmul.msk.f32.vlgmr.msra.gmra.mxu3 %vm2151_vm10, %v2515_v37 }
 0xe61   : > { %v2535_v5 = vpop.f32.mrf.mxu3 }
 0xe62   : > { %v2539_v7 = vrot.slane %v2535_v5, 3 }
 0xe64   : > { %v2541_v33 = vadd.f32 %v2539_v7, %v5450_v35 }
 0xe66   : > { %3694 = vtanh.f32 %v2541_v33  ;;  %v3564_v6 = vmul.f32 -1.442695, %v2541_v33 }
 0xe68   : > { %3696 = vpow2.f32 %v3564_v6 }
 0xe6c   : > { %v3695_v25 = vpop.eup %3694 }
 0xe6d   : > { %2567 = vrot.lane.b32.xlu2 %v3695_v25, %s5776_s16 }
 0xe6e   : > { %v3697_v17 = vpop.eup %3696 }
 0xe6f   : > { %v2545_v8 = vadd.f32 1.0, %v3697_v17 }
 0xe71   : > { %3698 = vrcp.f32 %v2545_v8  ;;  %v2557_v9 = vand.u32 2147483648, %v2545_v8  ;;  %vm2551_vm5 = vweird.f32 %v2545_v8  ;;  %v2555_v43 = vand.u32 2147483647, %v2545_v8 }
 0xe73   : > { %v2558_v59 = vor.u32 1.1754944e-38, %v2557_v9  ;;  %vm2556_vm7 = vcmp.eq.f32.partialorder %v2555_v43, 8.507059e+37 }
 0xe77   : > { %v3699_v47 = vpop.eup %3698 }
 0xe78   : > { %v2547_v28 = vmul.f32 %v3699_v47, %v2545_v8  ;;  %vm2552_vm4 = vweird.f32 %v3699_v47 }
 0xe79   : > { %vm2553_vm6 = vmor %vm2551_vm5, %vm2552_vm4 }
 0xe7a   : > { %v2548_v10 = vsub.f32 1.0, %v2547_v28 }
 0xe7c   : > { %v2549_v62 = vmul.f32 %v3699_v47, %v2548_v10 }
 0xe7e   : > { %v2550_v39 = vadd.f32 %v3699_v47, %v2549_v62 }
 0xe80   : > { %v2554_v46 = vsel %vm2553_vm6, %v3699_v47, %v2550_v39 }
 0xe81   : > { %v2559_v29 = vsel %vm2556_vm7, %v2558_v59, %v2554_v46 }
 0xe82   : > { %v2565_v11 = vmul.f32 %v2563_v36, %v2559_v29  ;;  %v3603_v36 = vld [vmem:[%s5708_s6 + $0x8] sm:$0xff] }
 0xe83   : > { %2768 = vmatpush.bf16.msra.mxu2 %v3603_v36 }
 0xec7   : > { %v2568_v49 = vpop.permute.xlu2 %2567 }
 0xec8   : > { %v2570_v20 = vmul.f32 %v2568_v49, %v2559_v29 }
 0xeca   : > { %2572 = vrot.lane.b32.xlu0 %v2570_v20, %s5774_s23 }
 0xf3c   : > { %v2573_v51 = vpop.permute.xlu0 %2572 }
 0xf3d   : > { %v2575_v12 = vadd.f32 %v2573_v51, %v2565_v11  ;;  %v2778_v11 = vld [vmem:[%s5709_s7 + $0x18] sm:$0xff]  ;;  %v2777_v51 = vld [vmem:[%s5709_s7 + $0x10] sm:$0xff] }
 0xf3e   : > { %2791 = vmatpush.msrb.mxu3 %v2778_v11  ;;  %2854 = vmatpush.msra.mxu0 %v2778_v11 }
 0xf3f   : > { %3700 = vtanh.f32 %v2575_v12  ;;  %v2633_v23 = vrot.slane %v2575_v12, 7  ;;  %v3602_v12 = vld [vmem:[%s5708_s6] sm:$0xff]  ;;  %2924 = vmatpush.msrb.mxu1 %v2778_v11 }
 0xf40   : > { %2792 = vmatpush.msrb.mxu3 %v2777_v51  ;;  %2855 = vmatpush.msra.mxu0 %v2777_v51 }
 0xf41   : > { %2925 = vmatpush.msrb.mxu1 %v2777_v51  ;;  %2769 = vmatpush.bf16.msra.mxu2 %v3602_v12 }
 0xf45   : > { %v3701_v52 = vpop.eup %3700  ;;  %3204 = vmatpush.msrb.mxu2 %v2778_v11 }
 0xf46   : > { %2578 = vrot.lane.b32.xlu2 %v3701_v52, %s5776_s16  ;;  %v2776_v52 = vld [vmem:[%s5709_s7 + $0x8] sm:$0xff] }
 0xf47   : > { %2793 = vmatpush.msrb.mxu3 %v2776_v52  ;;  %2856 = vmatpush.msra.mxu0 %v2776_v52 }
 0xf48   : > { %2926 = vmatpush.msrb.mxu1 %v2776_v52  ;;  %3205 = vmatpush.msrb.mxu2 %v2777_v51 }
 0xf4a   : > { %3206 = vmatpush.msrb.mxu2 %v2776_v52 }
 0xfa0   : > { %v2579_v16 = vpop.permute.xlu2 %2578 }
 0xfa1   : > { %v2581_v2 = vmul.f32 %v2579_v16, %v2559_v29 }
 0xfa3   : > { %v2583_v30 = vrot.slane %v2581_v2, 5  ;;  %v2730_v57 = vsel %vm2729_vm8, %v2728_v32, %v2581_v2 }
 0xfa5   : > { %2584 = vrot.lane.b32.xlu0 %v2583_v30, %s5774_s23 }
0x1017   : > { %v2585_v31 = vpop.permute.xlu0 %2584 }
0x1018   : > { %3565 = vmatmul.msk.f32.vlgmr.msrb.gmra.mxu0 %vm2151_vm10, %v2585_v31  ;;  %v2775_v31 = vld [vmem:[%s5709_s7] sm:$0xff] }
0x1019   : > { %2794 = vmatpush.msrb.mxu3 %v2775_v31  ;;  %2857 = vmatpush.msra.mxu0 %v2775_v31 }
0x101a   : > { %2795 = vmatmul.f32.vlgmr.msrb.gmra.mxu3 %v3849_v40  ;;  %2927 = vmatpush.msrb.mxu1 %v2775_v31  ;;  %v3653_v40 = vld [vmem:[%s5710_s8] ss:$0 sm:$0xff] }
0x101b   : > { %2994 = vmatpush.msra.mxu3 %v2778_v11  ;;  %3064 = vmatpush.msrb.mxu0 %v2778_v11 }
0x101c   : > { %3207 = vmatpush.msrb.mxu2 %v2775_v31 }
0x101d   : > { %2995 = vmatpush.msra.mxu3 %v2777_v51  ;;  %3065 = vmatpush.msrb.mxu0 %v2777_v51 }
0x101f   : > { %2996 = vmatpush.msra.mxu3 %v2776_v52  ;;  %3066 = vmatpush.msrb.mxu0 %v2776_v52 }
0x1021   : > { %2997 = vmatpush.msra.mxu3 %v2775_v31  ;;  %3067 = vmatpush.msrb.mxu0 %v2775_v31 }
0x1023   : > { %3274 = vmatpush.msrb.mxu3 %v2778_v11 }
0x1025   : > { %3275 = vmatpush.msrb.mxu3 %v2777_v51 }
0x1027   : > { %3276 = vmatpush.msrb.mxu3 %v2776_v52 }
0x1029   : > { %3277 = vmatpush.msrb.mxu3 %v2775_v31 }
0x1095   : > { %v2605_v19 = vpop.f32.mrf.mxu0 }
0x1096   : > { %v2609_v54 = vrot.slane %v2605_v19, 2 }
0x1098   : > { %v2611_v0 = vadd.f32 %v2609_v54, %v5450_v35 }
0x109a   : > { %3702 = vtanh.f32 %v2611_v0  ;;  %v3566_v38 = vmul.f32 -1.442695, %v2611_v0 }
0x109c   : > { %3704 = vpow2.f32 %v3566_v38 }
0x109d   : > { %v2796_v0 = vpop.f32.mrf.mxu3 }
0x10a0   : > { %v3703_v3 = vpop.eup %3702 }
0x10a1   : > { %2637 = vrot.lane.b32.xlu2 %v3703_v3, %s5776_s16 }
0x10a2   : > { %v3705_v15 = vpop.eup %3704 }
0x10a3   : > { %v2615_v50 = vadd.f32 1.0, %v3705_v15 }
0x10a5   : > { %3706 = vrcp.f32 %v2615_v50  ;;  %v2627_v26 = vand.u32 2147483648, %v2615_v50  ;;  %vm2621_vm9 = vweird.f32 %v2615_v50  ;;  %v2625_v21 = vand.u32 2147483647, %v2615_v50 }
0x10a7   : > { %v2628_v27 = vor.u32 1.1754944e-38, %v2627_v26  ;;  %vm2626_vm12 = vcmp.eq.f32.partialorder %v2625_v21, 8.507059e+37 }
0x10ab   : > { %v3707_v1 = vpop.eup %3706 }
0x10ac   : > { %v2617_v13 = vmul.f32 %v3707_v1, %v2615_v50  ;;  %vm2622_vm0 = vweird.f32 %v3707_v1 }
0x10ad   : > { %vm2623_vm11 = vmor %vm2621_vm9, %vm2622_vm0 }
0x10ae   : > { %v2618_v44 = vsub.f32 1.0, %v2617_v13 }
0x10b0   : > { %v2619_v34 = vmul.f32 %v3707_v1, %v2618_v44 }
0x10b2   : > { %v2620_v42 = vadd.f32 %v3707_v1, %v2619_v34 }
0x10b4   : > { %v2624_v4 = vsel %vm2623_vm11, %v3707_v1, %v2620_v42 }
0x10b5   : > { %v2629_v60 = vsel %vm2626_vm12, %v2628_v27, %v2624_v4 }
0x10b6   : > { %v2635_v14 = vmul.f32 %v2633_v23, %v2629_v60 }
0x10fb   : > { %v2638_v22 = vpop.permute.xlu2 %2637 }
0x10fc   : > { %v2640_v53 = vmul.f32 %v2638_v22, %v2629_v60 }
0x10fe   : > { %2642 = vrot.lane.b32.xlu0 %v2640_v53, %s5774_s23 }
0x1170   : > { %v2643_v58 = vpop.permute.xlu0 %2642 }
0x1171   : > { %v2645_v45 = vadd.f32 %v2643_v58, %v2635_v14 }
0x1173   : > { %3708 = vtanh.f32 %v2645_v45  ;;  %v2703_v46 = vrot.slane %v2645_v45, 7 }
0x1179   : > { %v3709_v24 = vpop.eup %3708 }
0x117a   : > { %2648 = vrot.lane.b32.xlu2 %v3709_v24, %s5776_s16 }
0x11d4   : > { %v2649_v41 = vpop.permute.xlu2 %2648 }
0x11d5   : > { %v2651_v56 = vmul.f32 %v2649_v41, %v2629_v60 }
0x11d7   : > { %v2653_v18 = vrot.slane %v2651_v56, 6  ;;  %v2732_v63 = vsel %vm2731_vm13, %v2730_v57, %v2651_v56 }
0x11d9   : > { %2654 = vrot.lane.b32.xlu0 %v2653_v18, %s5774_s23 }
0x124b   : > { %v2655_v48 = vpop.permute.xlu0 %2654 }
0x124c   : > { %3567 = vmatmul.msk.f32.vlgmr.msra.gmra.mxu1 %vm2151_vm10, %v2655_v48 }
0x124d   : > { %3134 = vmatpush.msra.mxu1 %v2778_v11 }
0x124f   : > { %3135 = vmatpush.msra.mxu1 %v2777_v51 }
0x1251   : > { %3136 = vmatpush.msra.mxu1 %v2776_v52 }
0x1253   : > { %3137 = vmatpush.msra.mxu1 %v2775_v31 }
0x12c9   : > { %v2675_v61 = vpop.f32.mrf.mxu1 }
0x12ca   : > { %v2679_v55 = vrot.slane %v2675_v61, 1 }
0x12cc   : > { %v2681_v32 = vadd.f32 %v2679_v55, %v5450_v35 }
0x12ce   : > { %3710 = vtanh.f32 %v2681_v32  ;;  %v3568_v5 = vmul.f32 -1.442695, %v2681_v32 }
0x12d0   : > { %3712 = vpow2.f32 %v3568_v5 }
0x12d4   : > { %v3711_v37 = vpop.eup %3710 }
0x12d5   : > { %2707 = vrot.lane.b32.xlu2 %v3711_v37, %s5776_s16 }
0x12d6   : > { %v3713_v7 = vpop.eup %3712 }
0x12d7   : > { %v2685_v33 = vadd.f32 1.0, %v3713_v7 }
0x12d9   : > { %3714 = vrcp.f32 %v2685_v33  ;;  %v2697_v28 = vand.u32 2147483648, %v2685_v33  ;;  %vm2691_vm15 = vweird.f32 %v2685_v33  ;;  %v2695_v10 = vand.u32 2147483647, %v2685_v33 }
0x12db   : > { %v2698_v62 = vor.u32 1.1754944e-38, %v2697_v28  ;;  %vm2696_vm2 = vcmp.eq.f32.partialorder %v2695_v10, 8.507059e+37 }
0x12df   : > { %v3715_v25 = vpop.eup %3714 }
0x12e0   : > { %v2687_v6 = vmul.f32 %v3715_v25, %v2685_v33  ;;  %vm2692_vm14 = vweird.f32 %v3715_v25 }
0x12e1   : > { %vm2693_vm1 = vmor %vm2691_vm15, %vm2692_vm14 }
0x12e2   : > { %v2688_v17 = vsub.f32 1.0, %v2687_v6 }
0x12e4   : > { %v2689_v8 = vmul.f32 %v3715_v25, %v2688_v17 }
0x12e6   : > { %v2690_v47 = vadd.f32 %v3715_v25, %v2689_v8 }
0x12e8   : > { %v2694_v35 = vsel %vm2693_vm1, %v3715_v25, %v2690_v47 }
0x12e9   : > { %v2699_v9 = vsel %vm2696_vm2, %v2698_v62, %v2694_v35 }
0x12ea   : > { %v2705_v59 = vmul.f32 %v2703_v46, %v2699_v9 }
0x132f   : > { %v2708_v39 = vpop.permute.xlu2 %2707 }
0x1330   : > { %v2710_v43 = vmul.f32 %v2708_v39, %v2699_v9 }
0x1332   : > { %2712 = vrot.lane.b32.xlu0 %v2710_v43, %s5774_s23  ;;  %s5925_s23 = smov 32  }
0x13a4   : > { %v2713_v49 = vpop.permute.xlu0 %2712 }
0x13a5   : > { %v2715_v29 = vadd.f32 %v2713_v49, %v2705_v59 }
0x13a7   : > { %3716 = vtanh.f32 %v2715_v29 }
0x13ad   : > { %v3717_v20 = vpop.eup %3716 }
0x13ae   : > { %2718 = vrot.lane.b32.xlu2 %v3717_v20, %s5776_s16 }
0x1408   : > { %v2719_v16 = vpop.permute.xlu2 %2718 }
0x1409   : > { %v2721_v2 = vmul.f32 %v2719_v16, %v2699_v9 }
0x140b   : > { %v2734_v30 = vsel %vm2733_vm3, %v2732_v63, %v2721_v2 }
0x140c   : > { %v2735_v57 = vpack.c.bf16 %v2734_v30, %v2734_v30 }
0x140e   : > { %2745 = vrot.lane.b32.xlu0 %v2735_v57, %s5925_s23 }
0x1480   : > { %v2746_v19 = vpop.permute.xlu0 %2745 }
0x1481   : > { %3577 = vmatmul.msk.bf16.vlgmr.msra.gmra.mxu2 %vm2151_vm10, %v2746_v19 }
0x1504   : > { %v2771_v54 = vpop.f32.mrf.mxu2 }
0x1505   : > { %v5527_v3 = vadd.f32 %v3653_v40, %v2771_v54 }
0x1507   : > { %v2799_v38 = vadd.f32 %v2796_v0, %v5527_v3 }
0x1509   : > { %3718 = vtanh.f32 %v2799_v38  ;;  %v3578_v1 = vmul.f32 -1.442695, %v2799_v38 }
0x150b   : > { %3720 = vpow2.f32 %v3578_v1 }
0x150c   : > { %v2773_v15 = vpop.f32.mrf.mxu2 }
0x150f   : > { %v3719_v50 = vpop.eup %3718 }
0x1510   : > { %2822 = vrot.lane.b32.xlu2 %v3719_v50, %s5926_s26 }
0x1511   : > { %v3721_v13 = vpop.eup %3720 }
0x1512   : > { %v2803_v44 = vadd.f32 1.0, %v3721_v13 }
0x1514   : > { %3722 = vrcp.f32 %v2803_v44  ;;  %v2815_v27 = vand.u32 2147483648, %v2803_v44  ;;  %vm2809_vm5 = vweird.f32 %v2803_v44  ;;  %v2813_v22 = vand.u32 2147483647, %v2803_v44 }
0x1516   : > { %v2816_v53 = vor.u32 1.1754944e-38, %v2815_v27  ;;  %vm2814_vm7 = vcmp.eq.f32.partialorder %v2813_v22, 8.507059e+37 }
0x151a   : > { %v3723_v34 = vpop.eup %3722 }
0x151b   : > { %v2805_v42 = vmul.f32 %v3723_v34, %v2803_v44  ;;  %vm2810_vm4 = vweird.f32 %v3723_v34 }
0x151c   : > { %vm2811_vm6 = vmor %vm2809_vm5, %vm2810_vm4 }
0x151d   : > { %v2806_v26 = vsub.f32 1.0, %v2805_v42 }
0x151f   : > { %v2807_v21 = vmul.f32 %v3723_v34, %v2806_v26 }
0x1521   : > { %v2808_v4 = vadd.f32 %v3723_v34, %v2807_v21 }
0x1523   : > { %v2812_v60 = vsel %vm2811_vm6, %v3723_v34, %v2808_v4 }
0x1524   : > { %v2817_v14 = vsel %vm2814_vm7, %v2816_v53, %v2812_v60 }
0x1525   : > { %v2820_v45 = vmul.f32 0.0, %v2817_v14 }
0x156a   : > { %v2823_v23 = vpop.permute.xlu2 %2822 }
0x156b   : > { %v2825_v58 = vmul.f32 %v2823_v23, %v2817_v14 }
0x156d   : > { %2827 = vrot.lane.b32.xlu0 %v2825_v58, %s5925_s23 }
0x15df   : > { %v2828_v24 = vpop.permute.xlu0 %2827 }
0x15e0   : > { %v2830_v41 = vadd.f32 %v2828_v24, %v2820_v45 }
0x15e2   : > { %3724 = vtanh.f32 %v2830_v41  ;;  %v2887_v46 = vrot.slane %v2830_v41, 7 }
0x15e8   : > { %v3725_v56 = vpop.eup %3724 }
0x15e9   : > { %2833 = vrot.lane.b32.xlu2 %v3725_v56, %s5926_s26 }
0x1643   : > { %v2834_v18 = vpop.permute.xlu2 %2833 }
0x1644   : > { %v2836_v63 = vmul.f32 %v2834_v18, %v2817_v14 }
0x1646   : > { %2838 = vrot.lane.b32.xlu0 %v2836_v63, %s5925_s23 }
0x16b8   : > { %v2839_v48 = vpop.permute.xlu0 %2838 }
0x16b9   : > { %3579 = vmatmul.msk.f32.vlgmr.msra.gmra.mxu0 %vm2151_vm10, %v2839_v48 }
0x1736   : > { %v2859_v61 = vpop.f32.mrf.mxu0 }
0x1737   : > { %v2863_v55 = vrot.slane %v2859_v61, 7 }
0x1739   : > { %v2865_v32 = vadd.f32 %v2863_v55, %v5527_v3 }
0x173b   : > { %3726 = vtanh.f32 %v2865_v32  ;;  %v3580_v5 = vmul.f32 -1.442695, %v2865_v32 }
0x173d   : > { %3728 = vpow2.f32 %v3580_v5 }
0x1741   : > { %v3727_v37 = vpop.eup %3726 }
0x1742   : > { %2891 = vrot.lane.b32.xlu2 %v3727_v37, %s5926_s26 }
0x1743   : > { %v3729_v7 = vpop.eup %3728 }
0x1744   : > { %v2869_v33 = vadd.f32 1.0, %v3729_v7 }
0x1746   : > { %3730 = vrcp.f32 %v2869_v33  ;;  %v2881_v28 = vand.u32 2147483648, %v2869_v33  ;;  %vm2875_vm0 = vweird.f32 %v2869_v33  ;;  %v2879_v10 = vand.u32 2147483647, %v2869_v33 }
0x1748   : > { %v2882_v62 = vor.u32 1.1754944e-38, %v2881_v28  ;;  %vm2880_vm11 = vcmp.eq.f32.partialorder %v2879_v10, 8.507059e+37 }
0x174c   : > { %v3731_v25 = vpop.eup %3730 }
0x174d   : > { %v2871_v6 = vmul.f32 %v3731_v25, %v2869_v33  ;;  %vm2876_vm8 = vweird.f32 %v3731_v25 }
0x174e   : > { %vm2877_vm9 = vmor %vm2875_vm0, %vm2876_vm8 }
0x174f   : > { %v2872_v17 = vsub.f32 1.0, %v2871_v6 }
0x1751   : > { %v2873_v8 = vmul.f32 %v3731_v25, %v2872_v17 }
0x1753   : > { %v2874_v47 = vadd.f32 %v3731_v25, %v2873_v8 }
0x1755   : > { %v2878_v35 = vsel %vm2877_vm9, %v3731_v25, %v2874_v47 }
0x1756   : > { %v2883_v9 = vsel %vm2880_vm11, %v2882_v62, %v2878_v35 }
0x1757   : > { %v2889_v59 = vmul.f32 %v2887_v46, %v2883_v9 }
0x179c   : > { %v2892_v39 = vpop.permute.xlu2 %2891 }
0x179d   : > { %v2894_v43 = vmul.f32 %v2892_v39, %v2883_v9 }
0x179f   : > { %2896 = vrot.lane.b32.xlu0 %v2894_v43, %s5925_s23 }
0x1811   : > { %v2897_v49 = vpop.permute.xlu0 %2896 }
0x1812   : > { %v2899_v29 = vadd.f32 %v2897_v49, %v2889_v59 }
0x1814   : > { %3732 = vtanh.f32 %v2899_v29  ;;  %v2957_v21 = vrot.slane %v2899_v29, 7 }
0x181a   : > { %v3733_v20 = vpop.eup %3732 }
0x181b   : > { %2902 = vrot.lane.b32.xlu2 %v3733_v20, %s5926_s26 }
0x1875   : > { %v2903_v36 = vpop.permute.xlu2 %2902 }
0x1876   : > { %v2905_v11 = vmul.f32 %v2903_v36, %v2883_v9 }
0x1878   : > { %v2907_v51 = vrot.slane %v2905_v11, 1 }
0x187a   : > { %2908 = vrot.lane.b32.xlu0 %v2907_v51, %s5925_s23 }
0x18ec   : > { %v2909_v12 = vpop.permute.xlu0 %2908 }
0x18ed   : > { %3581 = vmatmul.msk.f32.vlgmr.msrb.gmra.mxu1 %vm2151_vm10, %v2909_v12 }
0x196a   : > { %v2929_v52 = vpop.f32.mrf.mxu1 }
0x196b   : > { %v2933_v16 = vrot.slane %v2929_v52, 6 }
0x196d   : > { %v2935_v2 = vadd.f32 %v2933_v16, %v5527_v3 }
0x196f   : > { %3734 = vtanh.f32 %v2935_v2  ;;  %v3582_v57 = vmul.f32 -1.442695, %v2935_v2 }
0x1971   : > { %3736 = vpow2.f32 %v3582_v57 }
0x1975   : > { %v3735_v30 = vpop.eup %3734 }
0x1976   : > { %2961 = vrot.lane.b32.xlu1 %v3735_v30, %s5926_s26 }
0x1977   : > { %v3737_v31 = vpop.eup %3736 }
0x1978   : > { %v2939_v19 = vadd.f32 1.0, %v3737_v31 }
0x197a   : > { %3738 = vrcp.f32 %v2939_v19  ;;  %v2951_v50 = vand.u32 2147483648, %v2939_v19  ;;  %vm2945_vm13 = vweird.f32 %v2939_v19  ;;  %v2949_v1 = vand.u32 2147483647, %v2939_v19 }
0x197c   : > { %v2952_v44 = vor.u32 1.1754944e-38, %v2951_v50  ;;  %vm2950_vm15 = vcmp.eq.f32.partialorder %v2949_v1, 8.507059e+37 }
0x1980   : > { %v3739_v40 = vpop.eup %3738 }
0x1981   : > { %v2941_v54 = vmul.f32 %v3739_v40, %v2939_v19  ;;  %vm2946_vm12 = vweird.f32 %v3739_v40 }
0x1982   : > { %vm2947_vm14 = vmor %vm2945_vm13, %vm2946_vm12 }
0x1983   : > { %v2942_v0 = vsub.f32 1.0, %v2941_v54 }
0x1985   : > { %v2943_v38 = vmul.f32 %v3739_v40, %v2942_v0 }
0x1987   : > { %v2944_v15 = vadd.f32 %v3739_v40, %v2943_v38 }
0x1989   : > { %v2948_v13 = vsel %vm2947_vm14, %v3739_v40, %v2944_v15 }
0x198a   : > { %v2953_v42 = vsel %vm2950_vm15, %v2952_v44, %v2948_v13 }
0x198b   : > { %v2959_v4 = vmul.f32 %v2957_v21, %v2953_v42 }
0x19e8   : > { %v2962_v34 = vpop.permute.xlu1 %2961 }
0x19e9   : > { %v2964_v26 = vmul.f32 %v2962_v34, %v2953_v42 }
0x19eb   : > { %2966 = vrot.lane.b32.xlu2 %v2964_v26, %s5925_s23 }
0x1a45   : > { %v2967_v27 = vpop.permute.xlu2 %2966 }
0x1a46   : > { %v2969_v22 = vadd.f32 %v2967_v27, %v2959_v4 }
0x1a48   : > { %3740 = vtanh.f32 %v2969_v22  ;;  %v3027_v28 = vrot.slane %v2969_v22, 7 }
0x1a4e   : > { %v3741_v60 = vpop.eup %3740 }
0x1a4f   : > { %2972 = vrot.lane.b32.xlu0 %v3741_v60, %s5926_s26 }
0x1ac1   : > { %v2973_v53 = vpop.permute.xlu0 %2972 }
0x1ac2   : > { %v2975_v23 = vmul.f32 %v2973_v53, %v2953_v42 }
0x1ac4   : > { %v2977_v14 = vrot.slane %v2975_v23, 2 }
0x1ac6   : > { %2978 = vrot.lane.b32.xlu1 %v2977_v14, %s5925_s23 }
0x1b38   : > { %v2979_v58 = vpop.permute.xlu1 %2978 }
0x1b39   : > { %3583 = vmatmul.msk.f32.vlgmr.msra.gmra.mxu3 %vm2151_vm10, %v2979_v58 }
0x1bbc   : > { %v2999_v45 = vpop.f32.mrf.mxu3 }
0x1bbd   : > { %v3003_v24 = vrot.slane %v2999_v45, 5 }
0x1bbf   : > { %v3005_v41 = vadd.f32 %v3003_v24, %v5527_v3 }
0x1bc1   : > { %3742 = vtanh.f32 %v3005_v41  ;;  %v3584_v18 = vmul.f32 -1.442695, %v3005_v41 }
0x1bc3   : > { %3744 = vpow2.f32 %v3584_v18 }
0x1bc7   : > { %v3743_v56 = vpop.eup %3742 }
0x1bc8   : > { %3031 = vrot.lane.b32.xlu2 %v3743_v56, %s5926_s26 }
0x1bc9   : > { %v3745_v63 = vpop.eup %3744 }
0x1bca   : > { %v3009_v48 = vadd.f32 1.0, %v3745_v63 }
0x1bcc   : > { %3746 = vrcp.f32 %v3009_v48  ;;  %v3021_v7 = vand.u32 2147483648, %v3009_v48  ;;  %vm3015_vm2 = vweird.f32 %v3009_v48  ;;  %v3019_v33 = vand.u32 2147483647, %v3009_v48 }
0x1bce   : > { %v3022_v6 = vor.u32 1.1754944e-38, %v3021_v7  ;;  %vm3020_vm4 = vcmp.eq.f32.partialorder %v3019_v33, 8.507059e+37 }
0x1bd2   : > { %v3747_v61 = vpop.eup %3746 }
0x1bd3   : > { %v3011_v55 = vmul.f32 %v3747_v61, %v3009_v48  ;;  %vm3016_vm1 = vweird.f32 %v3747_v61 }
0x1bd4   : > { %vm3017_vm3 = vmor %vm3015_vm2, %vm3016_vm1 }
0x1bd5   : > { %v3012_v32 = vsub.f32 1.0, %v3011_v55 }
0x1bd7   : > { %v3013_v37 = vmul.f32 %v3747_v61, %v3012_v32 }
0x1bd9   : > { %v3014_v5 = vadd.f32 %v3747_v61, %v3013_v37 }
0x1bdb   : > { %v3018_v25 = vsel %vm3017_vm3, %v3747_v61, %v3014_v5 }
0x1bdc   : > { %v3023_v8 = vsel %vm3020_vm4, %v3022_v6, %v3018_v25 }
0x1bdd   : > { %v3029_v10 = vmul.f32 %v3027_v28, %v3023_v8 }
0x1c22   : > { %v3032_v17 = vpop.permute.xlu2 %3031 }
0x1c23   : > { %v3034_v47 = vmul.f32 %v3032_v17, %v3023_v8 }
0x1c25   : > { %3036 = vrot.lane.b32.xlu0 %v3034_v47, %s5925_s23 }
0x1c97   : > { %v3037_v35 = vpop.permute.xlu0 %3036 }
0x1c98   : > { %v3039_v62 = vadd.f32 %v3037_v35, %v3029_v10 }
0x1c9a   : > { %3748 = vtanh.f32 %v3039_v62  ;;  %v3097_v50 = vrot.slane %v3039_v62, 7 }
0x1ca0   : > { %v3749_v39 = vpop.eup %3748 }
0x1ca1   : > { %3042 = vrot.lane.b32.xlu1 %v3749_v39, %s5926_s26 }
0x1d13   : > { %v3043_v9 = vpop.permute.xlu1 %3042 }
0x1d14   : > { %v3045_v43 = vmul.f32 %v3043_v9, %v3023_v8 }
0x1d16   : > { %v3047_v46 = vrot.slane %v3045_v43, 3 }
0x1d18   : > { %3048 = vrot.lane.b32.xlu2 %v3047_v46, %s5925_s23 }
0x1d72   : > { %v3049_v59 = vpop.permute.xlu2 %3048 }
0x1d73   : > { %3585 = vmatmul.msk.f32.vlgmr.msrb.gmra.mxu0 %vm2151_vm10, %v3049_v59 }
0x1df0   : > { %v3069_v49 = vpop.f32.mrf.mxu0 }
0x1df1   : > { %v3073_v29 = vrot.slane %v3069_v49, 4 }
0x1df3   : > { %v3075_v20 = vadd.f32 %v3073_v29, %v5527_v3 }
0x1df5   : > { %3750 = vtanh.f32 %v3075_v20  ;;  %v3586_v11 = vmul.f32 -1.442695, %v3075_v20 }
0x1df7   : > { %3752 = vpow2.f32 %v3586_v11 }
0x1dfb   : > { %v3751_v36 = vpop.eup %3750 }
0x1dfc   : > { %3101 = vrot.lane.b32.xlu0 %v3751_v36, %s5926_s26 }
0x1dfd   : > { %v3753_v51 = vpop.eup %3752 }
0x1dfe   : > { %v3079_v12 = vadd.f32 1.0, %v3753_v51 }
0x1e00   : > { %3754 = vrcp.f32 %v3079_v12  ;;  %v3091_v31 = vand.u32 2147483648, %v3079_v12  ;;  %vm3085_vm6 = vweird.f32 %v3079_v12  ;;  %v3089_v19 = vand.u32 2147483647, %v3079_v12 }
0x1e02   : > { %v3092_v54 = vor.u32 1.1754944e-38, %v3091_v31  ;;  %vm3090_vm8 = vcmp.eq.f32.partialorder %v3089_v19, 8.507059e+37 }
0x1e06   : > { %v3755_v52 = vpop.eup %3754 }
0x1e07   : > { %v3081_v16 = vmul.f32 %v3755_v52, %v3079_v12  ;;  %vm3086_vm5 = vweird.f32 %v3755_v52 }
0x1e08   : > { %vm3087_vm7 = vmor %vm3085_vm6, %vm3086_vm5  ;;  %vm3429_vm6 = vcmask 57344  }
0x1e09   : > { %v3082_v2 = vsub.f32 1.0, %v3081_v16 }
0x1e0b   : > { %v3083_v30 = vmul.f32 %v3755_v52, %v3082_v2 }
0x1e0d   : > { %v3084_v57 = vadd.f32 %v3755_v52, %v3083_v30 }
0x1e0f   : > { %v3088_v40 = vsel %vm3087_vm7, %v3755_v52, %v3084_v57 }
0x1e10   : > { %v3093_v38 = vsel %vm3090_vm8, %v3092_v54, %v3088_v40 }
0x1e11   : > { %v3099_v1 = vmul.f32 %v3097_v50, %v3093_v38 }
0x1e6e   : > { %v3102_v0 = vpop.permute.xlu0 %3101 }
0x1e6f   : > { %v3104_v15 = vmul.f32 %v3102_v0, %v3093_v38 }
0x1e71   : > { %3106 = vrot.lane.b32.xlu1 %v3104_v15, %s5925_s23 }
0x1ee3   : > { %v3107_v13 = vpop.permute.xlu1 %3106 }
0x1ee4   : > { %v3109_v44 = vadd.f32 %v3107_v13, %v3099_v1 }
0x1ee6   : > { %3756 = vtanh.f32 %v3109_v44  ;;  %v3167_v7 = vrot.slane %v3109_v44, 7 }
0x1eec   : > { %v3757_v34 = vpop.eup %3756 }
0x1eed   : > { %3112 = vrot.lane.b32.xlu2 %v3757_v34, %s5926_s26 }
0x1f47   : > { %v3113_v42 = vpop.permute.xlu2 %3112 }
0x1f48   : > { %v3115_v26 = vmul.f32 %v3113_v42, %v3093_v38 }
0x1f4a   : > { %v3117_v21 = vrot.slane %v3115_v26, 4 }
0x1f4c   : > { %3118 = vrot.lane.b32.xlu0 %v3117_v21, %s5925_s23 }
0x1fbe   : > { %v3119_v4 = vpop.permute.xlu0 %3118 }
0x1fbf   : > { %3587 = vmatmul.msk.f32.vlgmr.msra.gmra.mxu1 %vm2151_vm10, %v3119_v4 }
0x203c   : > { %v3139_v27 = vpop.f32.mrf.mxu1 }
0x203d   : > { %v3143_v22 = vrot.slane %v3139_v27, 3 }
0x203f   : > { %v3145_v60 = vadd.f32 %v3143_v22, %v5527_v3 }
0x2041   : > { %3758 = vtanh.f32 %v3145_v60  ;;  %v3588_v23 = vmul.f32 -1.442695, %v3145_v60 }
0x2043   : > { %3760 = vpow2.f32 %v3588_v23 }
0x2047   : > { %v3759_v53 = vpop.eup %3758 }
0x2048   : > { %3171 = vrot.lane.b32.xlu1 %v3759_v53, %s5926_s26 }
0x2049   : > { %v3761_v14 = vpop.eup %3760 }
0x204a   : > { %v3149_v58 = vadd.f32 1.0, %v3761_v14 }
0x204c   : > { %3762 = vrcp.f32 %v3149_v58  ;;  %v3161_v63 = vand.u32 2147483648, %v3149_v58  ;;  %vm3155_vm9 = vweird.f32 %v3149_v58  ;;  %v3159_v48 = vand.u32 2147483647, %v3149_v58 }
0x204e   : > { %v3162_v55 = vor.u32 1.1754944e-38, %v3161_v63  ;;  %vm3160_vm12 = vcmp.eq.f32.partialorder %v3159_v48, 8.507059e+37 }
0x2052   : > { %v3763_v45 = vpop.eup %3762 }
0x2053   : > { %v3151_v24 = vmul.f32 %v3763_v45, %v3149_v58  ;;  %vm3156_vm0 = vweird.f32 %v3763_v45 }
0x2054   : > { %vm3157_vm11 = vmor %vm3155_vm9, %vm3156_vm0 }
0x2055   : > { %v3152_v41 = vsub.f32 1.0, %v3151_v24 }
0x2057   : > { %v3153_v56 = vmul.f32 %v3763_v45, %v3152_v41 }
0x2059   : > { %v3154_v18 = vadd.f32 %v3763_v45, %v3153_v56 }
0x205b   : > { %v3158_v61 = vsel %vm3157_vm11, %v3763_v45, %v3154_v18 }
0x205c   : > { %v3163_v37 = vsel %vm3160_vm12, %v3162_v55, %v3158_v61 }
0x205d   : > { %v3169_v33 = vmul.f32 %v3167_v7, %v3163_v37  ;;  %v3326_v7 = vld [vmem:[%s5711_s9] sm:$0xff] }
0x20ba   : > { %v3172_v32 = vpop.permute.xlu1 %3171 }
0x20bb   : > { %v3174_v5 = vmul.f32 %v3172_v32, %v3163_v37  ;;  %v3329_v32 = vld [vmem:[%s5711_s9 + $0x18] sm:$0xff] }
0x20bc   : > { %3349 = vmatpush.msra.mxu0 %v3329_v32 }
0x20bd   : > { %3176 = vrot.lane.b32.xlu2 %v3174_v5, %s5925_s23  ;;  %v3327_v5 = vld [vmem:[%s5711_s9 + $0x8] sm:$0xff] }
0x2117   : > { %v3177_v25 = vpop.permute.xlu2 %3176 }
0x2118   : > { %v3179_v6 = vadd.f32 %v3177_v25, %v3169_v33 }
0x211a   : > { %3764 = vtanh.f32 %v3179_v6  ;;  %v3237_v31 = vrot.slane %v3179_v6, 7 }
0x2120   : > { %v3765_v17 = vpop.eup %3764 }
0x2121   : > { %3182 = vrot.lane.b32.xlu0 %v3765_v17, %s5926_s26  ;;  %v3373_v17 = vld [vmem:[%s5713_s11 + $0x78] sm:$0xff] }
0x2122   : > { %3375 = vmatpush.msrb.mxu1 %v3373_v17 }
0x2193   : > { %v3183_v8 = vpop.permute.xlu0 %3182 }
0x2194   : > { %v3185_v47 = vmul.f32 %v3183_v8, %v3163_v37  ;;  %v3328_v37 = vld [vmem:[%s5711_s9 + $0x10] sm:$0xff] }
0x2195   : > { %3350 = vmatpush.msra.mxu0 %v3328_v37  ;;  %v3372_v8 = vld [vmem:[%s5713_s11 + $0x70] sm:$0xff] }
0x2196   : > { %v3187_v28 = vrot.slane %v3185_v47, 5  ;;  %v3371_v47 = vld [vmem:[%s5713_s11 + $0x68] sm:$0xff]  ;;  %3376 = vmatpush.msrb.mxu1 %v3372_v8 }
0x2197   : > { %3351 = vmatpush.msra.mxu0 %v3327_v5 }
0x2198   : > { %3188 = vrot.lane.b32.xlu1 %v3187_v28, %s5925_s23  ;;  %v3370_v28 = vld [vmem:[%s5713_s11 + $0x60] sm:$0xff]  ;;  %3377 = vmatpush.msrb.mxu1 %v3371_v47 }
0x2199   : > { %3352 = vmatpush.msra.mxu0 %v3326_v7 }
0x219a   : > { %3378 = vmatpush.msrb.mxu1 %v3370_v28 }
0x220a   : > { %v3189_v10 = vpop.permute.xlu1 %3188 }
0x220b   : > { %3589 = vmatmul.msk.f32.vlgmr.msrb.gmra.mxu2 %vm2151_vm10, %v3189_v10  ;;  %v3369_v10 = vld [vmem:[%s5713_s11 + $0x58] sm:$0xff] }
0x220c   : > { %3379 = vmatpush.msrb.mxu1 %v3369_v10 }
0x228e   : > { %v3209_v35 = vpop.f32.mrf.mxu2 }
0x228f   : > { %v3213_v62 = vrot.slane %v3209_v35, 2  ;;  %v3368_v35 = vld [vmem:[%s5713_s11 + $0x50] sm:$0xff] }
0x2290   : > { %3380 = vmatpush.msrb.mxu1 %v3368_v35 }
0x2291   : > { %v3215_v39 = vadd.f32 %v3213_v62, %v5527_v3  ;;  %v3367_v62 = vld [vmem:[%s5713_s11 + $0x48] sm:$0xff] }
0x2292   : > { %3381 = vmatpush.msrb.mxu1 %v3367_v62 }
0x2293   : > { %3766 = vtanh.f32 %v3215_v39  ;;  %v3590_v43 = vmul.f32 -1.442695, %v3215_v39  ;;  %v3366_v39 = vld [vmem:[%s5713_s11 + $0x40] sm:$0xff] }
0x2294   : > { %3382 = vmatpush.msrb.mxu1 %v3366_v39 }
0x2295   : > { %3768 = vpow2.f32 %v3590_v43  ;;  %v3364_v43 = vld [vmem:[%s5713_s11 + $0x30] sm:$0xff] }
0x2299   : > { %v3767_v9 = vpop.eup %3766 }
0x229a   : > { %3241 = vrot.lane.b32.xlu2 %v3767_v9, %s5926_s26  ;;  %v3365_v9 = vld [vmem:[%s5713_s11 + $0x38] sm:$0xff] }
0x229b   : > { %v3769_v46 = vpop.eup %3768  ;;  %3383 = vmatpush.msrb.mxu1 %v3365_v9 }
0x229c   : > { %v3219_v59 = vadd.f32 1.0, %v3769_v46  ;;  %v3363_v46 = vld [vmem:[%s5713_s11 + $0x28] sm:$0xff] }
0x229d   : > { %3384 = vmatpush.msrb.mxu1 %v3364_v43 }
0x229e   : > { %3770 = vrcp.f32 %v3219_v59  ;;  %v3231_v51 = vand.u32 2147483648, %v3219_v59  ;;  %vm3225_vm14 = vweird.f32 %v3219_v59  ;;  %v3229_v12 = vand.u32 2147483647, %v3219_v59 }
0x229f   : > { %3385 = vmatpush.msrb.mxu1 %v3363_v46 }
0x22a0   : > { %v3232_v16 = vor.u32 1.1754944e-38, %v3231_v51  ;;  %vm3230_vm1 = vcmp.eq.f32.partialorder %v3229_v12, 8.507059e+37  ;;  %v3403_v51 = vld [vmem:[%s5715_s13 + $0x38] sm:$0xff]  ;;  %v3402_v12 = vld [vmem:[%s5715_s13 + $0x30] sm:$0xff] }
0x22a1   : > { %3417 = vmatpush.msra.mxu2 %v3403_v51 }
0x22a3   : > { %3418 = vmatpush.msra.mxu2 %v3402_v12 }
0x22a4   : > { %v3771_v49 = vpop.eup %3770 }
0x22a5   : > { %v3221_v29 = vmul.f32 %v3771_v49, %v3219_v59  ;;  %vm3226_vm13 = vweird.f32 %v3771_v49  ;;  %v3362_v59 = vld [vmem:[%s5713_s11 + $0x20] sm:$0xff] }
0x22a6   : > { %vm3227_vm15 = vmor %vm3225_vm14, %vm3226_vm13  ;;  %3386 = vmatpush.msrb.mxu1 %v3362_v59 }
0x22a7   : > { %v3222_v20 = vsub.f32 1.0, %v3221_v29 }
0x22a9   : > { %v3223_v36 = vmul.f32 %v3771_v49, %v3222_v20  ;;  %v3360_v20 = vld [vmem:[%s5713_s11 + $0x10] sm:$0xff] }
0x22ab   : > { %v3224_v11 = vadd.f32 %v3771_v49, %v3223_v36  ;;  %v3359_v36 = vld [vmem:[%s5713_s11 + $0x8] sm:$0xff] }
0x22ad   : > { %v3228_v52 = vsel %vm3227_vm15, %v3771_v49, %v3224_v11  ;;  %v3361_v49 = vld [vmem:[%s5713_s11 + $0x18] sm:$0xff]  ;;  %v3358_v11 = vld [vmem:[%s5713_s11] sm:$0xff] }
0x22ae   : > { %v3233_v30 = vsel %vm3230_vm1, %v3232_v16, %v3228_v52  ;;  %3387 = vmatpush.msrb.mxu1 %v3361_v49  ;;  %v3401_v52 = vld [vmem:[%s5715_s13 + $0x28] sm:$0xff]  ;;  %v3400_v16 = vld [vmem:[%s5715_s13 + $0x20] sm:$0xff] }
0x22af   : > { %v3239_v19 = vmul.f32 %v3237_v31, %v3233_v30  ;;  %3419 = vmatpush.msra.mxu2 %v3401_v52 }
0x22b0   : > { %3388 = vmatpush.msrb.mxu1 %v3360_v20 }
0x22b1   : > { %3420 = vmatpush.msra.mxu2 %v3400_v16 }
0x22b2   : > { %3389 = vmatpush.msrb.mxu1 %v3359_v36 }
0x22b4   : > { %3390 = vmatpush.msrb.mxu1 %v3358_v11 }
0x22f4   : > { %v3242_v2 = vpop.permute.xlu2 %3241 }
0x22f5   : > { %v3244_v57 = vmul.f32 %v3242_v2, %v3233_v30  ;;  %v3399_v2 = vld [vmem:[%s5715_s13 + $0x18] sm:$0xff] }
0x22f6   : > { %3421 = vmatpush.msra.mxu2 %v3399_v2 }
0x22f7   : > { %3246 = vrot.lane.b32.xlu0 %v3244_v57, %s5925_s23 }
0x2369   : > { %v3247_v40 = vpop.permute.xlu0 %3246 }
0x236a   : > { %v3249_v54 = vadd.f32 %v3247_v40, %v3239_v19  ;;  %v3398_v40 = vld [vmem:[%s5715_s13 + $0x10] sm:$0xff] }
0x236b   : > { %3422 = vmatpush.msra.mxu2 %v3398_v40 }
0x236c   : > { %3772 = vtanh.f32 %v3249_v54  ;;  %v3307_v18 = vrot.slane %v3249_v54, 7  ;;  %v3397_v54 = vld [vmem:[%s5715_s13 + $0x8] sm:$0xff] }
0x236d   : > { %3423 = vmatpush.msra.mxu2 %v3397_v54 }
0x2372   : > { %v3773_v0 = vpop.eup %3772 }
0x2373   : > { %3252 = vrot.lane.b32.xlu1 %v3773_v0, %s5926_s26  ;;  %v3396_v0 = vld [vmem:[%s5715_s13] sm:$0xff] }
0x2374   : > { %3424 = vmatpush.msra.mxu2 %v3396_v0 }
0x23e5   : > { %v3253_v38 = vpop.permute.xlu1 %3252 }
0x23e6   : > { %v3255_v15 = vmul.f32 %v3253_v38, %v3233_v30  ;;  %v3330_v30 = vld [vmem:[%s5712_s10] sm:$0x1] }
0x23e7   : > { %v3374_v38 = vld [vmem:[%s5714_s12] sm:$0x1] }
0x23e8   : > { %v3257_v50 = vrot.slane %v3255_v15, 6 }
0x23ea   : > { %3258 = vrot.lane.b32.xlu2 %v3257_v50, %s5925_s23 }
0x2444   : > { %v3259_v1 = vpop.permute.xlu2 %3258 }
0x2445   : > { %3591 = vmatmul.msk.f32.vlgmr.msrb.gmra.mxu3 %vm2151_vm10, %v3259_v1 }
0x24c8   : > { %v3279_v13 = vpop.f32.mrf.mxu3 }
0x24c9   : > { %v3283_v44 = vrot.slane %v3279_v13, 1  ;;  %v3404_v13 = vld [vmem:[%s5716_s14] sm:$0x1] }
0x24cb   : > { %v3285_v34 = vadd.f32 %v3283_v44, %v5527_v3 }
0x24cd   : > { %3774 = vtanh.f32 %v3285_v34  ;;  %v3592_v26 = vmul.f32 -1.442695, %v3285_v34 }
0x24cf   : > { %3776 = vpow2.f32 %v3592_v26 }
0x24d3   : > { %v3775_v42 = vpop.eup %3774 }
0x24d4   : > { %3311 = vrot.lane.b32.xlu0 %v3775_v42, %s5926_s26 }
0x24d5   : > { %v3777_v21 = vpop.eup %3776 }
0x24d6   : > { %v3289_v4 = vadd.f32 1.0, %v3777_v21 }
0x24d8   : > { %3778 = vrcp.f32 %v3289_v4  ;;  %v3301_v14 = vand.u32 2147483648, %v3289_v4  ;;  %vm3295_vm3 = vweird.f32 %v3289_v4  ;;  %v3299_v58 = vand.u32 2147483647, %v3289_v4 }
0x24da   : > { %v3302_v45 = vor.u32 1.1754944e-38, %v3301_v14  ;;  %vm3300_vm5 = vcmp.eq.f32.partialorder %v3299_v58, 8.507059e+37 }
0x24de   : > { %v3779_v27 = vpop.eup %3778 }
0x24df   : > { %v3291_v22 = vmul.f32 %v3779_v27, %v3289_v4  ;;  %vm3296_vm2 = vweird.f32 %v3779_v27 }
0x24e0   : > { %vm3297_vm4 = vmor %vm3295_vm3, %vm3296_vm2 }
0x24e1   : > { %v3292_v60 = vsub.f32 1.0, %v3291_v22 }
0x24e3   : > { %v3293_v53 = vmul.f32 %v3779_v27, %v3292_v60 }
0x24e5   : > { %v3294_v23 = vadd.f32 %v3779_v27, %v3293_v53 }
0x24e7   : > { %v3298_v3 = vsel %vm3297_vm4, %v3779_v27, %v3294_v23 }
0x24e8   : > { %v3303_v41 = vsel %vm3300_vm5, %v3302_v45, %v3298_v3 }
0x24e9   : > { %v3309_v63 = vmul.f32 %v3307_v18, %v3303_v41 }
0x2546   : > { %v3312_v24 = vpop.permute.xlu0 %3311 }
0x2547   : > { %v3314_v56 = vmul.f32 %v3312_v24, %v3303_v41 }
0x2549   : > { %3316 = vrot.lane.b32.xlu1 %v3314_v56, %s5925_s23 }
0x25bb   : > { %v3317_v48 = vpop.permute.xlu1 %3316 }
0x25bc   : > { %v3319_v61 = vadd.f32 %v3317_v48, %v3309_v63 }
0x25be   : > { %3780 = vtanh.f32 %v3319_v61 }
0x25c4   : > { %v3781_v55 = vpop.eup %3780 }
0x25c5   : > { %3322 = vrot.lane.b32.xlu2 %v3781_v55, %s5926_s26  ;;  %s3432_s26 = scalar_lea.sflag [#allocation3], %s485_s17 }
0x261f   : > { %v3323_v33 = vpop.permute.xlu2 %3322 }
0x2620   : > { %v3325_v25 = vmul.f32 %v3323_v33, %v3303_v41 }
0x2622   : > { %v3332_v6 = vrot.slane %v3325_v25, 7 }
0x2624   : > { %3333 = vrot.lane.b32.xlu0 %v3332_v6, %s5925_s23  ;;  %s486_s23 = scalar_lea.vmem [#allocation2], %s485_s17 }
0x2625   : > { %s3442_s24 = sshll.u32 %s486_s23, 4  ;;  %s3443_s24 = int_to_ptr.vmem [resolvable:$true] %s3442_s24 }
0x2696   : > { %v3334_v29 = vpop.permute.xlu0 %3333 }
0x2697   : > { %3593 = vmatmul.msk.f32.vlgmr.msra.gmra.mxu0 %vm2151_vm10, %v3334_v29  ;;  %vm3405_vm10 = vcmask 523264  }
0x2714   : > { %v3354_v57 = vpop.f32.mrf.mxu0 }
0x2715   : > { %v3355_v31 = vadd.f32 %v3354_v57, %v3330_v30 }
0x2717   : > { %v3357_v19 = vmax.f32 %v3355_v31, 0.0 }
0x2719   : > { %3391 = vmatmul.f32.vlgmr.msrb.gmra.mxu1 %v3357_v19 }
0x2796   : > { %v3392_v15 = vpop.f32.mrf.mxu1 }
0x2797   : > { %v3393_v50 = vadd.f32 %v3392_v15, %v3374_v38 }
0x2799   : > { %v3395_v1 = vmax.f32 %v3393_v50, 0.0 }
0x279b   : > { %3594 = vmatmul.msk.f32.vlgmr.msra.gmra.mxu2 %vm3405_vm10, %v3395_v1 }
0x281e   : > { %v3426_v44 = vpop.f32.mrf.mxu2 }
0x281f   : > { %v3427_v34 = vadd.f32 %v3426_v44, %v3404_v13 }
0x2821   : > { %3430 = vst.msk [vmem:[%s486_s23] sm:$0x1] %vm3429_vm6, %v3427_v34 }
0x2822   : > { %3809 = shalt.err (!%p3806_p3)
}
0x2823   : > { %3605 = dma.vmem_to_hbm [thread:$0]  (%p3970_p5), %s3443_s24, 16, %s3445_s1, %s3432_s26  }
0x2824 PF: > { %p3611_p4 = scmp.ge.s32.totalorder %s3844_s21, 2  ;;  %s3456_s17 = sand.u32 1, %s3832_s18  }
0x2825   : > { %s3457_s25 = scalar_lea.sflag [#allocation3], %s3456_s17 }
0x2826   : > { %p3608_p7 = pnand %p3611_p4, %p3974_p6 }
0x2828   : > { %p3609_p8 = pneg %p3608_p7 }
0x282a   : > { %3827 = dma.done.wait (%p3609_p8), %s3457_s25, 16  }
0x282b   : > { %3829 = vsyncadd (%p3609_p8), %s3457_s25, 4294967280  ;;  %s5927_s21 = sld [smem:[#allocation6_spill]]  ;;  %s5930_s18 = smov %s3836_s19 }
0x282c   : > { %s5928_s2 = sld [smem:[#allocation5_spill]] }
0x282d   : > { %s5929_s20 = sld [smem:[#allocation7_spill]] }
0x2831   : > { %p25_p9 = scmp.ge.s32.totalorder %s5927_s21, 4  }
0x2832   : > { %s5931_s19 = smov %s5928_s2 }
0x2833   :  { %27 = sbr.rel (!%p25_p9) target bundleno = 7 (0x7), region = 116 }
0x2838   :  { %3462 = vsyncpa [#allocation3], 1 }
0x2839   :  { %3464 = vsyncpa [#allocation3 + $0x1], 1 }

</bundles_post_ra>
